<compile_context>
chip_gen: v6e
topology: v6e:2x2x1
jax: 0.10.0
libtpu: 0.0.40
codegen_flags: <defaults>
</compile_context>

<pallas_src>
import jax
import jax.numpy as jnp
from jax.experimental import pallas as pl
from jax.experimental.pallas import tpu as pltpu  # noqa: F401  (TPU backend)

# small, hardware-friendly shapes consistent with the module's forward
INPUT_SIZE = 128
HIDDEN_SIZE = 128
NUM_LAYERS = 2          # fixed at 2 (matches the module); both layers fused in-kernel
NUM_CLASSES = 1
BATCH = 8
SEQ = 8
OUT_LANES = 128         # lane-dense output slab; wrapper slices [:, :NUM_CLASSES]

_GATE_PERM_BLOCKS = (0, 1, 3, 2)   # [i, f, g, o] -> [i, f, o, g]


def _lstm_kernel(x_ref,        # (T*B, D)      bf16
                 wih0_ref,     # (D, 4H)       bf16  (gate cols permuted [i,f,o,g])
                 b0_ref,       # (1, 4H)       f32   (b_ih0 + b_hh0, permuted)
                 wcomb_ref,    # (2H, 8H)      bf16  [[Whh0 | Wih1], [0 | Whh1]]
                 b1_ref,       # (1, 4H)       f32   (b_ih1 + b_hh1, permuted)
                 wfc_ref,      # (1, H)        f32
                 bfc_ref,      # (1, 1)        f32
                 out_ref):     # (B, OUT_LANES) f32
    B = out_ref.shape[0]
    TB = x_ref.shape[0]
    T = TB // B
    H = wfc_ref.shape[1]
    G = 4 * H

    # ---- layer-0 input projection for ALL timesteps: one (T*B,D)@(D,4H) matmul,
    #      off the serial chain; bias folded once; kept 2D (no reshape copy).
    xproj = jnp.dot(x_ref[...], wih0_ref[...],
                    preferred_element_type=jnp.float32) + b0_ref[...]   # (T*B, 4H)

    # ---- hoisted constants: one RHS for every per-step matmul, one bias broadcast
    w_comb = wcomb_ref[...]                                   # (2H, 8H) bf16
    b1_b = jnp.broadcast_to(b1_ref[...], (B, G))              # (B, 4H)  f32

    def gates_to_hc(gates, c):
        # gate layout (permuted in wrapper): [ i | f | o | g ]
        sfo = jax.nn.sigmoid(gates[:, :3 * H])    # one contiguous (B, 3H) sigmoid
        g = jnp.tanh(gates[:, 3 * H:])
        i = sfo[:, 0 * H:1 * H]
        f = sfo[:, 1 * H:2 * H]
        o = sfo[:, 2 * H:3 * H]
        c_new = f * c + i * g
        h_new = o * jnp.tanh(c_new)
        return h_new, c_new

    zH = jnp.zeros((B, H), jnp.float32)
    c0, c1, h1 = zH, zH, zH
    g0_rec = jnp.zeros((B, G), jnp.float32)       # h0(-1) @ Whh0 == 0

    # T is small & static -> fully unrolled recurrence, static row slices of xproj.
    for t in range(T):
        # layer 0: only the recurrent half remains per step (precomputed xproj)
        g0 = xproj[t * B:(t + 1) * B, :] + g0_rec
        h0, c0 = gates_to_hc(g0, c0)

        # single fused matmul: [h0(t), h1(t-1)] @ [[Whh0 | Wih1], [0 | Whh1]]
        # (both halves are exact lane tiles; concat is a cheap aligned copy)
        xh = jnp.concatenate([h0.astype(jnp.bfloat16),
                              h1.astype(jnp.bfloat16)], axis=-1)         # (B, 2H)
        comb = jnp.dot(xh, w_comb, preferred_element_type=jnp.float32)   # (B, 8H)
        g0_rec = comb[:, :G]                      # consumed by layer 0 at step t+1

        # layer 1
        g1 = comb[:, G:] + b1_b
        h1, c1 = gates_to_hc(g1, c1)

    # ---- final FC (num_classes == 1): lane-reduce instead of an N=1 MXU matmul
    logits = jnp.sum(h1 * wfc_ref[...], axis=-1, keepdims=True) + bfc_ref[...]  # (B,1)
    out_ref[...] = jnp.broadcast_to(jax.nn.sigmoid(logits), out_ref.shape)


def _permute_gate_cols(w):
    """Permute the last (4H) axis from PyTorch order [i,f,g,o] to [i,f,o,g]."""
    H = w.shape[-1] // 4
    return jnp.concatenate([w[..., b * H:(b + 1) * H] for b in _GATE_PERM_BLOCKS],
                           axis=-1)


def rnn_forward(x, params):
    """x: (B, T, D) batch-first float32, like the PyTorch module."""
    B, T, D = x.shape
    C = NUM_CLASSES
    wih0, whh0, b0, wih1, whh1, b1, wfc, bfc = params

    # time-major, flattened to (T*B, D), bf16 in the wrapper (halves the DMA)
    x_flat = jnp.transpose(x, (1, 0, 2)).reshape(T * B, D).astype(jnp.bfloat16)

    # gate-column permutation [i,f,g,o] -> [i,f,o,g] applied consistently
    wih0_p = _permute_gate_cols(wih0).astype(jnp.bfloat16)      # (D, 4H)
    whh0_p = _permute_gate_cols(whh0).astype(jnp.bfloat16)      # (H, 4H)
    wih1_p = _permute_gate_cols(wih1).astype(jnp.bfloat16)      # (H, 4H)
    whh1_p = _permute_gate_cols(whh1).astype(jnp.bfloat16)      # (H, 4H)
    b0_p = _permute_gate_cols(b0)                               # (1, 4H) f32
    b1_p = _permute_gate_cols(b1)                               # (1, 4H) f32

    # single constant RHS for the whole recurrence: [[Whh0 | Wih1], [0 | Whh1]]
    top = jnp.concatenate([whh0_p, wih1_p], axis=1)             # (H, 8H)
    bot = jnp.concatenate([jnp.zeros_like(whh1_p), whh1_p], axis=1)
    w_comb = jnp.concatenate([top, bot], axis=0)                # (2H, 8H) bf16

    out_padded = pl.pallas_call(
        _lstm_kernel,
        out_shape=jax.ShapeDtypeStruct((B, OUT_LANES), jnp.float32),
    )(x_flat, wih0_p, b0_p, w_comb, b1_p, wfc, bfc)
    return out_padded[:, :C]


def init_params(key):
    """Deterministic parameter init (uniform, like PyTorch's 1/sqrt(H) scheme).

    Stored pre-transposed for right-matmul, PyTorch gate order [i,f,g,o]:
      wih0: (D, 4H), whh0: (H, 4H), b0: (1, 4H)  [b_ih + b_hh combined]
      wih1: (H, 4H), whh1: (H, 4H), b1: (1, 4H)
      wfc : (1, H),  bfc : (1, 1)
    """
    D, H = INPUT_SIZE, HIDDEN_SIZE
    k = 1.0 / jnp.sqrt(jnp.float32(H))
    keys = jax.random.split(key, 8)
    u = lambda kk, shape: jax.random.uniform(kk, shape, jnp.float32, -k, k)
    wih0 = u(keys[0], (D, 4 * H))
    whh0 = u(keys[1], (H, 4 * H))
    b0 = u(keys[2], (1, 4 * H))
    wih1 = u(keys[3], (H, 4 * H))
    whh1 = u(keys[4], (H, 4 * H))
    b1 = u(keys[5], (1, 4 * H))
    wfc = u(keys[6], (1, H))
    bfc = u(keys[7], (1, 1))
    return (wih0, whh0, b0, wih1, whh1, b1, wfc, bfc)


def rnn_reference(x, params):
    """Pure-JAX f32 reference (lax.scan), PyTorch gate order, for correctness."""
    wih0, whh0, b0, wih1, whh1, b1, wfc, bfc = params
    B = x.shape[0]
    H = HIDDEN_SIZE

    def cell(x_in, h, c, wih, whh, b):
        gates = x_in @ wih + h @ whh + b
        i = jax.nn.sigmoid(gates[:, 0 * H:1 * H])
        f = jax.nn.sigmoid(gates[:, 1 * H:2 * H])
        g = jnp.tanh(gates[:, 2 * H:3 * H])
        o = jax.nn.sigmoid(gates[:, 3 * H:4 * H])
        c_new = f * c + i * g
        return o * jnp.tanh(c_new), c_new

    def step(carry, x_t):
        h0, c0, h1, c1 = carry
        h0, c0 = cell(x_t, h0, c0, wih0, whh0, b0)
        h1, c1 = cell(h0, h1, c1, wih1, whh1, b1)
        return (h0, c0, h1, c1), h1

    z = jnp.zeros((B, H), jnp.float32)
    (_, _, h1, _), _ = jax.lax.scan(step, (z, z, z, z),
                                    jnp.transpose(x, (1, 0, 2)))
    return jax.nn.sigmoid(h1 @ wfc.T + bfc)


if __name__ == "__main__":
    key = jax.random.PRNGKey(0)
    k_x, k_p = jax.random.split(key)
    x = jax.random.normal(k_x, (BATCH, SEQ, INPUT_SIZE), jnp.float32)
    params = init_params(k_p)

    out = jax.block_until_ready(rnn_forward(x, params))
    ref = jax.block_until_ready(rnn_reference(x, params))

    assert out.shape == (BATCH, NUM_CLASSES)
    # tolerance loosened vs. the f32 reference because matmul operands are bf16
    assert jnp.allclose(out, ref, atol=2e-2, rtol=2e-2), (out, ref)

    print("KERNEL_OK")
</pallas_src>

<mosaic_0001>
module attributes {stable_mosaic.version = 11 : i64} {
  func.func @_lstm_kernel(%arg0: memref<64x128xbf16, #tpu.memory_space<vmem>>, %arg1: memref<128x512xbf16, #tpu.memory_space<vmem>>, %arg2: memref<1x512xf32, #tpu.memory_space<vmem>>, %arg3: memref<256x1024xbf16, #tpu.memory_space<vmem>>, %arg4: memref<1x512xf32, #tpu.memory_space<vmem>>, %arg5: memref<1x128xf32, #tpu.memory_space<vmem>>, %arg6: memref<1x1xf32, #tpu.memory_space<vmem>>, %arg7: memref<8x128xf32, #tpu.memory_space<vmem>>) attributes {dimension_semantics = [], scalar_prefetch = 0 : i64, scratch_operands = 0 : i64, tpu.core_type = #tpu.core_type<tc>} {
    %c0 = arith.constant 0 : index
    %c0_0 = arith.constant 0 : index
    %0 = vector.load %arg0[%c0, %c0_0] : memref<64x128xbf16, #tpu.memory_space<vmem>>, vector<64x128xbf16>
    %c0_1 = arith.constant 0 : index
    %c0_2 = arith.constant 0 : index
    %1 = vector.load %arg1[%c0_1, %c0_2] : memref<128x512xbf16, #tpu.memory_space<vmem>>, vector<128x512xbf16>
    %cst = arith.constant dense<0.000000e+00> : vector<64x512xf32>
    %2 = tpu.matmul %0, %1, %cst {dimension_numbers = #tpu.dot_dimension_numbers<[1], [0], [0], [1], [0, 0, 1, 1], [], []>} : vector<64x128xbf16>, vector<128x512xbf16>, vector<64x512xf32> -> vector<64x512xf32>
    %c0_3 = arith.constant 0 : index
    %c0_4 = arith.constant 0 : index
    %3 = vector.load %arg2[%c0_3, %c0_4] : memref<1x512xf32, #tpu.memory_space<vmem>>, vector<1x512xf32>
    %4 = vector.broadcast %3 : vector<1x512xf32> to vector<64x512xf32>
    %5 = arith.addf %2, %4 : vector<64x512xf32>
    %c0_5 = arith.constant 0 : index
    %c0_6 = arith.constant 0 : index
    %6 = vector.load %arg3[%c0_5, %c0_6] : memref<256x1024xbf16, #tpu.memory_space<vmem>>, vector<256x1024xbf16>
    %c0_7 = arith.constant 0 : index
    %c0_8 = arith.constant 0 : index
    %7 = vector.load %arg4[%c0_7, %c0_8] : memref<1x512xf32, #tpu.memory_space<vmem>>, vector<1x512xf32>
    %8 = vector.shape_cast %7 : vector<1x512xf32> to vector<1x512xf32>
    %9 = vector.broadcast %8 : vector<1x512xf32> to vector<8x512xf32>
    %cst_9 = arith.constant 0.000000e+00 : f32
    %10 = vector.broadcast %cst_9 : f32 to vector<8x128xf32>
    %cst_10 = arith.constant 0.000000e+00 : f32
    %11 = vector.broadcast %cst_10 : f32 to vector<8x512xf32>
    %12 = vector.extract_strided_slice %5 {offsets = [0, 0], sizes = [8, 512], strides = [1, 1]} : vector<64x512xf32> to vector<8x512xf32>
    %13 = arith.addf %12, %11 : vector<8x512xf32>
    %14 = vector.extract_strided_slice %13 {offsets = [0, 0], sizes = [8, 384], strides = [1, 1]} : vector<8x512xf32> to vector<8x384xf32>
    %15 = arith.negf %14 : vector<8x384xf32>
    %16 = math.exp %15 : vector<8x384xf32>
    %cst_11 = arith.constant 1.000000e+00 : f32
    %17 = vector.broadcast %cst_11 : f32 to vector<8x384xf32>
    %18 = arith.addf %17, %16 : vector<8x384xf32>
    %19 = arith.divf %17, %18 : vector<8x384xf32>
    %20 = vector.extract_strided_slice %13 {offsets = [0, 384], sizes = [8, 128], strides = [1, 1]} : vector<8x512xf32> to vector<8x128xf32>
    %21 = math.tanh %20 : vector<8x128xf32>
    %22 = vector.extract_strided_slice %19 {offsets = [0, 0], sizes = [8, 128], strides = [1, 1]} : vector<8x384xf32> to vector<8x128xf32>
    %23 = vector.extract_strided_slice %19 {offsets = [0, 128], sizes = [8, 128], strides = [1, 1]} : vector<8x384xf32> to vector<8x128xf32>
    %24 = vector.extract_strided_slice %19 {offsets = [0, 256], sizes = [8, 128], strides = [1, 1]} : vector<8x384xf32> to vector<8x128xf32>
    %25 = arith.mulf %23, %10 : vector<8x128xf32>
    %26 = arith.mulf %22, %21 : vector<8x128xf32>
    %27 = arith.addf %25, %26 : vector<8x128xf32>
    %28 = math.tanh %27 : vector<8x128xf32>
    %29 = arith.mulf %24, %28 : vector<8x128xf32>
    %30 = arith.truncf %29 : vector<8x128xf32> to vector<8x128xbf16>
    %31 = arith.truncf %10 : vector<8x128xf32> to vector<8x128xbf16>
    %32 = tpu.concatenate %30, %31 in 1 : vector<8x128xbf16>, vector<8x128xbf16> -> vector<8x256xbf16>
    %cst_12 = arith.constant dense<0.000000e+00> : vector<8x1024xf32>
    %33 = tpu.matmul %32, %6, %cst_12 {dimension_numbers = #tpu.dot_dimension_numbers<[1], [0], [0], [1], [0, 0, 1, 1], [], []>} : vector<8x256xbf16>, vector<256x1024xbf16>, vector<8x1024xf32> -> vector<8x1024xf32>
    %34 = vector.extract_strided_slice %33 {offsets = [0, 0], sizes = [8, 512], strides = [1, 1]} : vector<8x1024xf32> to vector<8x512xf32>
    %35 = vector.extract_strided_slice %33 {offsets = [0, 512], sizes = [8, 512], strides = [1, 1]} : vector<8x1024xf32> to vector<8x512xf32>
    %36 = arith.addf %35, %9 : vector<8x512xf32>
    %37 = vector.extract_strided_slice %36 {offsets = [0, 0], sizes = [8, 384], strides = [1, 1]} : vector<8x512xf32> to vector<8x384xf32>
    %38 = arith.negf %37 : vector<8x384xf32>
    %39 = math.exp %38 : vector<8x384xf32>
    %cst_13 = arith.constant 1.000000e+00 : f32
    %40 = vector.broadcast %cst_13 : f32 to vector<8x384xf32>
    %41 = arith.addf %40, %39 : vector<8x384xf32>
    %42 = arith.divf %40, %41 : vector<8x384xf32>
    %43 = vector.extract_strided_slice %36 {offsets = [0, 384], sizes = [8, 128], strides = [1, 1]} : vector<8x512xf32> to vector<8x128xf32>
    %44 = math.tanh %43 : vector<8x128xf32>
    %45 = vector.extract_strided_slice %42 {offsets = [0, 0], sizes = [8, 128], strides = [1, 1]} : vector<8x384xf32> to vector<8x128xf32>
    %46 = vector.extract_strided_slice %42 {offsets = [0, 128], sizes = [8, 128], strides = [1, 1]} : vector<8x384xf32> to vector<8x128xf32>
    %47 = vector.extract_strided_slice %42 {offsets = [0, 256], sizes = [8, 128], strides = [1, 1]} : vector<8x384xf32> to vector<8x128xf32>
    %48 = arith.mulf %46, %10 : vector<8x128xf32>
    %49 = arith.mulf %45, %44 : vector<8x128xf32>
    %50 = arith.addf %48, %49 : vector<8x128xf32>
    %51 = math.tanh %50 : vector<8x128xf32>
    %52 = arith.mulf %47, %51 : vector<8x128xf32>
    %53 = vector.extract_strided_slice %5 {offsets = [8, 0], sizes = [8, 512], strides = [1, 1]} : vector<64x512xf32> to vector<8x512xf32>
    %54 = arith.addf %53, %34 : vector<8x512xf32>
    %55 = vector.extract_strided_slice %54 {offsets = [0, 0], sizes = [8, 384], strides = [1, 1]} : vector<8x512xf32> to vector<8x384xf32>
    %56 = arith.negf %55 : vector<8x384xf32>
    %57 = math.exp %56 : vector<8x384xf32>
    %cst_14 = arith.constant 1.000000e+00 : f32
    %58 = vector.broadcast %cst_14 : f32 to vector<8x384xf32>
    %59 = arith.addf %58, %57 : vector<8x384xf32>
    %60 = arith.divf %58, %59 : vector<8x384xf32>
    %61 = vector.extract_strided_slice %54 {offsets = [0, 384], sizes = [8, 128], strides = [1, 1]} : vector<8x512xf32> to vector<8x128xf32>
    %62 = math.tanh %61 : vector<8x128xf32>
    %63 = vector.extract_strided_slice %60 {offsets = [0, 0], sizes = [8, 128], strides = [1, 1]} : vector<8x384xf32> to vector<8x128xf32>
    %64 = vector.extract_strided_slice %60 {offsets = [0, 128], sizes = [8, 128], strides = [1, 1]} : vector<8x384xf32> to vector<8x128xf32>
    %65 = vector.extract_strided_slice %60 {offsets = [0, 256], sizes = [8, 128], strides = [1, 1]} : vector<8x384xf32> to vector<8x128xf32>
    %66 = arith.mulf %64, %27 : vector<8x128xf32>
    %67 = arith.mulf %63, %62 : vector<8x128xf32>
    %68 = arith.addf %66, %67 : vector<8x128xf32>
    %69 = math.tanh %68 : vector<8x128xf32>
    %70 = arith.mulf %65, %69 : vector<8x128xf32>
    %71 = arith.truncf %70 : vector<8x128xf32> to vector<8x128xbf16>
    %72 = arith.truncf %52 : vector<8x128xf32> to vector<8x128xbf16>
    %73 = tpu.concatenate %71, %72 in 1 : vector<8x128xbf16>, vector<8x128xbf16> -> vector<8x256xbf16>
    %cst_15 = arith.constant dense<0.000000e+00> : vector<8x1024xf32>
    %74 = tpu.matmul %73, %6, %cst_15 {dimension_numbers = #tpu.dot_dimension_numbers<[1], [0], [0], [1], [0, 0, 1, 1], [], []>} : vector<8x256xbf16>, vector<256x1024xbf16>, vector<8x1024xf32> -> vector<8x1024xf32>
    %75 = vector.extract_strided_slice %74 {offsets = [0, 0], sizes = [8, 512], strides = [1, 1]} : vector<8x1024xf32> to vector<8x512xf32>
    %76 = vector.extract_strided_slice %74 {offsets = [0, 512], sizes = [8, 512], strides = [1, 1]} : vector<8x1024xf32> to vector<8x512xf32>
    %77 = arith.addf %76, %9 : vector<8x512xf32>
    %78 = vector.extract_strided_slice %77 {offsets = [0, 0], sizes = [8, 384], strides = [1, 1]} : vector<8x512xf32> to vector<8x384xf32>
    %79 = arith.negf %78 : vector<8x384xf32>
    %80 = math.exp %79 : vector<8x384xf32>
    %cst_16 = arith.constant 1.000000e+00 : f32
    %81 = vector.broadcast %cst_16 : f32 to vector<8x384xf32>
    %82 = arith.addf %81, %80 : vector<8x384xf32>
    %83 = arith.divf %81, %82 : vector<8x384xf32>
    %84 = vector.extract_strided_slice %77 {offsets = [0, 384], sizes = [8, 128], strides = [1, 1]} : vector<8x512xf32> to vector<8x128xf32>
    %85 = math.tanh %84 : vector<8x128xf32>
    %86 = vector.extract_strided_slice %83 {offsets = [0, 0], sizes = [8, 128], strides = [1, 1]} : vector<8x384xf32> to vector<8x128xf32>
    %87 = vector.extract_strided_slice %83 {offsets = [0, 128], sizes = [8, 128], strides = [1, 1]} : vector<8x384xf32> to vector<8x128xf32>
    %88 = vector.extract_strided_slice %83 {offsets = [0, 256], sizes = [8, 128], strides = [1, 1]} : vector<8x384xf32> to vector<8x128xf32>
    %89 = arith.mulf %87, %50 : vector<8x128xf32>
    %90 = arith.mulf %86, %85 : vector<8x128xf32>
    %91 = arith.addf %89, %90 : vector<8x128xf32>
    %92 = math.tanh %91 : vector<8x128xf32>
    %93 = arith.mulf %88, %92 : vector<8x128xf32>
    %94 = vector.extract_strided_slice %5 {offsets = [16, 0], sizes = [8, 512], strides = [1, 1]} : vector<64x512xf32> to vector<8x512xf32>
    %95 = arith.addf %94, %75 : vector<8x512xf32>
    %96 = vector.extract_strided_slice %95 {offsets = [0, 0], sizes = [8, 384], strides = [1, 1]} : vector<8x512xf32> to vector<8x384xf32>
    %97 = arith.negf %96 : vector<8x384xf32>
    %98 = math.exp %97 : vector<8x384xf32>
    %cst_17 = arith.constant 1.000000e+00 : f32
    %99 = vector.broadcast %cst_17 : f32 to vector<8x384xf32>
    %100 = arith.addf %99, %98 : vector<8x384xf32>
    %101 = arith.divf %99, %100 : vector<8x384xf32>
    %102 = vector.extract_strided_slice %95 {offsets = [0, 384], sizes = [8, 128], strides = [1, 1]} : vector<8x512xf32> to vector<8x128xf32>
    %103 = math.tanh %102 : vector<8x128xf32>
    %104 = vector.extract_strided_slice %101 {offsets = [0, 0], sizes = [8, 128], strides = [1, 1]} : vector<8x384xf32> to vector<8x128xf32>
    %105 = vector.extract_strided_slice %101 {offsets = [0, 128], sizes = [8, 128], strides = [1, 1]} : vector<8x384xf32> to vector<8x128xf32>
    %106 = vector.extract_strided_slice %101 {offsets = [0, 256], sizes = [8, 128], strides = [1, 1]} : vector<8x384xf32> to vector<8x128xf32>
    %107 = arith.mulf %105, %68 : vector<8x128xf32>
    %108 = arith.mulf %104, %103 : vector<8x128xf32>
    %109 = arith.addf %107, %108 : vector<8x128xf32>
    %110 = math.tanh %109 : vector<8x128xf32>
    %111 = arith.mulf %106, %110 : vector<8x128xf32>
    %112 = arith.truncf %111 : vector<8x128xf32> to vector<8x128xbf16>
    %113 = arith.truncf %93 : vector<8x128xf32> to vector<8x128xbf16>
    %114 = tpu.concatenate %112, %113 in 1 : vector<8x128xbf16>, vector<8x128xbf16> -> vector<8x256xbf16>
    %cst_18 = arith.constant dense<0.000000e+00> : vector<8x1024xf32>
    %115 = tpu.matmul %114, %6, %cst_18 {dimension_numbers = #tpu.dot_dimension_numbers<[1], [0], [0], [1], [0, 0, 1, 1], [], []>} : vector<8x256xbf16>, vector<256x1024xbf16>, vector<8x1024xf32> -> vector<8x1024xf32>
    %116 = vector.extract_strided_slice %115 {offsets = [0, 0], sizes = [8, 512], strides = [1, 1]} : vector<8x1024xf32> to vector<8x512xf32>
    %117 = vector.extract_strided_slice %115 {offsets = [0, 512], sizes = [8, 512], strides = [1, 1]} : vector<8x1024xf32> to vector<8x512xf32>
    %118 = arith.addf %117, %9 : vector<8x512xf32>
    %119 = vector.extract_strided_slice %118 {offsets = [0, 0], sizes = [8, 384], strides = [1, 1]} : vector<8x512xf32> to vector<8x384xf32>
    %120 = arith.negf %119 : vector<8x384xf32>
    %121 = math.exp %120 : vector<8x384xf32>
    %cst_19 = arith.constant 1.000000e+00 : f32
    %122 = vector.broadcast %cst_19 : f32 to vector<8x384xf32>
    %123 = arith.addf %122, %121 : vector<8x384xf32>
    %124 = arith.divf %122, %123 : vector<8x384xf32>
    %125 = vector.extract_strided_slice %118 {offsets = [0, 384], sizes = [8, 128], strides = [1, 1]} : vector<8x512xf32> to vector<8x128xf32>
    %126 = math.tanh %125 : vector<8x128xf32>
    %127 = vector.extract_strided_slice %124 {offsets = [0, 0], sizes = [8, 128], strides = [1, 1]} : vector<8x384xf32> to vector<8x128xf32>
    %128 = vector.extract_strided_slice %124 {offsets = [0, 128], sizes = [8, 128], strides = [1, 1]} : vector<8x384xf32> to vector<8x128xf32>
    %129 = vector.extract_strided_slice %124 {offsets = [0, 256], sizes = [8, 128], strides = [1, 1]} : vector<8x384xf32> to vector<8x128xf32>
    %130 = arith.mulf %128, %91 : vector<8x128xf32>
    %131 = arith.mulf %127, %126 : vector<8x128xf32>
    %132 = arith.addf %130, %131 : vector<8x128xf32>
    %133 = math.tanh %132 : vector<8x128xf32>
    %134 = arith.mulf %129, %133 : vector<8x128xf32>
    %135 = vector.extract_strided_slice %5 {offsets = [24, 0], sizes = [8, 512], strides = [1, 1]} : vector<64x512xf32> to vector<8x512xf32>
    %136 = arith.addf %135, %116 : vector<8x512xf32>
    %137 = vector.extract_strided_slice %136 {offsets = [0, 0], sizes = [8, 384], strides = [1, 1]} : vector<8x512xf32> to vector<8x384xf32>
    %138 = arith.negf %137 : vector<8x384xf32>
    %139 = math.exp %138 : vector<8x384xf32>
    %cst_20 = arith.constant 1.000000e+00 : f32
    %140 = vector.broadcast %cst_20 : f32 to vector<8x384xf32>
    %141 = arith.addf %140, %139 : vector<8x384xf32>
    %142 = arith.divf %140, %141 : vector<8x384xf32>
    %143 = vector.extract_strided_slice %136 {offsets = [0, 384], sizes = [8, 128], strides = [1, 1]} : vector<8x512xf32> to vector<8x128xf32>
    %144 = math.tanh %143 : vector<8x128xf32>
    %145 = vector.extract_strided_slice %142 {offsets = [0, 0], sizes = [8, 128], strides = [1, 1]} : vector<8x384xf32> to vector<8x128xf32>
    %146 = vector.extract_strided_slice %142 {offsets = [0, 128], sizes = [8, 128], strides = [1, 1]} : vector<8x384xf32> to vector<8x128xf32>
    %147 = vector.extract_strided_slice %142 {offsets = [0, 256], sizes = [8, 128], strides = [1, 1]} : vector<8x384xf32> to vector<8x128xf32>
    %148 = arith.mulf %146, %109 : vector<8x128xf32>
    %149 = arith.mulf %145, %144 : vector<8x128xf32>
    %150 = arith.addf %148, %149 : vector<8x128xf32>
    %151 = math.tanh %150 : vector<8x128xf32>
    %152 = arith.mulf %147, %151 : vector<8x128xf32>
    %153 = arith.truncf %152 : vector<8x128xf32> to vector<8x128xbf16>
    %154 = arith.truncf %134 : vector<8x128xf32> to vector<8x128xbf16>
    %155 = tpu.concatenate %153, %154 in 1 : vector<8x128xbf16>, vector<8x128xbf16> -> vector<8x256xbf16>
    %cst_21 = arith.constant dense<0.000000e+00> : vector<8x1024xf32>
    %156 = tpu.matmul %155, %6, %cst_21 {dimension_numbers = #tpu.dot_dimension_numbers<[1], [0], [0], [1], [0, 0, 1, 1], [], []>} : vector<8x256xbf16>, vector<256x1024xbf16>, vector<8x1024xf32> -> vector<8x1024xf32>
    %157 = vector.extract_strided_slice %156 {offsets = [0, 0], sizes = [8, 512], strides = [1, 1]} : vector<8x1024xf32> to vector<8x512xf32>
    %158 = vector.extract_strided_slice %156 {offsets = [0, 512], sizes = [8, 512], strides = [1, 1]} : vector<8x1024xf32> to vector<8x512xf32>
    %159 = arith.addf %158, %9 : vector<8x512xf32>
    %160 = vector.extract_strided_slice %159 {offsets = [0, 0], sizes = [8, 384], strides = [1, 1]} : vector<8x512xf32> to vector<8x384xf32>
    %161 = arith.negf %160 : vector<8x384xf32>
    %162 = math.exp %161 : vector<8x384xf32>
    %cst_22 = arith.constant 1.000000e+00 : f32
    %163 = vector.broadcast %cst_22 : f32 to vector<8x384xf32>
    %164 = arith.addf %163, %162 : vector<8x384xf32>
    %165 = arith.divf %163, %164 : vector<8x384xf32>
    %166 = vector.extract_strided_slice %159 {offsets = [0, 384], sizes = [8, 128], strides = [1, 1]} : vector<8x512xf32> to vector<8x128xf32>
    %167 = math.tanh %166 : vector<8x128xf32>
    %168 = vector.extract_strided_slice %165 {offsets = [0, 0], sizes = [8, 128], strides = [1, 1]} : vector<8x384xf32> to vector<8x128xf32>
    %169 = vector.extract_strided_slice %165 {offsets = [0, 128], sizes = [8, 128], strides = [1, 1]} : vector<8x384xf32> to vector<8x128xf32>
    %170 = vector.extract_strided_slice %165 {offsets = [0, 256], sizes = [8, 128], strides = [1, 1]} : vector<8x384xf32> to vector<8x128xf32>
    %171 = arith.mulf %169, %132 : vector<8x128xf32>
    %172 = arith.mulf %168, %167 : vector<8x128xf32>
    %173 = arith.addf %171, %172 : vector<8x128xf32>
    %174 = math.tanh %173 : vector<8x128xf32>
    %175 = arith.mulf %170, %174 : vector<8x128xf32>
    %176 = vector.extract_strided_slice %5 {offsets = [32, 0], sizes = [8, 512], strides = [1, 1]} : vector<64x512xf32> to vector<8x512xf32>
    %177 = arith.addf %176, %157 : vector<8x512xf32>
    %178 = vector.extract_strided_slice %177 {offsets = [0, 0], sizes = [8, 384], strides = [1, 1]} : vector<8x512xf32> to vector<8x384xf32>
    %179 = arith.negf %178 : vector<8x384xf32>
    %180 = math.exp %179 : vector<8x384xf32>
    %cst_23 = arith.constant 1.000000e+00 : f32
    %181 = vector.broadcast %cst_23 : f32 to vector<8x384xf32>
    %182 = arith.addf %181, %180 : vector<8x384xf32>
    %183 = arith.divf %181, %182 : vector<8x384xf32>
    %184 = vector.extract_strided_slice %177 {offsets = [0, 384], sizes = [8, 128], strides = [1, 1]} : vector<8x512xf32> to vector<8x128xf32>
    %185 = math.tanh %184 : vector<8x128xf32>
    %186 = vector.extract_strided_slice %183 {offsets = [0, 0], sizes = [8, 128], strides = [1, 1]} : vector<8x384xf32> to vector<8x128xf32>
    %187 = vector.extract_strided_slice %183 {offsets = [0, 128], sizes = [8, 128], strides = [1, 1]} : vector<8x384xf32> to vector<8x128xf32>
    %188 = vector.extract_strided_slice %183 {offsets = [0, 256], sizes = [8, 128], strides = [1, 1]} : vector<8x384xf32> to vector<8x128xf32>
    %189 = arith.mulf %187, %150 : vector<8x128xf32>
    %190 = arith.mulf %186, %185 : vector<8x128xf32>
    %191 = arith.addf %189, %190 : vector<8x128xf32>
    %192 = math.tanh %191 : vector<8x128xf32>
    %193 = arith.mulf %188, %192 : vector<8x128xf32>
    %194 = arith.truncf %193 : vector<8x128xf32> to vector<8x128xbf16>
    %195 = arith.truncf %175 : vector<8x128xf32> to vector<8x128xbf16>
    %196 = tpu.concatenate %194, %195 in 1 : vector<8x128xbf16>, vector<8x128xbf16> -> vector<8x256xbf16>
    %cst_24 = arith.constant dense<0.000000e+00> : vector<8x1024xf32>
    %197 = tpu.matmul %196, %6, %cst_24 {dimension_numbers = #tpu.dot_dimension_numbers<[1], [0], [0], [1], [0, 0, 1, 1], [], []>} : vector<8x256xbf16>, vector<256x1024xbf16>, vector<8x1024xf32> -> vector<8x1024xf32>
    %198 = vector.extract_strided_slice %197 {offsets = [0, 0], sizes = [8, 512], strides = [1, 1]} : vector<8x1024xf32> to vector<8x512xf32>
    %199 = vector.extract_strided_slice %197 {offsets = [0, 512], sizes = [8, 512], strides = [1, 1]} : vector<8x1024xf32> to vector<8x512xf32>
    %200 = arith.addf %199, %9 : vector<8x512xf32>
    %201 = vector.extract_strided_slice %200 {offsets = [0, 0], sizes = [8, 384], strides = [1, 1]} : vector<8x512xf32> to vector<8x384xf32>
    %202 = arith.negf %201 : vector<8x384xf32>
    %203 = math.exp %202 : vector<8x384xf32>
    %cst_25 = arith.constant 1.000000e+00 : f32
    %204 = vector.broadcast %cst_25 : f32 to vector<8x384xf32>
    %205 = arith.addf %204, %203 : vector<8x384xf32>
    %206 = arith.divf %204, %205 : vector<8x384xf32>
    %207 = vector.extract_strided_slice %200 {offsets = [0, 384], sizes = [8, 128], strides = [1, 1]} : vector<8x512xf32> to vector<8x128xf32>
    %208 = math.tanh %207 : vector<8x128xf32>
    %209 = vector.extract_strided_slice %206 {offsets = [0, 0], sizes = [8, 128], strides = [1, 1]} : vector<8x384xf32> to vector<8x128xf32>
    %210 = vector.extract_strided_slice %206 {offsets = [0, 128], sizes = [8, 128], strides = [1, 1]} : vector<8x384xf32> to vector<8x128xf32>
    %211 = vector.extract_strided_slice %206 {offsets = [0, 256], sizes = [8, 128], strides = [1, 1]} : vector<8x384xf32> to vector<8x128xf32>
    %212 = arith.mulf %210, %173 : vector<8x128xf32>
    %213 = arith.mulf %209, %208 : vector<8x128xf32>
    %214 = arith.addf %212, %213 : vector<8x128xf32>
    %215 = math.tanh %214 : vector<8x128xf32>
    %216 = arith.mulf %211, %215 : vector<8x128xf32>
    %217 = vector.extract_strided_slice %5 {offsets = [40, 0], sizes = [8, 512], strides = [1, 1]} : vector<64x512xf32> to vector<8x512xf32>
    %218 = arith.addf %217, %198 : vector<8x512xf32>
    %219 = vector.extract_strided_slice %218 {offsets = [0, 0], sizes = [8, 384], strides = [1, 1]} : vector<8x512xf32> to vector<8x384xf32>
    %220 = arith.negf %219 : vector<8x384xf32>
    %221 = math.exp %220 : vector<8x384xf32>
    %cst_26 = arith.constant 1.000000e+00 : f32
    %222 = vector.broadcast %cst_26 : f32 to vector<8x384xf32>
    %223 = arith.addf %222, %221 : vector<8x384xf32>
    %224 = arith.divf %222, %223 : vector<8x384xf32>
    %225 = vector.extract_strided_slice %218 {offsets = [0, 384], sizes = [8, 128], strides = [1, 1]} : vector<8x512xf32> to vector<8x128xf32>
    %226 = math.tanh %225 : vector<8x128xf32>
    %227 = vector.extract_strided_slice %224 {offsets = [0, 0], sizes = [8, 128], strides = [1, 1]} : vector<8x384xf32> to vector<8x128xf32>
    %228 = vector.extract_strided_slice %224 {offsets = [0, 128], sizes = [8, 128], strides = [1, 1]} : vector<8x384xf32> to vector<8x128xf32>
    %229 = vector.extract_strided_slice %224 {offsets = [0, 256], sizes = [8, 128], strides = [1, 1]} : vector<8x384xf32> to vector<8x128xf32>
    %230 = arith.mulf %228, %191 : vector<8x128xf32>
    %231 = arith.mulf %227, %226 : vector<8x128xf32>
    %232 = arith.addf %230, %231 : vector<8x128xf32>
    %233 = math.tanh %232 : vector<8x128xf32>
    %234 = arith.mulf %229, %233 : vector<8x128xf32>
    %235 = arith.truncf %234 : vector<8x128xf32> to vector<8x128xbf16>
    %236 = arith.truncf %216 : vector<8x128xf32> to vector<8x128xbf16>
    %237 = tpu.concatenate %235, %236 in 1 : vector<8x128xbf16>, vector<8x128xbf16> -> vector<8x256xbf16>
    %cst_27 = arith.constant dense<0.000000e+00> : vector<8x1024xf32>
    %238 = tpu.matmul %237, %6, %cst_27 {dimension_numbers = #tpu.dot_dimension_numbers<[1], [0], [0], [1], [0, 0, 1, 1], [], []>} : vector<8x256xbf16>, vector<256x1024xbf16>, vector<8x1024xf32> -> vector<8x1024xf32>
    %239 = vector.extract_strided_slice %238 {offsets = [0, 0], sizes = [8, 512], strides = [1, 1]} : vector<8x1024xf32> to vector<8x512xf32>
    %240 = vector.extract_strided_slice %238 {offsets = [0, 512], sizes = [8, 512], strides = [1, 1]} : vector<8x1024xf32> to vector<8x512xf32>
    %241 = arith.addf %240, %9 : vector<8x512xf32>
    %242 = vector.extract_strided_slice %241 {offsets = [0, 0], sizes = [8, 384], strides = [1, 1]} : vector<8x512xf32> to vector<8x384xf32>
    %243 = arith.negf %242 : vector<8x384xf32>
    %244 = math.exp %243 : vector<8x384xf32>
    %cst_28 = arith.constant 1.000000e+00 : f32
    %245 = vector.broadcast %cst_28 : f32 to vector<8x384xf32>
    %246 = arith.addf %245, %244 : vector<8x384xf32>
    %247 = arith.divf %245, %246 : vector<8x384xf32>
    %248 = vector.extract_strided_slice %241 {offsets = [0, 384], sizes = [8, 128], strides = [1, 1]} : vector<8x512xf32> to vector<8x128xf32>
    %249 = math.tanh %248 : vector<8x128xf32>
    %250 = vector.extract_strided_slice %247 {offsets = [0, 0], sizes = [8, 128], strides = [1, 1]} : vector<8x384xf32> to vector<8x128xf32>
    %251 = vector.extract_strided_slice %247 {offsets = [0, 128], sizes = [8, 128], strides = [1, 1]} : vector<8x384xf32> to vector<8x128xf32>
    %252 = vector.extract_strided_slice %247 {offsets = [0, 256], sizes = [8, 128], strides = [1, 1]} : vector<8x384xf32> to vector<8x128xf32>
    %253 = arith.mulf %251, %214 : vector<8x128xf32>
    %254 = arith.mulf %250, %249 : vector<8x128xf32>
    %255 = arith.addf %253, %254 : vector<8x128xf32>
    %256 = math.tanh %255 : vector<8x128xf32>
    %257 = arith.mulf %252, %256 : vector<8x128xf32>
    %258 = vector.extract_strided_slice %5 {offsets = [48, 0], sizes = [8, 512], strides = [1, 1]} : vector<64x512xf32> to vector<8x512xf32>
    %259 = arith.addf %258, %239 : vector<8x512xf32>
    %260 = vector.extract_strided_slice %259 {offsets = [0, 0], sizes = [8, 384], strides = [1, 1]} : vector<8x512xf32> to vector<8x384xf32>
    %261 = arith.negf %260 : vector<8x384xf32>
    %262 = math.exp %261 : vector<8x384xf32>
    %cst_29 = arith.constant 1.000000e+00 : f32
    %263 = vector.broadcast %cst_29 : f32 to vector<8x384xf32>
    %264 = arith.addf %263, %262 : vector<8x384xf32>
    %265 = arith.divf %263, %264 : vector<8x384xf32>
    %266 = vector.extract_strided_slice %259 {offsets = [0, 384], sizes = [8, 128], strides = [1, 1]} : vector<8x512xf32> to vector<8x128xf32>
    %267 = math.tanh %266 : vector<8x128xf32>
    %268 = vector.extract_strided_slice %265 {offsets = [0, 0], sizes = [8, 128], strides = [1, 1]} : vector<8x384xf32> to vector<8x128xf32>
    %269 = vector.extract_strided_slice %265 {offsets = [0, 128], sizes = [8, 128], strides = [1, 1]} : vector<8x384xf32> to vector<8x128xf32>
    %270 = vector.extract_strided_slice %265 {offsets = [0, 256], sizes = [8, 128], strides = [1, 1]} : vector<8x384xf32> to vector<8x128xf32>
    %271 = arith.mulf %269, %232 : vector<8x128xf32>
    %272 = arith.mulf %268, %267 : vector<8x128xf32>
    %273 = arith.addf %271, %272 : vector<8x128xf32>
    %274 = math.tanh %273 : vector<8x128xf32>
    %275 = arith.mulf %270, %274 : vector<8x128xf32>
    %276 = arith.truncf %275 : vector<8x128xf32> to vector<8x128xbf16>
    %277 = arith.truncf %257 : vector<8x128xf32> to vector<8x128xbf16>
    %278 = tpu.concatenate %276, %277 in 1 : vector<8x128xbf16>, vector<8x128xbf16> -> vector<8x256xbf16>
    %cst_30 = arith.constant dense<0.000000e+00> : vector<8x1024xf32>
    %279 = tpu.matmul %278, %6, %cst_30 {dimension_numbers = #tpu.dot_dimension_numbers<[1], [0], [0], [1], [0, 0, 1, 1], [], []>} : vector<8x256xbf16>, vector<256x1024xbf16>, vector<8x1024xf32> -> vector<8x1024xf32>
    %280 = vector.extract_strided_slice %279 {offsets = [0, 0], sizes = [8, 512], strides = [1, 1]} : vector<8x1024xf32> to vector<8x512xf32>
    %281 = vector.extract_strided_slice %279 {offsets = [0, 512], sizes = [8, 512], strides = [1, 1]} : vector<8x1024xf32> to vector<8x512xf32>
    %282 = arith.addf %281, %9 : vector<8x512xf32>
    %283 = vector.extract_strided_slice %282 {offsets = [0, 0], sizes = [8, 384], strides = [1, 1]} : vector<8x512xf32> to vector<8x384xf32>
    %284 = arith.negf %283 : vector<8x384xf32>
    %285 = math.exp %284 : vector<8x384xf32>
    %cst_31 = arith.constant 1.000000e+00 : f32
    %286 = vector.broadcast %cst_31 : f32 to vector<8x384xf32>
    %287 = arith.addf %286, %285 : vector<8x384xf32>
    %288 = arith.divf %286, %287 : vector<8x384xf32>
    %289 = vector.extract_strided_slice %282 {offsets = [0, 384], sizes = [8, 128], strides = [1, 1]} : vector<8x512xf32> to vector<8x128xf32>
    %290 = math.tanh %289 : vector<8x128xf32>
    %291 = vector.extract_strided_slice %288 {offsets = [0, 0], sizes = [8, 128], strides = [1, 1]} : vector<8x384xf32> to vector<8x128xf32>
    %292 = vector.extract_strided_slice %288 {offsets = [0, 128], sizes = [8, 128], strides = [1, 1]} : vector<8x384xf32> to vector<8x128xf32>
    %293 = vector.extract_strided_slice %288 {offsets = [0, 256], sizes = [8, 128], strides = [1, 1]} : vector<8x384xf32> to vector<8x128xf32>
    %294 = arith.mulf %292, %255 : vector<8x128xf32>
    %295 = arith.mulf %291, %290 : vector<8x128xf32>
    %296 = arith.addf %294, %295 : vector<8x128xf32>
    %297 = math.tanh %296 : vector<8x128xf32>
    %298 = arith.mulf %293, %297 : vector<8x128xf32>
    %299 = vector.extract_strided_slice %5 {offsets = [56, 0], sizes = [8, 512], strides = [1, 1]} : vector<64x512xf32> to vector<8x512xf32>
    %300 = arith.addf %299, %280 : vector<8x512xf32>
    %301 = vector.extract_strided_slice %300 {offsets = [0, 0], sizes = [8, 384], strides = [1, 1]} : vector<8x512xf32> to vector<8x384xf32>
    %302 = arith.negf %301 : vector<8x384xf32>
    %303 = math.exp %302 : vector<8x384xf32>
    %cst_32 = arith.constant 1.000000e+00 : f32
    %304 = vector.broadcast %cst_32 : f32 to vector<8x384xf32>
    %305 = arith.addf %304, %303 : vector<8x384xf32>
    %306 = arith.divf %304, %305 : vector<8x384xf32>
    %307 = vector.extract_strided_slice %300 {offsets = [0, 384], sizes = [8, 128], strides = [1, 1]} : vector<8x512xf32> to vector<8x128xf32>
    %308 = math.tanh %307 : vector<8x128xf32>
    %309 = vector.extract_strided_slice %306 {offsets = [0, 0], sizes = [8, 128], strides = [1, 1]} : vector<8x384xf32> to vector<8x128xf32>
    %310 = vector.extract_strided_slice %306 {offsets = [0, 128], sizes = [8, 128], strides = [1, 1]} : vector<8x384xf32> to vector<8x128xf32>
    %311 = vector.extract_strided_slice %306 {offsets = [0, 256], sizes = [8, 128], strides = [1, 1]} : vector<8x384xf32> to vector<8x128xf32>
    %312 = arith.mulf %310, %273 : vector<8x128xf32>
    %313 = arith.mulf %309, %308 : vector<8x128xf32>
    %314 = arith.addf %312, %313 : vector<8x128xf32>
    %315 = math.tanh %314 : vector<8x128xf32>
    %316 = arith.mulf %311, %315 : vector<8x128xf32>
    %317 = arith.truncf %316 : vector<8x128xf32> to vector<8x128xbf16>
    %318 = arith.truncf %298 : vector<8x128xf32> to vector<8x128xbf16>
    %319 = tpu.concatenate %317, %318 in 1 : vector<8x128xbf16>, vector<8x128xbf16> -> vector<8x256xbf16>
    %cst_33 = arith.constant dense<0.000000e+00> : vector<8x1024xf32>
    %320 = tpu.matmul %319, %6, %cst_33 {dimension_numbers = #tpu.dot_dimension_numbers<[1], [0], [0], [1], [0, 0, 1, 1], [], []>} : vector<8x256xbf16>, vector<256x1024xbf16>, vector<8x1024xf32> -> vector<8x1024xf32>
    %321 = vector.extract_strided_slice %320 {offsets = [0, 512], sizes = [8, 512], strides = [1, 1]} : vector<8x1024xf32> to vector<8x512xf32>
    %322 = arith.addf %321, %9 : vector<8x512xf32>
    %323 = vector.extract_strided_slice %322 {offsets = [0, 0], sizes = [8, 384], strides = [1, 1]} : vector<8x512xf32> to vector<8x384xf32>
    %324 = arith.negf %323 : vector<8x384xf32>
    %325 = math.exp %324 : vector<8x384xf32>
    %cst_34 = arith.constant 1.000000e+00 : f32
    %326 = vector.broadcast %cst_34 : f32 to vector<8x384xf32>
    %327 = arith.addf %326, %325 : vector<8x384xf32>
    %328 = arith.divf %326, %327 : vector<8x384xf32>
    %329 = vector.extract_strided_slice %322 {offsets = [0, 384], sizes = [8, 128], strides = [1, 1]} : vector<8x512xf32> to vector<8x128xf32>
    %330 = math.tanh %329 : vector<8x128xf32>
    %331 = vector.extract_strided_slice %328 {offsets = [0, 0], sizes = [8, 128], strides = [1, 1]} : vector<8x384xf32> to vector<8x128xf32>
    %332 = vector.extract_strided_slice %328 {offsets = [0, 128], sizes = [8, 128], strides = [1, 1]} : vector<8x384xf32> to vector<8x128xf32>
    %333 = vector.extract_strided_slice %328 {offsets = [0, 256], sizes = [8, 128], strides = [1, 1]} : vector<8x384xf32> to vector<8x128xf32>
    %334 = arith.mulf %332, %296 : vector<8x128xf32>
    %335 = arith.mulf %331, %330 : vector<8x128xf32>
    %336 = arith.addf %334, %335 : vector<8x128xf32>
    %337 = math.tanh %336 : vector<8x128xf32>
    %338 = arith.mulf %333, %337 : vector<8x128xf32>
    %c0_35 = arith.constant 0 : index
    %c0_36 = arith.constant 0 : index
    %339 = vector.load %arg5[%c0_35, %c0_36] : memref<1x128xf32, #tpu.memory_space<vmem>>, vector<1x128xf32>
    %340 = vector.broadcast %339 : vector<1x128xf32> to vector<8x128xf32>
    %341 = arith.mulf %338, %340 : vector<8x128xf32>
    %cst_37 = arith.constant dense<0.000000e+00> : vector<8xf32>
    %342 = vector.multi_reduction <add>, %341, %cst_37 [1] : vector<8x128xf32> to vector<8xf32>
    %343 = vector.shape_cast %342 : vector<8xf32> to vector<8x1xf32>
    %c0_38 = arith.constant 0 : index
    %c0_39 = arith.constant 0 : index
    %344 = vector.load %arg6[%c0_38, %c0_39] : memref<1x1xf32, #tpu.memory_space<vmem>>, vector<1x1xf32>
    %345 = vector.broadcast %344 : vector<1x1xf32> to vector<8x1xf32>
    %346 = arith.addf %343, %345 : vector<8x1xf32>
    %347 = arith.negf %346 : vector<8x1xf32>
    %348 = math.exp %347 : vector<8x1xf32>
    %cst_40 = arith.constant 1.000000e+00 : f32
    %349 = vector.broadcast %cst_40 : f32 to vector<8x1xf32>
    %350 = arith.addf %349, %348 : vector<8x1xf32>
    %351 = arith.divf %349, %350 : vector<8x1xf32>
    %352 = vector.shape_cast %351 : vector<8x1xf32> to vector<8x1xf32>
    %353 = vector.broadcast %352 : vector<8x1xf32> to vector<8x128xf32>
    %c0_41 = arith.constant 0 : index
    %c0_42 = arith.constant 0 : index
    %354 = vector.load %arg7[%c0_41, %c0_42] : memref<8x128xf32, #tpu.memory_space<vmem>>, vector<8x128xf32>
    tpu.vector_store %arg7[%c0_41, %c0_42], %353 {strides = array<i32>} : memref<8x128xf32, #tpu.memory_space<vmem>>, vector<8x128xf32>,
    return
  }
}

</mosaic_0001>

<bundles_post_ra>
// kernel: tpu_custom_call.1
= control target key start
LH: loop header
LB: loop body
LE: loop exit
PB: predicated region body
PF: predicated region fallthrough
CT: control target
= control target key end

     0   :  { %s5189_s0 = inlined_call_operand.hbm [shape: bf16[64,128], index: 0, kind: input, shape index: {}]   ;;  %s5190_s1 = inlined_call_operand.hbm [shape: bf16[128,512], index: 1, kind: input, shape index: {}]   ;;  %s5191_s2 = inlined_call_operand.vmem [shape: f32[1,512], index: 2, kind: input, shape index: {}]   ;;  %s5192_s3 = inlined_call_operand.hbm [shape: bf16[256,1024], index: 3, kind: input, shape index: {}]   ;;  %s5193_s4 = inlined_call_operand.vmem [shape: f32[1,512], index: 4, kind: input, shape index: {}]   ;;  %s5194_s5 = inlined_call_operand.vmem [shape: f32[1,128], index: 5, kind: input, shape index: {}]   ;;  %s5195_s6 = inlined_call_operand.<no memory space> [shape: f32[1,1], index: 6, kind: input, shape index: {}]   ;;  %s5196_s7 = inlined_call_operand.hbm [shape: f32[8,128], index: 7, kind: output, shape index: {}]  }
   0x1   :  { %v12_v0 = vstv %s5195_s6 }
   0x2   :  { %13 = vst [vmem:[#allocation2] sm:$0x1] %v12_v0 }
   0x3   :  { %14 = vsyncpa [#allocation4], 0 }
   0x4   :  { %15 = vsyncpa [#allocation7], 0 }
   0x5   :  { %16 = vsyncpa [#allocation5], 0  ;;  %s3617_s26 = smov [#allocation6]  }
   0x6   :  { %s34_s27 = sshll.u32 %s3617_s26, 4  ;;  %s35_s27 = int_to_ptr.vmem [resolvable:$true] %s34_s27 }
   0x7   :  { %s3539_s28 = scalar_lea.vmem %s35_s27, 4096  ;;  %p3544_p1 = scmp.lt.s32.totalorder %s35_s27, %s35_s27 }
   0x8   :  { %p3540_p0 = scmp.ne.s32.totalorder %s35_s27, %s3539_s28  ;;  %p3545_p2 = scmp.lt.s32.totalorder %s3539_s28, %s3539_s28 }
   0xa   :  { %p3546_p3 = por %p3545_p2, %p3544_p1 }
   0xc   :  { %p3547_p4 = pnand %p3546_p3, %p3540_p0 }
   0xe   :  { %3550 = shalt.err (!%p3547_p4)
}
   0xf   :  { %s3618_s29 = smov 256   ;;  %s3619_s30 = smov 16  }
  0x10   :  { %40 = dma.hbm_to_vmem [thread:$0]  %s5190_s1, 4096, %s35_s27, [#allocation7], %s3618_s29, %s3618_s29, %s3619_s30  }
  0x11   :  { %s3620_s6 = smov [#allocation3]  }
  0x12   :  { %s22_s10 = sshll.u32 %s3620_s6, 4  ;;  %s23_s10 = int_to_ptr.vmem [resolvable:$true] %s22_s10 }
  0x13   :  { %s3559_s11 = scalar_lea.vmem %s23_s10, 512  ;;  %p3564_p6 = scmp.lt.s32.totalorder %s23_s10, %s23_s10 }
  0x14   :  { %p3560_p5 = scmp.ne.s32.totalorder %s23_s10, %s3559_s11  ;;  %p3565_p7 = scmp.lt.s32.totalorder %s3559_s11, %s3559_s11 }
  0x16   :  { %p3566_p8 = por %p3565_p7, %p3564_p6 }
  0x18   :  { %p3567_p9 = pnand %p3566_p8, %p3560_p5 }
  0x1a   :  { %3570 = shalt.err (!%p3567_p9)
}
  0x1b   :  { %s3621_s12 = smov 64   ;;  %s3622_s13 = smov 4  }
  0x1c   :  { %28 = dma.hbm_to_vmem [thread:$0]  %s5189_s0, 512, %s23_s10, [#allocation4], %s3621_s12, %s3621_s12, %s3622_s13  }
  0x1d   :  { %s3623_s16 = smov [#allocation8]  }
  0x1e   :  { %s48_s17 = sshll.u32 %s3623_s16, 4  ;;  %s49_s17 = int_to_ptr.vmem [resolvable:$true] %s48_s17 }
  0x1f   :  { %s3579_s1 = scalar_lea.vmem %s49_s17, 16384  ;;  %p3584_p11 = scmp.lt.s32.totalorder %s49_s17, %s49_s17 }
  0x20   :  { %p3580_p10 = scmp.ne.s32.totalorder %s49_s17, %s3579_s1  ;;  %p3585_p12 = scmp.lt.s32.totalorder %s3579_s1, %s3579_s1 }
  0x22   :  { %p3586_p13 = por %p3585_p12, %p3584_p11 }
  0x24   :  { %p3587_p0 = pnand %p3586_p13, %p3580_p10 }
  0x26   :  { %3590 = shalt.err (!%p3587_p0)
}
  0x27   :  { %s3624_s18 = smov 512   ;;  %s3625_s19 = smov 32  }
  0x28   :  { %54 = dma.hbm_to_vmem [thread:$0]  %s5192_s3, 16384, %s49_s17, [#allocation7], %s3624_s18, %s3624_s18, %s3625_s19  }
  0x29   :  { %3611 = dma.done.wait [#allocation4], 512  }
  0x2a   :  { %3612 = vsyncadd [#allocation4], 4294966784 }
  0x2b   :  { %3613 = dma.done.wait [#allocation7], 20480  }
  0x2c   :  { %3614 = vsyncadd [#allocation7], 4294946816  ;;  %v5197_v1 = vmov 0   ;;  %v3219_v2 = vld [vmem:[#allocation6 + $0xe4] ss:$16 sps:$4 sm:$0xff]   ;;  %v520_v39 = vld [vmem:[#allocation8 + $0x1c8] sm:$0xff] }
  0x2d   :  { %349 = vmatprep.mubr.bf16.mxu0 %v5197_v1  ;;  %422 = vmatprep.mubr.bf16.mxu1 %v5197_v1  ;;  %v3221_v3 = vld [vmem:[#allocation6 + $0xe0] ss:$16 sps:$4 sm:$0xff]   ;;  %v3222_v4 = vld [vmem:[#allocation6 + $0xc4] ss:$16 sps:$4 sm:$0xff]   ;;  %v3230_v7 = vld [vmem:[#allocation6 + $0xec] ss:$16 sps:$4 sm:$0xff]  }
  0x2e   :  { %3218 = vset.pattern.permute.xlu0 %v5197_v1  ;;  %317 = vmatprep.subr.bf16.mxu0 %v3219_v2  ;;  %v3224_v5 = vld [vmem:[#allocation6 + $0xc0] ss:$16 sps:$4 sm:$0xff]   ;;  %v3225_v6 = vld [vmem:[#allocation6 + $0xa4] ss:$16 sps:$4 sm:$0xff]   ;;  %v3233_v8 = vld [vmem:[#allocation6 + $0xe8] ss:$16 sps:$4 sm:$0xff]  }
  0x2f   :  { %318 = vmatpush1.bf16.msra.mxu0 %v3221_v3  ;;  %v3227_v9 = vld [vmem:[#allocation6 + $0xa0] ss:$16 sps:$4 sm:$0xff]   ;;  %390 = vmatprep.subr.bf16.mxu1 %v3230_v7  ;;  %v3228_v10 = vld [vmem:[#allocation6 + $0x84] ss:$16 sps:$4 sm:$0xff]   ;;  %v3236_v11 = vld [vmem:[#allocation6 + $0xcc] ss:$16 sps:$4 sm:$0xff]  }
  0x30   :  { %319 = vmatprep.subr.bf16.mxu0 %v3222_v4  ;;  %391 = vmatpush1.bf16.msra.mxu1 %v3233_v8  ;;  %v3239_v12 = vld [vmem:[#allocation6 + $0xc8] ss:$16 sps:$4 sm:$0xff]   ;;  %v3232_v13 = vld [vmem:[#allocation6 + $0x80] ss:$16 sps:$4 sm:$0xff]   ;;  %v3234_v14 = vld [vmem:[#allocation6 + $0x64] ss:$16 sps:$4 sm:$0xff]  }
  0x31   :  { %392 = vmatprep.subr.bf16.mxu1 %v3236_v11  ;;  %v3242_v15 = vld [vmem:[#allocation6 + $0xac] ss:$16 sps:$4 sm:$0xff]   ;;  %v3245_v16 = vld [vmem:[#allocation6 + $0xa8] ss:$16 sps:$4 sm:$0xff]   ;;  %v3238_v18 = vld [vmem:[#allocation6 + $0x60] ss:$16 sps:$4 sm:$0xff]  }
  0x32   :  { %v3248_v17 = vld [vmem:[#allocation6 + $0x8c] ss:$16 sps:$4 sm:$0xff]   ;;  %v3240_v19 = vld [vmem:[#allocation6 + $0x44] ss:$16 sps:$4 sm:$0xff]   ;;  %v3251_v20 = vld [vmem:[#allocation6 + $0x88] ss:$16 sps:$4 sm:$0xff]  }
  0x33   :  { %320 = vmatpush1.bf16.msra.mxu0 %v3224_v5  ;;  %v3254_v21 = vld [vmem:[#allocation6 + $0x6c] ss:$16 sps:$4 sm:$0xff]   ;;  %v3244_v22 = vld [vmem:[#allocation6 + $0x40] ss:$16 sps:$4 sm:$0xff]   ;;  %v3246_v23 = vld [vmem:[#allocation6 + $0x24] ss:$16 sps:$4 sm:$0xff]  }
  0x34   :  { %321 = vmatprep.subr.bf16.mxu0 %v3225_v6  ;;  %393 = vmatpush1.bf16.msra.mxu1 %v3239_v12  ;;  %v3257_v24 = vld [vmem:[#allocation6 + $0x68] ss:$16 sps:$4 sm:$0xff]   ;;  %v3259_v25 = vld [vmem:[#allocation6 + $0x4c] ss:$16 sps:$4 sm:$0xff]   ;;  %v3250_v26 = vld [vmem:[#allocation6 + $0x20] ss:$16 sps:$4 sm:$0xff]  }
  0x35   :  { %394 = vmatprep.subr.bf16.mxu1 %v3242_v15  ;;  %v3252_v27 = vld [vmem:[#allocation6 + $0x4] ss:$16 sps:$4 sm:$0xff]   ;;  %v3261_v28 = vld [vmem:[#allocation6 + $0x48] ss:$16 sps:$4 sm:$0xff]   ;;  %v3262_v29 = vld [vmem:[#allocation6 + $0x2c] ss:$16 sps:$4 sm:$0xff]  }
  0x36   :  { %v519_v30 = vld [vmem:[#allocation8 + $0x1c0] sm:$0xff]  ;;  %v3264_v33 = vld [vmem:[#allocation6 + $0x28] ss:$16 sps:$4 sm:$0xff]   ;;  %v3265_v35 = vld [vmem:[#allocation6 + $0xc] ss:$16 sps:$4 sm:$0xff]   ;;  %s3627_s24 = smov [#allocation9]  }
  0x37   :  { %322 = vmatpush1.bf16.msra.mxu0 %v3227_v9  ;;  %v523_v31 = vld [vmem:[#allocation8 + $0x1e0] sm:$0xff]  ;;  %v524_v40 = vld [vmem:[#allocation8 + $0x1e8] sm:$0xff]  ;;  %s2982_s25 = sshll.u32 %s3627_s24, 4  ;;  %s2983_s25 = int_to_ptr.vmem [resolvable:$true] %s2982_s25 }
  0x38   :  { %323 = vmatprep.subr.bf16.mxu0 %v3228_v10  ;;  %395 = vmatpush1.bf16.msra.mxu1 %v3245_v16  ;;  %v3256_v32 = vld [vmem:[#allocation6] ss:$16 sps:$4 sm:$0xff]   ;;  %v3683_v34 = vcombine.high %v519_v30, %v523_v31  ;;  %v3685_v41 = vcombine.low %v519_v30, %v523_v31  ;;  %v3267_v42 = vld [vmem:[#allocation6 + $0x8] ss:$16 sps:$4 sm:$0xff]   ;;  %v3690_v44 = vcombine.high %v520_v39, %v524_v40  ;;  %s3591_s26 = scalar_lea.vmem %s2983_s25, 128  ;;  %p3596_p2 = scmp.lt.s32.totalorder %s2983_s25, %s2983_s25 }
  0x39   :  { %396 = vmatprep.subr.bf16.mxu1 %v3248_v17  ;;  %v511_v36 = vld [vmem:[#allocation8 + $0x180] sm:$0xff]  ;;  %v512_v45 = vld [vmem:[#allocation8 + $0x188] sm:$0xff]  ;;  %v3696_v48 = vcombine.low %v520_v39, %v524_v40  ;;  %p3592_p1 = scmp.ne.s32.totalorder %s2983_s25, %s3591_s26  ;;  %p3597_p3 = scmp.lt.s32.totalorder %s3591_s26, %s3591_s26 }
  0x3a   :  { %5496 = vst [vmem:[#allocation13_spill] sm:$0xff] %v3683_v34  ;;  %v515_v37 = vld [vmem:[#allocation8 + $0x1a0] sm:$0xff]  ;;  %5497 = vst [vmem:[#allocation14_spill] sm:$0xff] %v3685_v41  ;;  %v516_v46 = vld [vmem:[#allocation8 + $0x1a8] sm:$0xff] }
  0x3b   :  { %324 = vmatpush1.bf16.msra.mxu0 %v3232_v13  ;;  %v3258_v38 = vld [vmem:[#allocation3] sm:$0xff]   ;;  %v3688_v43 = vcombine.high %v511_v36, %v515_v37  ;;  %5499 = vst [vmem:[#allocation16_spill] sm:$0xff] %v3690_v44  ;;  %v3693_v47 = vcombine.low %v511_v36, %v515_v37  ;;  %5501 = vst [vmem:[#allocation18_spill] sm:$0xff] %v3696_v48  ;;  %v3700_v49 = vcombine.high %v512_v45, %v516_v46  ;;  %v504_v53 = vld [vmem:[#allocation8 + $0x148] sm:$0xff]  ;;  %p3598_p4 = por %p3597_p3, %p3596_p2 }
  0x3c   :  { %325 = vmatprep.subr.bf16.mxu0 %v3234_v14  ;;  %397 = vmatpush1.bf16.msra.mxu1 %v3251_v20  ;;  %v3704_v50 = vcombine.low %v512_v45, %v516_v46  ;;  %v503_v51 = vld [vmem:[#allocation8 + $0x140] sm:$0xff]  ;;  %v508_v55 = vld [vmem:[#allocation8 + $0x168] sm:$0xff] }
  0x3d   :  { %398 = vmatprep.subr.bf16.mxu1 %v3254_v21  ;;  %5498 = vst [vmem:[#allocation15_spill] sm:$0xff] %v3688_v43  ;;  %5500 = vst [vmem:[#allocation17_spill] sm:$0xff] %v3693_v47  ;;  %v507_v52 = vld [vmem:[#allocation8 + $0x160] sm:$0xff]  ;;  %v3711_v56 = vcombine.high %v504_v53, %v508_v55  ;;  %v3715_v58 = vcombine.low %v504_v53, %v508_v55  ;;  %v496_v61 = vld [vmem:[#allocation8 + $0x108] sm:$0xff]  ;;  %p3599_p5 = pnand %p3598_p4, %p3592_p1 }
  0x3e   :  { %5502 = vst [vmem:[#allocation19_spill] sm:$0xff] %v3700_v49  ;;  %5503 = vst [vmem:[#allocation20_spill] sm:$0xff] %v3704_v50  ;;  %v3709_v54 = vcombine.high %v503_v51, %v507_v52  ;;  %v3713_v57 = vcombine.low %v503_v51, %v507_v52  ;;  %v495_v59 = vld [vmem:[#allocation8 + $0x100] sm:$0xff]  ;;  %v500_v63 = vld [vmem:[#allocation8 + $0x128] sm:$0xff] }
  0x3f   :  { %326 = vmatpush1.bf16.msra.mxu0 %v3238_v18  ;;  %5505 = vst [vmem:[#allocation22_spill] sm:$0xff] %v3711_v56  ;;  %5507 = vst [vmem:[#allocation24_spill] sm:$0xff] %v3715_v58  ;;  %v499_v60 = vld [vmem:[#allocation8 + $0x120] sm:$0xff]  ;;  %v3723_v0 = vcombine.high %v496_v61, %v500_v63  ;;  %v3727_v3 = vcombine.low %v496_v61, %v500_v63  ;;  %v488_v6 = vld [vmem:[#allocation8 + $0xc8] sm:$0xff] }
  0x40   :  { %327 = vmatprep.subr.bf16.mxu0 %v3240_v19  ;;  %399 = vmatpush1.bf16.msra.mxu1 %v3257_v24  ;;  %5504 = vst [vmem:[#allocation21_spill] sm:$0xff] %v3709_v54  ;;  %5506 = vst [vmem:[#allocation23_spill] sm:$0xff] %v3713_v57  ;;  %v3721_v62 = vcombine.high %v495_v59, %v499_v60  ;;  %v3725_v2 = vcombine.low %v495_v59, %v499_v60  ;;  %v487_v4 = vld [vmem:[#allocation8 + $0xc0] sm:$0xff]  ;;  %v492_v8 = vld [vmem:[#allocation8 + $0xe8] sm:$0xff] }
  0x41   :  { %400 = vmatprep.subr.bf16.mxu1 %v3259_v25  ;;  %5509 = vst [vmem:[#allocation26_spill] sm:$0xff] %v3723_v0  ;;  %5511 = vst [vmem:[#allocation28_spill] sm:$0xff] %v3727_v3  ;;  %v491_v5 = vld [vmem:[#allocation8 + $0xe0] sm:$0xff]  ;;  %v3735_v9 = vcombine.high %v488_v6, %v492_v8  ;;  %v3739_v11 = vcombine.low %v488_v6, %v492_v8  ;;  %v480_v14 = vld [vmem:[#allocation8 + $0x88] sm:$0xff] }
  0x42   :  { %5508 = vst [vmem:[#allocation25_spill] sm:$0xff] %v3721_v62  ;;  %5510 = vst [vmem:[#allocation27_spill] sm:$0xff] %v3725_v2  ;;  %v3733_v7 = vcombine.high %v487_v4, %v491_v5  ;;  %v3737_v10 = vcombine.low %v487_v4, %v491_v5  ;;  %v479_v12 = vld [vmem:[#allocation8 + $0x80] sm:$0xff]  ;;  %v484_v16 = vld [vmem:[#allocation8 + $0xa8] sm:$0xff] }
  0x43   :  { %328 = vmatpush1.bf16.msra.mxu0 %v3244_v22  ;;  %5513 = vst [vmem:[#allocation30_spill] sm:$0xff] %v3735_v9  ;;  %5515 = vst [vmem:[#allocation32_spill] sm:$0xff] %v3739_v11  ;;  %v483_v13 = vld [vmem:[#allocation8 + $0xa0] sm:$0xff]  ;;  %v3747_v17 = vcombine.high %v480_v14, %v484_v16  ;;  %v3751_v19 = vcombine.low %v480_v14, %v484_v16  ;;  %v472_v22 = vld [vmem:[#allocation8 + $0x48] sm:$0xff] }
  0x44   :  { %329 = vmatprep.subr.bf16.mxu0 %v3246_v23  ;;  %401 = vmatpush1.bf16.msra.mxu1 %v3261_v28  ;;  %5512 = vst [vmem:[#allocation29_spill] sm:$0xff] %v3733_v7  ;;  %5514 = vst [vmem:[#allocation31_spill] sm:$0xff] %v3737_v10  ;;  %v3745_v15 = vcombine.high %v479_v12, %v483_v13  ;;  %v3749_v18 = vcombine.low %v479_v12, %v483_v13  ;;  %v471_v20 = vld [vmem:[#allocation8 + $0x40] sm:$0xff]  ;;  %v476_v24 = vld [vmem:[#allocation8 + $0x68] sm:$0xff] }
  0x45   :  { %402 = vmatprep.subr.bf16.mxu1 %v3262_v29  ;;  %5517 = vst [vmem:[#allocation34_spill] sm:$0xff] %v3747_v17  ;;  %5519 = vst [vmem:[#allocation36_spill] sm:$0xff] %v3751_v19  ;;  %v475_v21 = vld [vmem:[#allocation8 + $0x60] sm:$0xff]  ;;  %v3759_v25 = vcombine.high %v472_v22, %v476_v24  ;;  %v464_v30 = vld [vmem:[#allocation8 + $0x8] sm:$0xff] }
  0x46   :  { %5516 = vst [vmem:[#allocation33_spill] sm:$0xff] %v3745_v15  ;;  %5518 = vst [vmem:[#allocation35_spill] sm:$0xff] %v3749_v18  ;;  %v3757_v23 = vcombine.high %v471_v20, %v475_v21  ;;  %v463_v28 = vld [vmem:[#allocation8] sm:$0xff]  ;;  %v584_v39 = vld [vmem:[#allocation8 + $0x3c8] sm:$0xff] }
  0x47   :  { %330 = vmatpush1.bf16.msra.mxu0 %v3250_v26  ;;  %5521 = vst [vmem:[#allocation38_spill] sm:$0xff] %v3759_v25  ;;  %v3761_v26 = vcombine.low %v471_v20, %v475_v21  ;;  %v467_v29 = vld [vmem:[#allocation8 + $0x20] sm:$0xff]  ;;  %v3268_v52 = vld [vmem:[#allocation3 + $0x8] sm:$0xff]  }
  0x48   :  { %331 = vmatprep.subr.bf16.mxu0 %v3252_v27  ;;  %403 = vmatpush1.bf16.msra.mxu1 %v3264_v33  ;;  %5520 = vst [vmem:[#allocation37_spill] sm:$0xff] %v3757_v23  ;;  %v3764_v27 = vcombine.low %v472_v22, %v476_v24  ;;  %v3769_v31 = vcombine.high %v463_v28, %v467_v29  ;;  %v583_v37 = vld [vmem:[#allocation8 + $0x3c0] sm:$0xff]  ;;  %v576_v60 = vld [vmem:[#allocation8 + $0x388] sm:$0xff]  ;;  %v3269_v22 = vld [vmem:[#allocation3 + $0x10] sm:$0xff]  }
  0x49   :  { %404 = vmatprep.subr.bf16.mxu1 %v3265_v35  ;;  %5522 = vst [vmem:[#allocation39_spill] sm:$0xff] %v3761_v26  ;;  %v3773_v35 = vcombine.low %v463_v28, %v467_v29  ;;  %v575_v53 = vld [vmem:[#allocation8 + $0x380] sm:$0xff]  ;;  %v580_v61 = vld [vmem:[#allocation8 + $0x3a8] sm:$0xff] }
  0x4a   :  { %5523 = vst [vmem:[#allocation40_spill] sm:$0xff] %v3764_v27  ;;  %5524 = vst [vmem:[#allocation41_spill] sm:$0xff] %v3769_v31  ;;  %v579_v55 = vld [vmem:[#allocation8 + $0x3a0] sm:$0xff]  ;;  %v3795_v63 = vcombine.high %v576_v60, %v580_v61  ;;  %v3799_v5 = vcombine.low %v576_v60, %v580_v61  ;;  %v568_v12 = vld [vmem:[#allocation8 + $0x348] sm:$0xff] }
  0x4b   :  { %332 = vmatpush1.bf16.msra.mxu0 %v3256_v32  ;;  %v468_v32 = vld [vmem:[#allocation8 + $0x28] sm:$0xff]  ;;  %5526 = vst [vmem:[#allocation43_spill] sm:$0xff] %v3773_v35  ;;  %v3793_v59 = vcombine.high %v575_v53, %v579_v55  ;;  %v3797_v4 = vcombine.low %v575_v53, %v579_v55  ;;  %v567_v6 = vld [vmem:[#allocation8 + $0x340] sm:$0xff] }
  0x4c   :  { %1282 = vmatprep.subr.bf16.mxu0 %v3683_v34  ;;  %405 = vmatpush1.bf16.msra.mxu1 %v3267_v42  ;;  %v3771_v33 = vcombine.high %v464_v30, %v468_v32  ;;  %v3775_v36 = vcombine.low %v464_v30, %v468_v32  ;;  %v588_v42 = vld [vmem:[#allocation8 + $0x3e8] sm:$0xff]  ;;  %5533 = vst [vmem:[#allocation50_spill] sm:$0xff] %v3795_v63  ;;  %5535 = vst [vmem:[#allocation52_spill] sm:$0xff] %v3799_v5  ;;  %v571_v8 = vld [vmem:[#allocation8 + $0x360] sm:$0xff] }
  0x4d   :  { %1323 = vmatprep.subr.bf16.mxu1 %v3690_v44  ;;  %v3783_v45 = vcombine.high %v584_v39, %v588_v42  ;;  %v3787_v51 = vcombine.low %v584_v39, %v588_v42  ;;  %5532 = vst [vmem:[#allocation49_spill] sm:$0xff] %v3793_v59  ;;  %5534 = vst [vmem:[#allocation51_spill] sm:$0xff] %v3797_v4  ;;  %v3806_v13 = vcombine.high %v567_v6, %v571_v8  ;;  %v572_v14 = vld [vmem:[#allocation8 + $0x368] sm:$0xff]  ;;  %v559_v24 = vld [vmem:[#allocation8 + $0x300] sm:$0xff] }
  0x4e   :  { %350 = vmatmul.mubr.bf16.vlgmr.msra.gmra.mxu0 %v3258_v38  ;;  %5525 = vst [vmem:[#allocation42_spill] sm:$0xff] %v3771_v33  ;;  %5527 = vst [vmem:[#allocation44_spill] sm:$0xff] %v3775_v36  ;;  %v3809_v16 = vcombine.high %v568_v12, %v572_v14  ;;  %v3811_v20 = vcombine.low %v567_v6, %v571_v8  ;;  %v3813_v21 = vcombine.low %v568_v12, %v572_v14  ;;  %v563_v28 = vld [vmem:[#allocation8 + $0x320] sm:$0xff]  ;;  %v560_v30 = vld [vmem:[#allocation8 + $0x308] sm:$0xff] }
  0x4f   :  { %1283 = vmatpush1.bf16.msra.mxu0 %v3685_v41  ;;  %359 = vmatprep.mubr.bf16.mxu0 %v5197_v1  ;;  %5529 = vst [vmem:[#allocation46_spill] sm:$0xff] %v3783_v45  ;;  %5531 = vst [vmem:[#allocation48_spill] sm:$0xff] %v3787_v51  ;;  %v3819_v29 = vcombine.high %v559_v24, %v563_v28  ;;  %v564_v32 = vld [vmem:[#allocation8 + $0x328] sm:$0xff]  ;;  %v551_v42 = vld [vmem:[#allocation8 + $0x2c0] sm:$0xff] }
  0x50   :  { %1284 = vmatprep.subr.bf16.mxu0 %v3688_v43  ;;  %423 = vmatmul.mubr.bf16.vlgmr.msra.gmra.mxu1 %v3258_v38  ;;  %v587_v38 = vld [vmem:[#allocation8 + $0x3e0] sm:$0xff]  ;;  %5536 = vst [vmem:[#allocation53_spill] sm:$0xff] %v3806_v13  ;;  %5537 = vst [vmem:[#allocation54_spill] sm:$0xff] %v3809_v16  ;;  %v3825_v39 = vcombine.low %v560_v30, %v564_v32  ;;  %v552_v53 = vld [vmem:[#allocation8 + $0x2c8] sm:$0xff] }
  0x51   :  { %1324 = vmatpush1.bf16.msra.mxu1 %v3696_v48  ;;  %432 = vmatprep.mubr.bf16.mxu1 %v5197_v1  ;;  %v3781_v40 = vcombine.high %v583_v37, %v587_v38  ;;  %v3785_v46 = vcombine.low %v583_v37, %v587_v38  ;;  %5538 = vst [vmem:[#allocation55_spill] sm:$0xff] %v3811_v20  ;;  %5539 = vst [vmem:[#allocation56_spill] sm:$0xff] %v3813_v21  ;;  %v556_v60 = vld [vmem:[#allocation8 + $0x2e8] sm:$0xff]  ;;  %v3270_v12 = vld [vmem:[#allocation3 + $0x18] sm:$0xff]  }
  0x52   :  { %1325 = vmatprep.subr.bf16.mxu1 %v3700_v49  ;;  %5540 = vst [vmem:[#allocation57_spill] sm:$0xff] %v3819_v29  ;;  %v3821_v37 = vcombine.high %v560_v30, %v564_v32  ;;  %v3823_v38 = vcombine.low %v559_v24, %v563_v28  ;;  %5543 = vst [vmem:[#allocation60_spill] sm:$0xff] %v3825_v39  ;;  %v3835_v61 = vcombine.high %v552_v53, %v556_v60  ;;  %v543_v14 = vld [vmem:[#allocation8 + $0x280] sm:$0xff]  ;;  %v544_v28 = vld [vmem:[#allocation8 + $0x288] sm:$0xff] }
  0x53   :  { %1285 = vmatpush1.bf16.msra.mxu0 %v3693_v47  ;;  %5528 = vst [vmem:[#allocation45_spill] sm:$0xff] %v3781_v40  ;;  %5530 = vst [vmem:[#allocation47_spill] sm:$0xff] %v3785_v46  ;;  %v3839_v8 = vcombine.low %v552_v53, %v556_v60  ;;  %v548_v30 = vld [vmem:[#allocation8 + $0x2a8] sm:$0xff]  ;;  %v535_v32 = vld [vmem:[#allocation8 + $0x240] sm:$0xff] }
  0x54   :  { %1286 = vmatprep.subr.bf16.mxu0 %v3709_v54  ;;  %5541 = vst [vmem:[#allocation58_spill] sm:$0xff] %v3821_v37  ;;  %5542 = vst [vmem:[#allocation59_spill] sm:$0xff] %v3823_v38  ;;  %v536_v53 = vld [vmem:[#allocation8 + $0x248] sm:$0xff] }
  0x55   :  { %1326 = vmatpush1.bf16.msra.mxu1 %v3704_v50  ;;  %5545 = vst [vmem:[#allocation62_spill] sm:$0xff] %v3835_v61  ;;  %5547 = vst [vmem:[#allocation64_spill] sm:$0xff] %v3839_v8  ;;  %v540_v60 = vld [vmem:[#allocation8 + $0x268] sm:$0xff] }
  0x56   :  { %1327 = vmatprep.subr.bf16.mxu1 %v3711_v56  ;;  %360 = vmatmul.mubr.bf16.gmra.mxu0 %v3268_v52 }
  0x57   :  { %1287 = vmatpush1.bf16.msra.mxu0 %v3713_v57  ;;  %369 = vmatprep.mubr.bf16.mxu0 %v5197_v1 }
  0x58   :  { %1288 = vmatprep.subr.bf16.mxu0 %v3721_v62  ;;  %433 = vmatmul.mubr.bf16.gmra.mxu1 %v3268_v52  ;;  %v555_v52 = vld [vmem:[#allocation8 + $0x2e0] sm:$0xff] }
  0x59   :  { %1328 = vmatpush1.bf16.msra.mxu1 %v3715_v58  ;;  %442 = vmatprep.mubr.bf16.mxu1 %v5197_v1  ;;  %v3832_v55 = vcombine.high %v551_v42, %v555_v52  ;;  %v3837_v6 = vcombine.low %v551_v42, %v555_v52  ;;  %v539_v52 = vld [vmem:[#allocation8 + $0x260] sm:$0xff] }
  0x5a   :  { %1329 = vmatprep.subr.bf16.mxu1 %v3723_v0 }
  0x5b   :  { %1289 = vmatpush1.bf16.msra.mxu0 %v3725_v2  ;;  %5544 = vst [vmem:[#allocation61_spill] sm:$0xff] %v3832_v55  ;;  %5546 = vst [vmem:[#allocation63_spill] sm:$0xff] %v3837_v6 }
  0x5c   :  { %1290 = vmatprep.subr.bf16.mxu0 %v3733_v7 }
  0x5d   :  { %1330 = vmatpush1.bf16.msra.mxu1 %v3727_v3 }
  0x5e   :  { %1331 = vmatprep.subr.bf16.mxu1 %v3735_v9  ;;  %370 = vmatmul.mubr.bf16.gmra.mxu0 %v3269_v22 }
  0x5f   :  { %1291 = vmatpush1.bf16.msra.mxu0 %v3737_v10  ;;  %379 = vmatprep.mubr.bf16.mxu0 %v5197_v1 }
  0x60   :  { %1292 = vmatprep.subr.bf16.mxu0 %v3745_v15  ;;  %443 = vmatmul.mubr.bf16.gmra.mxu1 %v3269_v22  ;;  %v547_v22 = vld [vmem:[#allocation8 + $0x2a0] sm:$0xff] }
  0x61   :  { %1332 = vmatpush1.bf16.msra.mxu1 %v3739_v11  ;;  %452 = vmatprep.mubr.bf16.mxu1 %v5197_v1  ;;  %v3842_v24 = vcombine.high %v543_v14, %v547_v22  ;;  %v3846_v1 = vcombine.high %v544_v28, %v548_v30  ;;  %v3848_v42 = vcombine.low %v543_v14, %v547_v22  ;;  %v528_v14 = vld [vmem:[#allocation8 + $0x208] sm:$0xff] }
  0x62   :  { %1333 = vmatprep.subr.bf16.mxu1 %v3747_v17  ;;  %v532_v22 = vld [vmem:[#allocation8 + $0x228] sm:$0xff] }
  0x63   :  { %1293 = vmatpush1.bf16.msra.mxu0 %v3749_v18  ;;  %5548 = vst [vmem:[#allocation65_spill] sm:$0xff] %v3842_v24  ;;  %5549 = vst [vmem:[#allocation66_spill] sm:$0xff] %v3846_v1 }
  0x64   :  { %1294 = vmatprep.subr.bf16.mxu0 %v3757_v23  ;;  %5550 = vst [vmem:[#allocation67_spill] sm:$0xff] %v3848_v42 }
  0x65   :  { %1334 = vmatpush1.bf16.msra.mxu1 %v3751_v19 }
  0x66   :  { %1335 = vmatprep.subr.bf16.mxu1 %v3759_v25  ;;  %380 = vmatmul.mubr.bf16.gmra.mxu0 %v3270_v12 }
  0x67   :  { %1295 = vmatpush1.bf16.msra.mxu0 %v3761_v26 }
  0x68   :  { %1296 = vmatprep.subr.bf16.mxu0 %v3769_v31  ;;  %453 = vmatmul.mubr.bf16.gmra.mxu1 %v3270_v12  ;;  %v3871_v12 = vcombine.high %v528_v14, %v532_v22 }
  0x69   :  { %1336 = vmatpush1.bf16.msra.mxu1 %v3764_v27 }
  0x6a   :  { %1337 = vmatprep.subr.bf16.mxu1 %v3771_v33  ;;  %5558 = vst [vmem:[#allocation74_spill] sm:$0xff] %v3871_v12 }
  0x6b   :  { %1297 = vmatpush1.bf16.msra.mxu0 %v3773_v35 }
  0x6c   :  { %1298 = vmatprep.subr.bf16.mxu0 %v3781_v40 }
  0x6d   :  { %1338 = vmatpush1.bf16.msra.mxu1 %v3775_v36 }
  0x6e   :  { %1339 = vmatprep.subr.bf16.mxu1 %v3783_v45 }
  0x6f   :  { %1299 = vmatpush2.bf16.msra.mxu0 %v3785_v46 }
  0x70   :  { %1300 = vmatprep.subr.bf16.mxu0 %v3793_v59 }
  0x71   :  { %1340 = vmatpush2.bf16.msra.mxu1 %v3787_v51 }
  0x72   :  { %1341 = vmatprep.subr.bf16.mxu1 %v3795_v63 }
  0x73   :  { %1301 = vmatpush2.bf16.msra.mxu0 %v3797_v4 }
  0x74   :  { %1302 = vmatprep.subr.bf16.mxu0 %v3806_v13 }
  0x75   :  { %1342 = vmatpush2.bf16.msra.mxu1 %v3799_v5 }
  0x76   :  { %1343 = vmatprep.subr.bf16.mxu1 %v3809_v16 }
  0x77   :  { %1303 = vmatpush2.bf16.msra.mxu0 %v3811_v20  ;;  %v502_v20 = vld [vmem:[#allocation8 + $0x138] sm:$0xff] }
  0x78   :  { %1304 = vmatprep.subr.bf16.mxu0 %v3819_v29  ;;  %v522_v29 = vld [vmem:[#allocation8 + $0x1d8] sm:$0xff] }
  0x79   :  { %1344 = vmatpush2.bf16.msra.mxu1 %v3813_v21 }
  0x7a   :  { %1345 = vmatprep.subr.bf16.mxu1 %v3821_v37  ;;  %v5554_v37 = vmov 0  }
  0x7b   :  { %1305 = vmatpush2.bf16.msra.mxu0 %v3823_v38  ;;  %v531_v38 = vld [vmem:[#allocation8 + $0x220] sm:$0xff]  ;;  %1314 = vmatprep.mubr.bf16.mxu0 %v5554_v37 }
  0x7c   :  { %1306 = vmatprep.subr.bf16.mxu0 %v3832_v55  ;;  %v3852_v55 = vcombine.low %v544_v28, %v548_v30  ;;  %1355 = vmatprep.mubr.bf16.mxu1 %v5554_v37  ;;  %v3866_v28 = vcombine.low %v536_v53, %v540_v60 }
  0x7d   :  { %1346 = vmatpush2.bf16.msra.mxu1 %v3825_v39  ;;  %v3854_v39 = vcombine.high %v535_v32, %v539_v52 }
  0x7e   :  { %1347 = vmatprep.subr.bf16.mxu1 %v3835_v61  ;;  %5551 = vst [vmem:[#allocation68_spill] sm:$0xff] %v3852_v55  ;;  %v3857_v61 = vcombine.high %v536_v53, %v540_v60  ;;  %5556 = vst [vmem:[#allocation72_spill] sm:$0xff] %v3866_v28 }
  0x7f   :  { %1307 = vmatpush2.bf16.msra.mxu0 %v3837_v6  ;;  %5552 = vst [vmem:[#allocation69_spill] sm:$0xff] %v3854_v39  ;;  %v527_v6 = vld [vmem:[#allocation8 + $0x200] sm:$0xff] }
  0x80   :  { %1308 = vmatprep.subr.bf16.mxu0 %v3842_v24  ;;  %5553 = vst [vmem:[#allocation70_spill] sm:$0xff] %v3857_v61  ;;  %v3868_v30 = vcombine.high %v527_v6, %v531_v38  ;;  %v525_v24 = vld [vmem:[#allocation8 + $0x1f0] sm:$0xff] }
  0x81   :  { %1348 = vmatpush2.bf16.msra.mxu1 %v3839_v8  ;;  %v3861_v8 = vcombine.low %v535_v32, %v539_v52  ;;  %v3874_v32 = vcombine.low %v527_v6, %v531_v38  ;;  %v3878_v52 = vcombine.low %v528_v14, %v532_v22  ;;  %v113_v14 = vlaneseq }
  0x82   :  { %1349 = vmatprep.subr.bf16.mxu1 %v3846_v1  ;;  %5557 = vst [vmem:[#allocation73_spill] sm:$0xff] %v3868_v30  ;;  %v521_v1 = vld [vmem:[#allocation8 + $0x1d0] sm:$0xff] }
  0x83   :  { %1309 = vmatpush2.bf16.msra.mxu0 %v3848_v42  ;;  %5555 = vst [vmem:[#allocation71_spill] sm:$0xff] %v3861_v8  ;;  %v526_v42 = vld [vmem:[#allocation8 + $0x1f8] sm:$0xff]  ;;  %5559 = vst [vmem:[#allocation75_spill] sm:$0xff] %v3874_v32  ;;  %v3880_v53 = vcombine.high %v521_v1, %v525_v24  ;;  %v3889_v38 = vcombine.low %v521_v1, %v525_v24  ;;  %v3893_v22 = vshrl.u32 %v113_v14, 7 }
  0x84   :  { %1310 = vmatprep.subr.bf16.mxu0 %v3854_v39  ;;  %5560 = vst [vmem:[#allocation76_spill] sm:$0xff] %v3878_v52  ;;  %v3883_v60 = vcombine.high %v522_v29, %v526_v42  ;;  %v3891_v6 = vcombine.low %v522_v29, %v526_v42 }
  0x85   :  { %1350 = vmatpush2.bf16.msra.mxu1 %v3852_v55  ;;  %5561 = vst [vmem:[#allocation77_spill] sm:$0xff] %v3880_v53  ;;  %5564 = vst [vmem:[#allocation80_spill] sm:$0xff] %v3893_v22 }
  0x86   :  { %1351 = vmatprep.subr.bf16.mxu1 %v3857_v61  ;;  %5562 = vst [vmem:[#allocation78_spill] sm:$0xff] %v3883_v60  ;;  %5563 = vst [vmem:[#allocation79_spill] sm:$0xff] %v3891_v6 }
  0x87   :  { %1311 = vmatpush2.bf16.msra.mxu0 %v3861_v8  ;;  %v5254_v8 = vsub.s32 3, %v3893_v22 }
  0x88   :  { %1312 = vmatprep.subr.bf16.mxu0 %v3868_v30  ;;  %v5235_v30 = vsub.s32 0, %v3893_v22 }
  0x89   :  { %1352 = vmatpush2.bf16.msra.mxu1 %v3866_v28 }
  0x8a   :  { %1353 = vmatprep.subr.bf16.mxu1 %v3871_v12  ;;  %v111_v12 = vld [vmem:[%s5191_s2] sm:$0xf] }
  0x8b   :  { %1313 = vmatpush2.bf16.msra.mxu0 %v3874_v32  ;;  %v5238_v32 = vsub.s32 1, %v3893_v22 }
  0x8c   :  { %1364 = vmatprep.subr.bf16.mxu0 %v3880_v53  ;;  %v3902_v53 = vrot.slane %v111_v12, %v5235_v30 }
  0x8d   :  { %1354 = vmatpush2.bf16.msra.mxu1 %v3878_v52  ;;  %v3906_v1 = vrot.slane %v111_v12, %v5238_v32  ;;  %v5243_v52 = vsub.s32 2, %v3893_v22 }
  0x8e   :  { %1405 = vmatprep.subr.bf16.mxu1 %v3883_v60  ;;  %5565 = vst [vmem:[#allocation81_spill] sm:$0xff] %v3902_v53 }
  0x8f   :  { %5566 = vst [vmem:[#allocation82_spill] sm:$0xff] %v3906_v1  ;;  %v3913_v30 = vrot.slane %v111_v12, %v5243_v52 }
  0x91   :  { %5567 = vst [vmem:[#allocation83_spill] sm:$0xff] %v3913_v30 }
 0x10e   :  { %v351_v29 = vpop.f32.mrf.mxu0 }
 0x10f   :  { %v352_v24 = vadd.f32 %v351_v29, %v3902_v53  ;;  %v3919_v29 = vrot.slane %v111_v12, %v5254_v8 }
 0x110   :  { %v353_v42 = vpop.f32.mrf.mxu0  ;;  %v424_v32 = vpop.f32.mrf.mxu1 }
 0x111   :  { %v3028_v14 = vmul.f32 -1.442695, %v352_v24  ;;  %v354_v60 = vadd.f32 %v353_v42, %v3906_v1  ;;  %v425_v61 = vadd.f32 %v424_v32, %v3913_v30  ;;  %5568 = vst [vmem:[#allocation84_spill] sm:$0xff] %v3919_v29 }
 0x112   :  { %v426_v42 = vpop.f32.mrf.mxu1 }
 0x113   :  { %3271 = vpow2.f32 %v3028_v14  ;;  %v3029_v28 = vmul.f32 -1.442695, %v354_v60  ;;  %v3030_v24 = vmul.f32 -1.442695, %v425_v61  ;;  %v427_v1 = vadd.f32 %v426_v42, %v3919_v29  ;;  %v513_v42 = vld [vmem:[#allocation8 + $0x190] sm:$0xff] }
 0x115   :  { %3273 = vpow2.f32 %v3029_v28 }
 0x116   :  { %3275 = vpow2.f32 %v3030_v24 }
 0x117   :  { %3277 = vtanh.f32 %v427_v1  ;;  %v514_v1 = vld [vmem:[#allocation8 + $0x198] sm:$0xff] }
 0x120   :  { %v3272_v14 = vpop.eup %3271 }
 0x121   :  { %v626_v60 = vadd.f32 1.0, %v3272_v14  ;;  %v517_v14 = vld [vmem:[#allocation8 + $0x1b0] sm:$0xff] }
 0x122   :  { %v3274_v28 = vpop.eup %3273  ;;  %v3927_v29 = vcombine.high %v513_v42, %v517_v14 }
 0x123   :  { %3279 = vrcp.f32 %v626_v60  ;;  %v627_v52 = vadd.f32 1.0, %v3274_v28  ;;  %v3276_v53 = vpop.eup %3275  ;;  %v518_v60 = vld [vmem:[#allocation8 + $0x1b8] sm:$0xff] }
 0x124   :  { %v3278_v39 = vpop.eup %3277  ;;  %v628_v30 = vadd.f32 1.0, %v3276_v53  ;;  %5570 = vst [vmem:[#allocation86_spill] sm:$0xff] %v3927_v29  ;;  %v3929_v21 = vcombine.high %v514_v1, %v518_v60  ;;  %v505_v53 = vld [vmem:[#allocation8 + $0x150] sm:$0xff] }
 0x125   :  { %3281 = vrcp.f32 %v627_v52 }
 0x126   :  { %3283 = vrcp.f32 %v628_v30  ;;  %5571 = vst [vmem:[#allocation87_spill] sm:$0xff] %v3929_v21  ;;  %v3935_v30 = vcombine.low %v513_v42, %v517_v14 }
 0x128   :  { %5572 = vst [vmem:[#allocation88_spill] sm:$0xff] %v3935_v30 }
 0x130   :  { %v3280_v55 = vpop.eup %3279 }
 0x131   :  { %v637_v12 = vmul.f32 %v3280_v55, %v3278_v39  ;;  %v509_v39 = vld [vmem:[#allocation8 + $0x170] sm:$0xff]  ;;  %v506_v55 = vld [vmem:[#allocation8 + $0x158] sm:$0xff] }
 0x132   :  { %v3282_v32 = vpop.eup %3281  ;;  %v3949_v42 = vcombine.low %v505_v53, %v509_v39 }
 0x133   :  { %v636_v22 = vmul.f32 0.0, %v3282_v32  ;;  %v3284_v61 = vpop.eup %3283  ;;  %v3937_v32 = vcombine.low %v514_v1, %v518_v60 }
 0x134   :  { %5576 = vst [vmem:[#allocation92_spill] sm:$0xff] %v3949_v42 }
 0x135   :  { %v3922_v8 = vadd.f32 %v637_v12, %v636_v22  ;;  %v510_v22 = vld [vmem:[#allocation8 + $0x178] sm:$0xff]  ;;  %5573 = vst [vmem:[#allocation89_spill] sm:$0xff] %v3937_v32  ;;  %v3941_v12 = vcombine.high %v505_v53, %v509_v39 }
 0x136   :  { %v3951_v14 = vcombine.low %v506_v55, %v510_v22 }
 0x137   :  { %5569 = vst [vmem:[#allocation85_spill] sm:$0xff] %v3922_v8  ;;  %3285 = vtanh.f32 %v3922_v8  ;;  %5574 = vst [vmem:[#allocation90_spill] sm:$0xff] %v3941_v12  ;;  %v498_v8 = vld [vmem:[#allocation8 + $0x118] sm:$0xff] }
 0x138   :  { %5577 = vst [vmem:[#allocation93_spill] sm:$0xff] %v3951_v14  ;;  %v3957_v60 = vcombine.high %v498_v8, %v502_v20  ;;  %v3963_v39 = vcombine.low %v498_v8, %v502_v20 }
 0x13a   :  { %5579 = vst [vmem:[#allocation95_spill] sm:$0xff] %v3957_v60  ;;  %5581 = vst [vmem:[#allocation97_spill] sm:$0xff] %v3963_v39 }
 0x144   :  { %v3286_v24 = vpop.eup %3285 }
 0x145   :  { %v640_v28 = vmul.f32 %v3286_v24, %v3284_v61  ;;  %v3943_v61 = vcombine.high %v506_v55, %v510_v22  ;;  %v497_v24 = vld [vmem:[#allocation8 + $0x110] sm:$0xff] }
 0x147   :  { %v3925_v52 = vpack.c.bf16 %v640_v28, %v640_v28  ;;  %5575 = vst [vmem:[#allocation91_spill] sm:$0xff] %v3943_v61  ;;  %v501_v28 = vld [vmem:[#allocation8 + $0x130] sm:$0xff] }
 0x148   :  { %v3955_v1 = vcombine.high %v497_v24, %v501_v28  ;;  %v3961_v53 = vcombine.low %v497_v24, %v501_v28 }
 0x149   :  { %1315 = vmatmul.mubr.bf16.vlgmr.msra.gmra.mxu0 %v3925_v52  ;;  %1356 = vmatmul.mubr.bf16.vlgmr.msra.gmra.mxu1 %v3925_v52 }
 0x14a   :  { %1365 = vmatpush1.bf16.msra.mxu0 %v3889_v38  ;;  %1406 = vmatpush1.bf16.msra.mxu1 %v3891_v6  ;;  %5578 = vst [vmem:[#allocation94_spill] sm:$0xff] %v3955_v1  ;;  %v490_v6 = vld [vmem:[#allocation8 + $0xd8] sm:$0xff]  ;;  %5580 = vst [vmem:[#allocation96_spill] sm:$0xff] %v3961_v53 }
 0x14b   :  { %1366 = vmatprep.subr.bf16.mxu0 %v3927_v29  ;;  %1407 = vmatprep.subr.bf16.mxu1 %v3929_v21  ;;  %v489_v21 = vld [vmem:[#allocation8 + $0xd0] sm:$0xff] }
 0x14c   :  { %1396 = vmatprep.mubr.bf16.mxu0 %v5554_v37  ;;  %1437 = vmatprep.mubr.bf16.mxu1 %v5554_v37  ;;  %v493_v29 = vld [vmem:[#allocation8 + $0xf0] sm:$0xff]  ;;  %v494_v37 = vld [vmem:[#allocation8 + $0xf8] sm:$0xff] }
 0x14d   :  { %v3967_v55 = vcombine.high %v489_v21, %v493_v29  ;;  %v3969_v22 = vcombine.high %v490_v6, %v494_v37  ;;  %v3973_v24 = vcombine.low %v489_v21, %v493_v29  ;;  %v3975_v20 = vcombine.low %v490_v6, %v494_v37 }
 0x14e   :  { %1367 = vmatpush1.bf16.msra.mxu0 %v3935_v30  ;;  %1408 = vmatpush1.bf16.msra.mxu1 %v3937_v32  ;;  %v482_v32 = vld [vmem:[#allocation8 + $0x98] sm:$0xff] }
 0x14f   :  { %1368 = vmatprep.subr.bf16.mxu0 %v3941_v12  ;;  %1409 = vmatprep.subr.bf16.mxu1 %v3943_v61  ;;  %5582 = vst [vmem:[#allocation98_spill] sm:$0xff] %v3967_v55  ;;  %5583 = vst [vmem:[#allocation99_spill] sm:$0xff] %v3969_v22  ;;  %v481_v61 = vld [vmem:[#allocation8 + $0x90] sm:$0xff]  ;;  %v486_v30 = vld [vmem:[#allocation8 + $0xb8] sm:$0xff] }
 0x150   :  { %v485_v12 = vld [vmem:[#allocation8 + $0xb0] sm:$0xff]  ;;  %5584 = vst [vmem:[#allocation100_spill] sm:$0xff] %v3973_v24  ;;  %5585 = vst [vmem:[#allocation101_spill] sm:$0xff] %v3975_v20  ;;  %v3981_v28 = vcombine.high %v482_v32, %v486_v30  ;;  %v3987_v6 = vcombine.low %v482_v32, %v486_v30 }
 0x151   :  { %v3979_v8 = vcombine.high %v481_v61, %v485_v12  ;;  %v3985_v21 = vcombine.low %v481_v61, %v485_v12 }
 0x152   :  { %1369 = vmatpush1.bf16.msra.mxu0 %v3949_v42  ;;  %1410 = vmatpush1.bf16.msra.mxu1 %v3951_v14  ;;  %5587 = vst [vmem:[#allocation103_spill] sm:$0xff] %v3981_v28  ;;  %v474_v14 = vld [vmem:[#allocation8 + $0x58] sm:$0xff]  ;;  %5589 = vst [vmem:[#allocation105_spill] sm:$0xff] %v3987_v6 }
 0x153   :  { %1370 = vmatprep.subr.bf16.mxu0 %v3955_v1  ;;  %1411 = vmatprep.subr.bf16.mxu1 %v3957_v60  ;;  %5586 = vst [vmem:[#allocation102_spill] sm:$0xff] %v3979_v8  ;;  %v473_v60 = vld [vmem:[#allocation8 + $0x50] sm:$0xff]  ;;  %v478_v42 = vld [vmem:[#allocation8 + $0x78] sm:$0xff]  ;;  %5588 = vst [vmem:[#allocation104_spill] sm:$0xff] %v3985_v21 }
 0x154   :  { %v477_v1 = vld [vmem:[#allocation8 + $0x70] sm:$0xff]  ;;  %v3993_v37 = vcombine.high %v474_v14, %v478_v42  ;;  %v3999_v30 = vcombine.low %v474_v14, %v478_v42 }
 0x155   :  { %v3991_v29 = vcombine.high %v473_v60, %v477_v1  ;;  %v3997_v12 = vcombine.low %v473_v60, %v477_v1 }
 0x156   :  { %1371 = vmatpush1.bf16.msra.mxu0 %v3961_v53  ;;  %1412 = vmatpush1.bf16.msra.mxu1 %v3963_v39  ;;  %5591 = vst [vmem:[#allocation107_spill] sm:$0xff] %v3993_v37  ;;  %v466_v39 = vld [vmem:[#allocation8 + $0x18] sm:$0xff]  ;;  %5593 = vst [vmem:[#allocation109_spill] sm:$0xff] %v3999_v30 }
 0x157   :  { %1372 = vmatprep.subr.bf16.mxu0 %v3967_v55  ;;  %1413 = vmatprep.subr.bf16.mxu1 %v3969_v22  ;;  %5590 = vst [vmem:[#allocation106_spill] sm:$0xff] %v3991_v29  ;;  %v465_v22 = vld [vmem:[#allocation8 + $0x10] sm:$0xff]  ;;  %v470_v53 = vld [vmem:[#allocation8 + $0x38] sm:$0xff]  ;;  %5592 = vst [vmem:[#allocation108_spill] sm:$0xff] %v3997_v12 }
 0x158   :  { %v469_v55 = vld [vmem:[#allocation8 + $0x30] sm:$0xff]  ;;  %v4005_v61 = vcombine.high %v466_v39, %v470_v53  ;;  %v4011_v42 = vcombine.low %v466_v39, %v470_v53 }
 0x159   :  { %v4003_v32 = vcombine.high %v465_v22, %v469_v55  ;;  %v4009_v1 = vcombine.low %v465_v22, %v469_v55 }
 0x15a   :  { %1373 = vmatpush1.bf16.msra.mxu0 %v3973_v24  ;;  %1414 = vmatpush1.bf16.msra.mxu1 %v3975_v20  ;;  %5595 = vst [vmem:[#allocation111_spill] sm:$0xff] %v4005_v61  ;;  %v586_v20 = vld [vmem:[#allocation8 + $0x3d8] sm:$0xff]  ;;  %5597 = vst [vmem:[#allocation113_spill] sm:$0xff] %v4011_v42 }
 0x15b   :  { %1374 = vmatprep.subr.bf16.mxu0 %v3979_v8  ;;  %1415 = vmatprep.subr.bf16.mxu1 %v3981_v28  ;;  %5594 = vst [vmem:[#allocation110_spill] sm:$0xff] %v4003_v32  ;;  %v585_v28 = vld [vmem:[#allocation8 + $0x3d0] sm:$0xff]  ;;  %v590_v24 = vld [vmem:[#allocation8 + $0x3f8] sm:$0xff]  ;;  %5596 = vst [vmem:[#allocation112_spill] sm:$0xff] %v4009_v1 }
 0x15c   :  { %v589_v8 = vld [vmem:[#allocation8 + $0x3f0] sm:$0xff]  ;;  %v4017_v60 = vcombine.high %v586_v20, %v590_v24  ;;  %v4023_v53 = vcombine.low %v586_v20, %v590_v24 }
 0x15d   :  { %v4015_v14 = vcombine.high %v585_v28, %v589_v8  ;;  %v4021_v55 = vcombine.low %v585_v28, %v589_v8 }
 0x15e   :  { %1375 = vmatpush1.bf16.msra.mxu0 %v3985_v21  ;;  %1416 = vmatpush1.bf16.msra.mxu1 %v3987_v6  ;;  %5599 = vst [vmem:[#allocation115_spill] sm:$0xff] %v4017_v60  ;;  %v578_v6 = vld [vmem:[#allocation8 + $0x398] sm:$0xff]  ;;  %5601 = vst [vmem:[#allocation117_spill] sm:$0xff] %v4023_v53 }
 0x15f   :  { %1376 = vmatprep.subr.bf16.mxu0 %v3991_v29  ;;  %1417 = vmatprep.subr.bf16.mxu1 %v3993_v37  ;;  %5598 = vst [vmem:[#allocation114_spill] sm:$0xff] %v4015_v14  ;;  %v577_v37 = vld [vmem:[#allocation8 + $0x390] sm:$0xff]  ;;  %v582_v21 = vld [vmem:[#allocation8 + $0x3b8] sm:$0xff]  ;;  %5600 = vst [vmem:[#allocation116_spill] sm:$0xff] %v4021_v55 }
 0x160   :  { %v581_v29 = vld [vmem:[#allocation8 + $0x3b0] sm:$0xff]  ;;  %v4029_v22 = vcombine.high %v578_v6, %v582_v21  ;;  %v4035_v24 = vcombine.low %v578_v6, %v582_v21 }
 0x161   :  { %v4027_v39 = vcombine.high %v577_v37, %v581_v29  ;;  %v4033_v8 = vcombine.low %v577_v37, %v581_v29 }
 0x162   :  { %1377 = vmatpush1.bf16.msra.mxu0 %v3997_v12  ;;  %1418 = vmatpush1.bf16.msra.mxu1 %v3999_v30  ;;  %5603 = vst [vmem:[#allocation119_spill] sm:$0xff] %v4029_v22  ;;  %v570_v30 = vld [vmem:[#allocation8 + $0x358] sm:$0xff]  ;;  %5605 = vst [vmem:[#allocation121_spill] sm:$0xff] %v4035_v24 }
 0x163   :  { %1378 = vmatprep.subr.bf16.mxu0 %v4003_v32  ;;  %1419 = vmatprep.subr.bf16.mxu1 %v4005_v61  ;;  %5602 = vst [vmem:[#allocation118_spill] sm:$0xff] %v4027_v39  ;;  %v569_v61 = vld [vmem:[#allocation8 + $0x350] sm:$0xff]  ;;  %v574_v12 = vld [vmem:[#allocation8 + $0x378] sm:$0xff]  ;;  %5604 = vst [vmem:[#allocation120_spill] sm:$0xff] %v4033_v8 }
 0x164   :  { %v573_v32 = vld [vmem:[#allocation8 + $0x370] sm:$0xff]  ;;  %v4041_v28 = vcombine.high %v570_v30, %v574_v12  ;;  %v4047_v21 = vcombine.low %v570_v30, %v574_v12 }
 0x165   :  { %v4039_v20 = vcombine.high %v569_v61, %v573_v32  ;;  %v4045_v29 = vcombine.low %v569_v61, %v573_v32 }
 0x166   :  { %1379 = vmatpush1.bf16.msra.mxu0 %v4009_v1  ;;  %1420 = vmatpush1.bf16.msra.mxu1 %v4011_v42  ;;  %5607 = vst [vmem:[#allocation123_spill] sm:$0xff] %v4041_v28  ;;  %v562_v42 = vld [vmem:[#allocation8 + $0x318] sm:$0xff]  ;;  %5609 = vst [vmem:[#allocation125_spill] sm:$0xff] %v4047_v21 }
 0x167   :  { %1380 = vmatprep.subr.bf16.mxu0 %v4015_v14  ;;  %1421 = vmatprep.subr.bf16.mxu1 %v4017_v60  ;;  %5606 = vst [vmem:[#allocation122_spill] sm:$0xff] %v4039_v20  ;;  %v561_v60 = vld [vmem:[#allocation8 + $0x310] sm:$0xff]  ;;  %v566_v1 = vld [vmem:[#allocation8 + $0x338] sm:$0xff]  ;;  %5608 = vst [vmem:[#allocation124_spill] sm:$0xff] %v4045_v29 }
 0x168   :  { %v565_v14 = vld [vmem:[#allocation8 + $0x330] sm:$0xff]  ;;  %v4053_v37 = vcombine.high %v562_v42, %v566_v1  ;;  %v4059_v12 = vcombine.low %v562_v42, %v566_v1 }
 0x169   :  { %v4051_v6 = vcombine.high %v561_v60, %v565_v14  ;;  %v4057_v32 = vcombine.low %v561_v60, %v565_v14 }
 0x16a   :  { %1381 = vmatpush2.bf16.msra.mxu0 %v4021_v55  ;;  %1422 = vmatpush2.bf16.msra.mxu1 %v4023_v53  ;;  %5611 = vst [vmem:[#allocation127_spill] sm:$0xff] %v4053_v37  ;;  %v554_v53 = vld [vmem:[#allocation8 + $0x2d8] sm:$0xff]  ;;  %5613 = vst [vmem:[#allocation129_spill] sm:$0xff] %v4059_v12 }
 0x16b   :  { %1382 = vmatprep.subr.bf16.mxu0 %v4027_v39  ;;  %1423 = vmatprep.subr.bf16.mxu1 %v4029_v22  ;;  %5610 = vst [vmem:[#allocation126_spill] sm:$0xff] %v4051_v6  ;;  %v553_v22 = vld [vmem:[#allocation8 + $0x2d0] sm:$0xff]  ;;  %v558_v55 = vld [vmem:[#allocation8 + $0x2f8] sm:$0xff]  ;;  %5612 = vst [vmem:[#allocation128_spill] sm:$0xff] %v4057_v32 }
 0x16c   :  { %v557_v39 = vld [vmem:[#allocation8 + $0x2f0] sm:$0xff]  ;;  %v4065_v61 = vcombine.high %v554_v53, %v558_v55  ;;  %v4071_v1 = vcombine.low %v554_v53, %v558_v55 }
 0x16d   :  { %v4063_v30 = vcombine.high %v553_v22, %v557_v39  ;;  %v4069_v14 = vcombine.low %v553_v22, %v557_v39 }
 0x16e   :  { %1383 = vmatpush2.bf16.msra.mxu0 %v4033_v8  ;;  %1424 = vmatpush2.bf16.msra.mxu1 %v4035_v24  ;;  %5615 = vst [vmem:[#allocation131_spill] sm:$0xff] %v4065_v61  ;;  %v546_v24 = vld [vmem:[#allocation8 + $0x298] sm:$0xff]  ;;  %5617 = vst [vmem:[#allocation133_spill] sm:$0xff] %v4071_v1 }
 0x16f   :  { %1384 = vmatprep.subr.bf16.mxu0 %v4039_v20  ;;  %1425 = vmatprep.subr.bf16.mxu1 %v4041_v28  ;;  %5614 = vst [vmem:[#allocation130_spill] sm:$0xff] %v4063_v30  ;;  %v545_v28 = vld [vmem:[#allocation8 + $0x290] sm:$0xff]  ;;  %v550_v8 = vld [vmem:[#allocation8 + $0x2b8] sm:$0xff]  ;;  %5616 = vst [vmem:[#allocation132_spill] sm:$0xff] %v4069_v14 }
 0x170   :  { %v549_v20 = vld [vmem:[#allocation8 + $0x2b0] sm:$0xff]  ;;  %v4077_v60 = vcombine.high %v546_v24, %v550_v8  ;;  %v4083_v55 = vcombine.low %v546_v24, %v550_v8 }
 0x171   :  { %v4075_v42 = vcombine.high %v545_v28, %v549_v20  ;;  %v4081_v39 = vcombine.low %v545_v28, %v549_v20 }
 0x172   :  { %1385 = vmatpush2.bf16.msra.mxu0 %v4045_v29  ;;  %1426 = vmatpush2.bf16.msra.mxu1 %v4047_v21  ;;  %5619 = vst [vmem:[#allocation135_spill] sm:$0xff] %v4077_v60  ;;  %v538_v21 = vld [vmem:[#allocation8 + $0x258] sm:$0xff]  ;;  %5621 = vst [vmem:[#allocation137_spill] sm:$0xff] %v4083_v55 }
 0x173   :  { %1386 = vmatprep.subr.bf16.mxu0 %v4051_v6  ;;  %1427 = vmatprep.subr.bf16.mxu1 %v4053_v37  ;;  %5618 = vst [vmem:[#allocation134_spill] sm:$0xff] %v4075_v42  ;;  %v537_v37 = vld [vmem:[#allocation8 + $0x250] sm:$0xff]  ;;  %v542_v29 = vld [vmem:[#allocation8 + $0x278] sm:$0xff]  ;;  %5620 = vst [vmem:[#allocation136_spill] sm:$0xff] %v4081_v39 }
 0x174   :  { %v541_v6 = vld [vmem:[#allocation8 + $0x270] sm:$0xff]  ;;  %v4089_v22 = vcombine.high %v538_v21, %v542_v29  ;;  %v4095_v8 = vcombine.low %v538_v21, %v542_v29  ;;  %v5631_v29 = vld [vmem:[#allocation56_spill] sm:$0xff]  ;;  %v5632_v21 = vld [vmem:[#allocation57_spill] sm:$0xff] }
 0x175   :  { %v4087_v53 = vcombine.high %v537_v37, %v541_v6  ;;  %v4093_v20 = vcombine.low %v537_v37, %v541_v6  ;;  %v5633_v6 = vld [vmem:[#allocation58_spill] sm:$0xff]  ;;  %v5634_v37 = vld [vmem:[#allocation59_spill] sm:$0xff] }
 0x176   :  { %1387 = vmatpush2.bf16.msra.mxu0 %v4057_v32  ;;  %1428 = vmatpush2.bf16.msra.mxu1 %v4059_v12  ;;  %5623 = vst [vmem:[#allocation139_spill] sm:$0xff] %v4089_v22  ;;  %v530_v12 = vld [vmem:[#allocation8 + $0x218] sm:$0xff]  ;;  %5625 = vst [vmem:[#allocation141_spill] sm:$0xff] %v4095_v8 }
 0x177   :  { %1388 = vmatprep.subr.bf16.mxu0 %v4063_v30  ;;  %1429 = vmatprep.subr.bf16.mxu1 %v4065_v61  ;;  %5622 = vst [vmem:[#allocation138_spill] sm:$0xff] %v4087_v53  ;;  %v529_v61 = vld [vmem:[#allocation8 + $0x210] sm:$0xff]  ;;  %v534_v32 = vld [vmem:[#allocation8 + $0x238] sm:$0xff]  ;;  %5624 = vst [vmem:[#allocation140_spill] sm:$0xff] %v4093_v20 }
 0x178   :  { %v533_v30 = vld [vmem:[#allocation8 + $0x230] sm:$0xff]  ;;  %v4101_v28 = vcombine.high %v530_v12, %v534_v32 }
 0x179   :  { %v4099_v24 = vcombine.high %v529_v61, %v533_v30 }
 0x17a   :  { %1389 = vmatpush2.bf16.msra.mxu0 %v4069_v14  ;;  %1430 = vmatpush2.bf16.msra.mxu1 %v4071_v1  ;;  %5627 = vst [vmem:[#allocation143_spill] sm:$0xff] %v4101_v28 }
 0x17b   :  { %1390 = vmatprep.subr.bf16.mxu0 %v4075_v42  ;;  %1431 = vmatprep.subr.bf16.mxu1 %v4077_v60  ;;  %5626 = vst [vmem:[#allocation142_spill] sm:$0xff] %v4099_v24  ;;  %v4105_v60 = vcombine.low %v529_v61, %v533_v30  ;;  %v5637_v30 = vld [vmem:[#allocation62_spill] sm:$0xff]  ;;  %v5638_v61 = vld [vmem:[#allocation63_spill] sm:$0xff] }
 0x17d   :  { %5628 = vst [vmem:[#allocation144_spill] sm:$0xff] %v4105_v60 }
 0x17e   :  { %1391 = vmatpush2.bf16.msra.mxu0 %v4081_v39  ;;  %1432 = vmatpush2.bf16.msra.mxu1 %v4083_v55  ;;  %v4107_v39 = vcombine.low %v530_v12, %v534_v32  ;;  %v5635_v32 = vld [vmem:[#allocation60_spill] sm:$0xff]  ;;  %v5636_v12 = vld [vmem:[#allocation61_spill] sm:$0xff] }
 0x17f   :  { %1392 = vmatprep.subr.bf16.mxu0 %v4087_v53  ;;  %1433 = vmatprep.subr.bf16.mxu1 %v4089_v22 }
 0x180   :  { %5629 = vst [vmem:[#allocation145_spill] sm:$0xff] %v4107_v39 }
 0x182   :  { %1393 = vmatpush2.bf16.msra.mxu0 %v4093_v20  ;;  %1434 = vmatpush2.bf16.msra.mxu1 %v4095_v8 }
 0x183   :  { %1394 = vmatprep.subr.bf16.mxu0 %v4099_v24  ;;  %1435 = vmatprep.subr.bf16.mxu1 %v4101_v28 }
 0x186   :  { %1395 = vmatpush2.bf16.msra.mxu0 %v4105_v60  ;;  %1436 = vmatpush2.bf16.msra.mxu1 %v4107_v39 }
 0x187   :  { %1504 = vmatprep.subr.bf16.mxu0 %v3683_v34  ;;  %1545 = vmatprep.subr.bf16.mxu1 %v3690_v44 }
 0x189   :  { %1397 = vmatmul.mubr.bf16.vlgmr.msra.gmra.mxu0 %v3925_v52  ;;  %1438 = vmatmul.mubr.bf16.vlgmr.msra.gmra.mxu1 %v3925_v52  ;;  %v5630_v52 = vld [vmem:[#allocation55_spill] sm:$0xff] }
 0x18a   :  { %1505 = vmatpush1.bf16.msra.mxu0 %v3685_v41  ;;  %1546 = vmatpush1.bf16.msra.mxu1 %v3696_v48 }
 0x18b   :  { %1506 = vmatprep.subr.bf16.mxu0 %v3688_v43  ;;  %1547 = vmatprep.subr.bf16.mxu1 %v3700_v49 }
 0x18e   :  { %1507 = vmatpush1.bf16.msra.mxu0 %v3693_v47  ;;  %1548 = vmatpush1.bf16.msra.mxu1 %v3704_v50 }
 0x18f   :  { %1508 = vmatprep.subr.bf16.mxu0 %v3709_v54  ;;  %1549 = vmatprep.subr.bf16.mxu1 %v3711_v56 }
 0x192   :  { %1509 = vmatpush1.bf16.msra.mxu0 %v3713_v57  ;;  %1550 = vmatpush1.bf16.msra.mxu1 %v3715_v58 }
 0x193   :  { %1510 = vmatprep.subr.bf16.mxu0 %v3721_v62  ;;  %1551 = vmatprep.subr.bf16.mxu1 %v3723_v0 }
 0x196   :  { %1511 = vmatpush1.bf16.msra.mxu0 %v3725_v2  ;;  %1552 = vmatpush1.bf16.msra.mxu1 %v3727_v3 }
 0x197   :  { %1512 = vmatprep.subr.bf16.mxu0 %v3733_v7  ;;  %1553 = vmatprep.subr.bf16.mxu1 %v3735_v9 }
 0x19a   :  { %1513 = vmatpush1.bf16.msra.mxu0 %v3737_v10  ;;  %1554 = vmatpush1.bf16.msra.mxu1 %v3739_v11 }
 0x19b   :  { %1514 = vmatprep.subr.bf16.mxu0 %v3745_v15  ;;  %1555 = vmatprep.subr.bf16.mxu1 %v3747_v17 }
 0x19e   :  { %1515 = vmatpush1.bf16.msra.mxu0 %v3749_v18  ;;  %1556 = vmatpush1.bf16.msra.mxu1 %v3751_v19 }
 0x19f   :  { %1516 = vmatprep.subr.bf16.mxu0 %v3757_v23  ;;  %1557 = vmatprep.subr.bf16.mxu1 %v3759_v25 }
 0x1a2   :  { %1517 = vmatpush1.bf16.msra.mxu0 %v3761_v26  ;;  %1558 = vmatpush1.bf16.msra.mxu1 %v3764_v27 }
 0x1a3   :  { %1518 = vmatprep.subr.bf16.mxu0 %v3769_v31  ;;  %1559 = vmatprep.subr.bf16.mxu1 %v3771_v33 }
 0x1a6   :  { %1519 = vmatpush1.bf16.msra.mxu0 %v3773_v35  ;;  %1560 = vmatpush1.bf16.msra.mxu1 %v3775_v36 }
 0x1a7   :  { %1520 = vmatprep.subr.bf16.mxu0 %v3781_v40  ;;  %1561 = vmatprep.subr.bf16.mxu1 %v3783_v45  ;;  %v5680_v45 = vld [vmem:[#allocation82_spill] sm:$0xff] }
 0x1aa   :  { %1521 = vmatpush2.bf16.msra.mxu0 %v3785_v46  ;;  %1562 = vmatpush2.bf16.msra.mxu1 %v3787_v51  ;;  %v5679_v51 = vld [vmem:[#allocation83_spill] sm:$0xff] }
 0x1ab   :  { %1522 = vmatprep.subr.bf16.mxu0 %v3793_v59  ;;  %1563 = vmatprep.subr.bf16.mxu1 %v3795_v63 }
 0x1ae   :  { %1523 = vmatpush2.bf16.msra.mxu0 %v3797_v4  ;;  %1564 = vmatpush2.bf16.msra.mxu1 %v3799_v5 }
 0x1af   :  { %1524 = vmatprep.subr.bf16.mxu0 %v3806_v13  ;;  %1565 = vmatprep.subr.bf16.mxu1 %v3809_v16  ;;  %v5639_v13 = vld [vmem:[#allocation64_spill] sm:$0xff]  ;;  %v5640_v16 = vld [vmem:[#allocation65_spill] sm:$0xff] }
 0x1b2   :  { %1525 = vmatpush2.bf16.msra.mxu0 %v5630_v52  ;;  %1566 = vmatpush2.bf16.msra.mxu1 %v5631_v29  ;;  %v5641_v52 = vld [vmem:[#allocation66_spill] sm:$0xff]  ;;  %v5642_v29 = vld [vmem:[#allocation67_spill] sm:$0xff] }
 0x1b3   :  { %1526 = vmatprep.subr.bf16.mxu0 %v5632_v21  ;;  %1567 = vmatprep.subr.bf16.mxu1 %v5633_v6  ;;  %v5643_v21 = vld [vmem:[#allocation68_spill] sm:$0xff]  ;;  %v5644_v6 = vld [vmem:[#allocation69_spill] sm:$0xff] }
 0x1b6   :  { %1527 = vmatpush2.bf16.msra.mxu0 %v5634_v37  ;;  %1568 = vmatpush2.bf16.msra.mxu1 %v5635_v32  ;;  %v5645_v37 = vld [vmem:[#allocation70_spill] sm:$0xff]  ;;  %v5646_v32 = vld [vmem:[#allocation71_spill] sm:$0xff] }
 0x1b7   :  { %1528 = vmatprep.subr.bf16.mxu0 %v5636_v12  ;;  %1569 = vmatprep.subr.bf16.mxu1 %v5637_v30  ;;  %v5647_v12 = vld [vmem:[#allocation72_spill] sm:$0xff]  ;;  %v5648_v30 = vld [vmem:[#allocation73_spill] sm:$0xff] }
 0x1ba   :  { %1529 = vmatpush2.bf16.msra.mxu0 %v5638_v61  ;;  %1570 = vmatpush2.bf16.msra.mxu1 %v5639_v13  ;;  %v5649_v61 = vld [vmem:[#allocation74_spill] sm:$0xff]  ;;  %v5650_v13 = vld [vmem:[#allocation75_spill] sm:$0xff] }
 0x1bb   :  { %1530 = vmatprep.subr.bf16.mxu0 %v5640_v16  ;;  %1571 = vmatprep.subr.bf16.mxu1 %v5641_v52  ;;  %v5651_v16 = vld [vmem:[#allocation76_spill] sm:$0xff]  ;;  %v5652_v52 = vld [vmem:[#allocation77_spill] sm:$0xff] }
 0x1be   :  { %1531 = vmatpush2.bf16.msra.mxu0 %v5642_v29  ;;  %1572 = vmatpush2.bf16.msra.mxu1 %v5643_v21  ;;  %v5653_v29 = vld [vmem:[#allocation78_spill] sm:$0xff]  ;;  %v428_v21 = vpop.f32.mrf.mxu1 }
 0x1bf   :  { %1532 = vmatprep.subr.bf16.mxu0 %v5644_v6  ;;  %1573 = vmatprep.subr.bf16.mxu1 %v5645_v37  ;;  %v355_v6 = vpop.f32.mrf.mxu0 }
 0x1c0   :  { %v430_v5 = vpop.f32.mrf.mxu1 }
 0x1c1   :  { %v357_v37 = vpop.f32.mrf.mxu0 }
 0x1c2   :  { %1533 = vmatpush2.bf16.msra.mxu0 %v5646_v32  ;;  %1574 = vmatpush2.bf16.msra.mxu1 %v5647_v12  ;;  %v4181_v4 = vpop.f32.mrf.mxu1 }
 0x1c3   :  { %1534 = vmatprep.subr.bf16.mxu0 %v5648_v30  ;;  %1575 = vmatprep.subr.bf16.mxu1 %v5649_v61  ;;  %5654 = vst [vmem:[#allocation146_spill] sm:$0xff] %v4181_v4  ;;  %v4183_v32 = vpop.f32.mrf.mxu0 }
 0x1c4   :  { %5655 = vst [vmem:[#allocation147_spill] sm:$0xff] %v4183_v32  ;;  %v4185_v12 = vpop.f32.mrf.mxu1 }
 0x1c5   :  { %5656 = vst [vmem:[#allocation148_spill] sm:$0xff] %v4185_v12  ;;  %v4187_v30 = vpop.f32.mrf.mxu0 }
 0x1c6   :  { %1535 = vmatpush2.bf16.msra.mxu0 %v5650_v13  ;;  %1576 = vmatpush2.bf16.msra.mxu1 %v5651_v16  ;;  %5657 = vst [vmem:[#allocation149_spill] sm:$0xff] %v4187_v30  ;;  %v4189_v61 = vpop.f32.mrf.mxu1 }
 0x1c7   :  { %1586 = vmatprep.subr.bf16.mxu0 %v5652_v52  ;;  %1627 = vmatprep.subr.bf16.mxu1 %v5653_v29  ;;  %5658 = vst [vmem:[#allocation150_spill] sm:$0xff] %v4189_v61  ;;  %v4191_v13 = vpop.f32.mrf.mxu0 }
 0x1c8   :  { %5659 = vst [vmem:[#allocation151_spill] sm:$0xff] %v4191_v13  ;;  %v4193_v16 = vpop.f32.mrf.mxu1 }
 0x1c9   :  { %5660 = vst [vmem:[#allocation152_spill] sm:$0xff] %v4193_v16  ;;  %v4195_v52 = vpop.f32.mrf.mxu0 }
 0x1ca   :  { %5661 = vst [vmem:[#allocation153_spill] sm:$0xff] %v4195_v52  ;;  %v4197_v29 = vpop.f32.mrf.mxu1 }
 0x1cb   :  { %5662 = vst [vmem:[#allocation154_spill] sm:$0xff] %v4197_v29  ;;  %v4199_v63 = vpop.f32.mrf.mxu0 }
 0x1cc   :  { %5663 = vst [vmem:[#allocation155_spill] sm:$0xff] %v4199_v63  ;;  %v4201_v59 = vpop.f32.mrf.mxu1 }
 0x1cd   :  { %5664 = vst [vmem:[#allocation156_spill] sm:$0xff] %v4201_v59  ;;  %v4203_v4 = vpop.f32.mrf.mxu0 }
 0x1ce   :  { %5665 = vst [vmem:[#allocation157_spill] sm:$0xff] %v4203_v4  ;;  %v4205_v32 = vpop.f32.mrf.mxu1 }
 0x1cf   :  { %5666 = vst [vmem:[#allocation158_spill] sm:$0xff] %v4205_v32  ;;  %v4207_v12 = vpop.f32.mrf.mxu0 }
 0x1d0   :  { %5667 = vst [vmem:[#allocation159_spill] sm:$0xff] %v4207_v12  ;;  %v4209_v30 = vpop.f32.mrf.mxu1  ;;  %v5678_v12 = vld [vmem:[#allocation81_spill] sm:$0xff] }
 0x1d1   :  { %5668 = vst [vmem:[#allocation160_spill] sm:$0xff] %v4209_v30  ;;  %v4211_v61 = vpop.f32.mrf.mxu0  ;;  %v356_v30 = vadd.f32 %v355_v6, %v5678_v12  ;;  %v5681_v6 = vld [vmem:[#allocation84_spill] sm:$0xff] }
 0x1d2   :  { %5669 = vst [vmem:[#allocation161_spill] sm:$0xff] %v4211_v61  ;;  %v4213_v13 = vpop.f32.mrf.mxu1  ;;  %v429_v61 = vadd.f32 %v428_v21, %v5679_v51  ;;  %v431_v12 = vadd.f32 %v430_v5, %v5681_v6 }
 0x1d3   :  { %5670 = vst [vmem:[#allocation162_spill] sm:$0xff] %v4213_v13  ;;  %v4215_v16 = vpop.f32.mrf.mxu0 }
 0x1d4   :  { %5671 = vst [vmem:[#allocation163_spill] sm:$0xff] %v4215_v16  ;;  %v4217_v52 = vpop.f32.mrf.mxu1  ;;  %v358_v16 = vadd.f32 %v357_v37, %v5680_v45 }
 0x1d5   :  { %5672 = vst [vmem:[#allocation164_spill] sm:$0xff] %v4217_v52  ;;  %v4219_v29 = vpop.f32.mrf.mxu0 }
 0x1d6   :  { %5673 = vst [vmem:[#allocation165_spill] sm:$0xff] %v4219_v29  ;;  %v4221_v63 = vpop.f32.mrf.mxu1 }
 0x1d7   :  { %5674 = vst [vmem:[#allocation166_spill] sm:$0xff] %v4221_v63  ;;  %v4223_v59 = vpop.f32.mrf.mxu0 }
 0x1d8   :  { %5675 = vst [vmem:[#allocation167_spill] sm:$0xff] %v4223_v59  ;;  %v4225_v4 = vpop.f32.mrf.mxu1 }
 0x1d9   :  { %5676 = vst [vmem:[#allocation168_spill] sm:$0xff] %v4225_v4  ;;  %v4227_v32 = vpop.f32.mrf.mxu0 }
 0x1da   :  { %5677 = vst [vmem:[#allocation169_spill] sm:$0xff] %v4227_v32 }
 0x209   :  { %v1316_v46 = vpop.f32.mrf.mxu0  ;;  %v1357_v13 = vpop.f32.mrf.mxu1 }
 0x20a   :  { %v1474_v40 = vadd.f32 %v1316_v46, %v356_v30  ;;  %v1476_v52 = vadd.f32 %v1357_v13, %v429_v61 }
 0x20b   :  { %v1318_v36 = vpop.f32.mrf.mxu0  ;;  %v1359_v29 = vpop.f32.mrf.mxu1 }
 0x20c   :  { %v3162_v35 = vmul.f32 -1.442695, %v1474_v40  ;;  %v1475_v63 = vadd.f32 %v1318_v36, %v358_v16  ;;  %v1477_v21 = vadd.f32 %v1359_v29, %v431_v12 }
 0x20d   :  { %v1320_v33 = vpop.f32.mrf.mxu0  ;;  %v1361_v59 = vpop.f32.mrf.mxu1 }
 0x20e   :  { %3287 = vpow2.f32 %v3162_v35  ;;  %v3163_v4 = vmul.f32 -1.442695, %v1475_v63  ;;  %v5682_v59 = vld [vmem:[#allocation85_spill] sm:$0xff] }
 0x20f   :  { %v1321_v31 = vpop.f32.mrf.mxu0  ;;  %v1362_v32 = vpop.f32.mrf.mxu1 }
 0x210   :  { %3289 = vpow2.f32 %v3163_v4  ;;  %v591_v31 = vld [vmem:[%s5193_s4] sm:$0xf] }
 0x211   :  { %3291 = vtanh.f32 %v1477_v21  ;;  %v5683_v4 = vld [vmem:[#allocation80_spill] sm:$0xff] }
 0x212   :  { %v5684_v5 = vsub.s32 0, %v5683_v4 }
 0x21b   :  { %v3288_v51 = vpop.eup %3287 }
 0x21c   :  { %v1487_v27 = vadd.f32 1.0, %v3288_v51  ;;  %v4241_v51 = vrot.slane %v591_v31, %v5684_v5  ;;  %v5690_v5 = vsub.s32 3, %v5683_v4 }
 0x21d   :  { %v3290_v26 = vpop.eup %3289 }
 0x21e   :  { %3293 = vrcp.f32 %v1487_v27  ;;  %v1488_v46 = vadd.f32 1.0, %v3290_v26  ;;  %v3292_v13 = vpop.eup %3291  ;;  %5685 = vst [vmem:[#allocation85_spill] sm:$0xff] %v4241_v51  ;;  %v5686_v27 = vsub.s32 1, %v5683_v4 }
 0x220   :  { %3295 = vrcp.f32 %v1488_v46  ;;  %v4245_v26 = vrot.slane %v591_v31, %v5686_v27  ;;  %v4256_v27 = vrot.slane %v591_v31, %v5690_v5 }
 0x222   :  { %5687 = vst [vmem:[#allocation80_spill] sm:$0xff] %v4245_v26  ;;  %5691 = vst [vmem:[#allocation171_spill] sm:$0xff] %v4256_v27 }
 0x22b   :  { %v3294_v40 = vpop.eup %3293 }
 0x22c   :  { %v1498_v36 = vmul.f32 %v3294_v40, %v3292_v13 }
 0x22d   :  { %v3296_v33 = vpop.eup %3295 }
 0x22e   :  { %v1497_v35 = vmul.f32 %v3296_v33, %v5682_v59  ;;  %v5688_v33 = vsub.s32 2, %v5683_v4 }
 0x230   :  { %v4234_v63 = vadd.f32 %v1498_v36, %v1497_v35  ;;  %v4251_v59 = vrot.slane %v591_v31, %v5688_v33 }
 0x232   :  { %5689 = vst [vmem:[#allocation170_spill] sm:$0xff] %v4251_v59 }
 0x249   :  { %v1398_v16 = vpop.f32.mrf.mxu0  ;;  %v1439_v29 = vpop.f32.mrf.mxu1 }
 0x24a   :  { %v1446_v37 = vadd.f32 %v1398_v16, %v4241_v51  ;;  %v1448_v35 = vadd.f32 %v1439_v29, %v4251_v59  ;;  %v3164_v16 = vmul.f32 -1.442695, %v1476_v52 }
 0x24b   :  { %v1400_v32 = vpop.f32.mrf.mxu0  ;;  %v1441_v12 = vpop.f32.mrf.mxu1 }
 0x24c   :  { %v3159_v30 = vmul.f32 -1.442695, %v1446_v37  ;;  %v1447_v61 = vadd.f32 %v1400_v32, %v4245_v26  ;;  %v3161_v37 = vmul.f32 -1.442695, %v1448_v35 }
 0x24d   :  { %v1402_v21 = vpop.f32.mrf.mxu0  ;;  %v1443_v46 = vpop.f32.mrf.mxu1 }
 0x24e   :  { %3297 = vpow2.f32 %v3159_v30  ;;  %v3160_v13 = vmul.f32 -1.442695, %v1447_v61  ;;  %v1449_v21 = vadd.f32 %v1441_v12, %v4256_v27 }
 0x24f   :  { %v1403_v40 = vpop.f32.mrf.mxu0  ;;  %v1444_v36 = vpop.f32.mrf.mxu1 }
 0x250   :  { %3299 = vpow2.f32 %v3160_v13 }
 0x251   :  { %3301 = vpow2.f32 %v3164_v16 }
 0x252   :  { %3303 = vpow2.f32 %v3161_v37 }
 0x25b   :  { %v3298_v32 = vpop.eup %3297 }
 0x25c   :  { %v1459_v30 = vadd.f32 1.0, %v3298_v32 }
 0x25d   :  { %v3300_v61 = vpop.eup %3299 }
 0x25e   :  { %3305 = vrcp.f32 %v1459_v30  ;;  %v1460_v46 = vadd.f32 1.0, %v3300_v61  ;;  %v3302_v13 = vpop.eup %3301 }
 0x25f   :  { %3307 = vtanh.f32 %v1449_v21  ;;  %v3304_v40 = vpop.eup %3303  ;;  %v1489_v4 = vadd.f32 1.0, %v3302_v13  ;;  %v5692_v13 = vld [vmem:[#allocation79_spill] sm:$0xff] }
 0x260   :  { %3309 = vrcp.f32 %v1460_v46  ;;  %v1461_v33 = vadd.f32 1.0, %v3304_v40  ;;  %v5693_v40 = vld [vmem:[#allocation86_spill] sm:$0xff] }
 0x261   :  { %3311 = vtanh.f32 %v4234_v63 }
 0x262   :  { %3313 = vrcp.f32 %v1489_v4  ;;  %v5696_v4 = vld [vmem:[#allocation89_spill] sm:$0xff] }
 0x263   :  { %3315 = vrcp.f32 %v1461_v33  ;;  %v5698_v33 = vld [vmem:[#allocation91_spill] sm:$0xff] }
 0x26b   :  { %v3306_v29 = vpop.eup %3305 }
 0x26c   :  { %v3308_v36 = vpop.eup %3307 }
 0x26d   :  { %v3310_v31 = vpop.eup %3309  ;;  %v1470_v35 = vmul.f32 %v3308_v36, %v3306_v29  ;;  %v5694_v29 = vld [vmem:[#allocation87_spill] sm:$0xff]  ;;  %v5695_v36 = vld [vmem:[#allocation88_spill] sm:$0xff] }
 0x26e   :  { %v1469_v52 = vmul.f32 0.0, %v3310_v31  ;;  %v3312_v5 = vpop.eup %3311  ;;  %v5697_v31 = vld [vmem:[#allocation90_spill] sm:$0xff] }
 0x26f   :  { %v3314_v16 = vpop.eup %3313 }
 0x270   :  { %v4260_v12 = vadd.f32 %v1470_v35, %v1469_v52  ;;  %v3316_v37 = vpop.eup %3315  ;;  %v1501_v21 = vmul.f32 %v3314_v16, %v3312_v5  ;;  %v5699_v52 = vld [vmem:[#allocation92_spill] sm:$0xff]  ;;  %v5700_v35 = vld [vmem:[#allocation93_spill] sm:$0xff]  ;;  %v5701_v5 = vld [vmem:[#allocation94_spill] sm:$0xff] }
 0x271   :  { %v5702_v16 = vld [vmem:[#allocation95_spill] sm:$0xff] }
 0x272   :  { %3317 = vtanh.f32 %v4260_v12  ;;  %v4263_v46 = vpack.c.bf16 %v1501_v21, %v1501_v21  ;;  %v5705_v21 = vld [vmem:[#allocation98_spill] sm:$0xff] }
 0x27f   :  { %v3318_v32 = vpop.eup %3317 }
 0x280   :  { %v1473_v30 = vmul.f32 %v3318_v32, %v3316_v37  ;;  %v5703_v37 = vld [vmem:[#allocation96_spill] sm:$0xff]  ;;  %v5704_v32 = vld [vmem:[#allocation97_spill] sm:$0xff] }
 0x282   :  { %v1503_v61 = vpack.c.bf16 %v1473_v30, %v1473_v30  ;;  %v5706_v30 = vld [vmem:[#allocation99_spill] sm:$0xff] }
 0x284   :  { %1536 = vmatprep.mubr.bf16.mxu0 %v1503_v61  ;;  %1577 = vmatprep.mubr.bf16.mxu1 %v1503_v61 }
 0x285   :  { %1537 = vmatmul.mubr.bf16.vlgmr.msra.gmra.mxu0 %v4263_v46  ;;  %1578 = vmatmul.mubr.bf16.vlgmr.msra.gmra.mxu1 %v4263_v46 }
 0x286   :  { %1587 = vmatpush1.bf16.msra.mxu0 %v3889_v38  ;;  %1628 = vmatpush1.bf16.msra.mxu1 %v5692_v13 }
 0x287   :  { %1618 = vmatprep.mubr.bf16.mxu0 %v1503_v61  ;;  %1659 = vmatprep.mubr.bf16.mxu1 %v1503_v61  ;;  %v5707_v61 = vld [vmem:[#allocation100_spill] sm:$0xff] }
 0x288   :  { %1588 = vmatprep.subr.bf16.mxu0 %v5693_v40  ;;  %1629 = vmatprep.subr.bf16.mxu1 %v5694_v29 }
 0x28a   :  { %1589 = vmatpush1.bf16.msra.mxu0 %v5695_v36  ;;  %1630 = vmatpush1.bf16.msra.mxu1 %v5696_v4 }
 0x28b   :  { %1590 = vmatprep.subr.bf16.mxu0 %v5697_v31  ;;  %1631 = vmatprep.subr.bf16.mxu1 %v5698_v33  ;;  %v5708_v31 = vld [vmem:[#allocation101_spill] sm:$0xff]  ;;  %v5709_v33 = vld [vmem:[#allocation102_spill] sm:$0xff] }
 0x28e   :  { %1591 = vmatpush1.bf16.msra.mxu0 %v5699_v52  ;;  %1632 = vmatpush1.bf16.msra.mxu1 %v5700_v35  ;;  %v5710_v52 = vld [vmem:[#allocation103_spill] sm:$0xff]  ;;  %v5711_v35 = vld [vmem:[#allocation104_spill] sm:$0xff] }
 0x28f   :  { %1592 = vmatprep.subr.bf16.mxu0 %v5701_v5  ;;  %1633 = vmatprep.subr.bf16.mxu1 %v5702_v16  ;;  %v5712_v5 = vld [vmem:[#allocation105_spill] sm:$0xff]  ;;  %v5713_v16 = vld [vmem:[#allocation106_spill] sm:$0xff] }
 0x292   :  { %1593 = vmatpush1.bf16.msra.mxu0 %v5703_v37  ;;  %1634 = vmatpush1.bf16.msra.mxu1 %v5704_v32  ;;  %v5714_v37 = vld [vmem:[#allocation107_spill] sm:$0xff]  ;;  %v5715_v32 = vld [vmem:[#allocation108_spill] sm:$0xff] }
 0x293   :  { %1594 = vmatprep.subr.bf16.mxu0 %v5705_v21  ;;  %1635 = vmatprep.subr.bf16.mxu1 %v5706_v30  ;;  %v5716_v21 = vld [vmem:[#allocation109_spill] sm:$0xff]  ;;  %v5717_v30 = vld [vmem:[#allocation110_spill] sm:$0xff] }
 0x296   :  { %1595 = vmatpush1.bf16.msra.mxu0 %v5707_v61  ;;  %1636 = vmatpush1.bf16.msra.mxu1 %v5708_v31  ;;  %v5718_v61 = vld [vmem:[#allocation111_spill] sm:$0xff]  ;;  %v5719_v31 = vld [vmem:[#allocation112_spill] sm:$0xff] }
 0x297   :  { %1596 = vmatprep.subr.bf16.mxu0 %v5709_v33  ;;  %1637 = vmatprep.subr.bf16.mxu1 %v5710_v52  ;;  %v5720_v33 = vld [vmem:[#allocation113_spill] sm:$0xff]  ;;  %v5721_v52 = vld [vmem:[#allocation114_spill] sm:$0xff] }
 0x29a   :  { %1597 = vmatpush1.bf16.msra.mxu0 %v5711_v35  ;;  %1638 = vmatpush1.bf16.msra.mxu1 %v5712_v5  ;;  %v5722_v35 = vld [vmem:[#allocation115_spill] sm:$0xff]  ;;  %v5723_v5 = vld [vmem:[#allocation116_spill] sm:$0xff] }
 0x29b   :  { %1598 = vmatprep.subr.bf16.mxu0 %v5713_v16  ;;  %1639 = vmatprep.subr.bf16.mxu1 %v5714_v37  ;;  %v5724_v16 = vld [vmem:[#allocation117_spill] sm:$0xff]  ;;  %v5725_v37 = vld [vmem:[#allocation118_spill] sm:$0xff] }
 0x29e   :  { %1599 = vmatpush1.bf16.msra.mxu0 %v5715_v32  ;;  %1640 = vmatpush1.bf16.msra.mxu1 %v5716_v21  ;;  %v5726_v32 = vld [vmem:[#allocation119_spill] sm:$0xff]  ;;  %v5727_v21 = vld [vmem:[#allocation120_spill] sm:$0xff] }
 0x29f   :  { %1600 = vmatprep.subr.bf16.mxu0 %v5717_v30  ;;  %1641 = vmatprep.subr.bf16.mxu1 %v5718_v61  ;;  %v5728_v30 = vld [vmem:[#allocation121_spill] sm:$0xff]  ;;  %v5729_v61 = vld [vmem:[#allocation122_spill] sm:$0xff] }
 0x2a2   :  { %1601 = vmatpush1.bf16.msra.mxu0 %v5719_v31  ;;  %1642 = vmatpush1.bf16.msra.mxu1 %v5720_v33  ;;  %v5730_v31 = vld [vmem:[#allocation123_spill] sm:$0xff]  ;;  %v5731_v33 = vld [vmem:[#allocation124_spill] sm:$0xff] }
 0x2a3   :  { %1602 = vmatprep.subr.bf16.mxu0 %v5721_v52  ;;  %1643 = vmatprep.subr.bf16.mxu1 %v5722_v35  ;;  %v5732_v52 = vld [vmem:[#allocation125_spill] sm:$0xff]  ;;  %v5733_v35 = vld [vmem:[#allocation126_spill] sm:$0xff] }
 0x2a6   :  { %1603 = vmatpush2.bf16.msra.mxu0 %v5723_v5  ;;  %1644 = vmatpush2.bf16.msra.mxu1 %v5724_v16  ;;  %v5734_v5 = vld [vmem:[#allocation127_spill] sm:$0xff]  ;;  %v5735_v16 = vld [vmem:[#allocation128_spill] sm:$0xff] }
 0x2a7   :  { %1604 = vmatprep.subr.bf16.mxu0 %v5725_v37  ;;  %1645 = vmatprep.subr.bf16.mxu1 %v5726_v32  ;;  %v5736_v37 = vld [vmem:[#allocation129_spill] sm:$0xff]  ;;  %v5737_v32 = vld [vmem:[#allocation130_spill] sm:$0xff] }
 0x2aa   :  { %1605 = vmatpush2.bf16.msra.mxu0 %v5727_v21  ;;  %1646 = vmatpush2.bf16.msra.mxu1 %v5728_v30  ;;  %v5738_v21 = vld [vmem:[#allocation131_spill] sm:$0xff] }
 0x2ab   :  { %1606 = vmatprep.subr.bf16.mxu0 %v5729_v61  ;;  %1647 = vmatprep.subr.bf16.mxu1 %v5730_v31 }
 0x2ae   :  { %1607 = vmatpush2.bf16.msra.mxu0 %v5731_v33  ;;  %1648 = vmatpush2.bf16.msra.mxu1 %v5732_v52  ;;  %v5739_v33 = vld [vmem:[#allocation135_spill] sm:$0xff]  ;;  %v5740_v52 = vld [vmem:[#allocation136_spill] sm:$0xff] }
 0x2af   :  { %1608 = vmatprep.subr.bf16.mxu0 %v5733_v35  ;;  %1649 = vmatprep.subr.bf16.mxu1 %v5734_v5 }
 0x2b2   :  { %1609 = vmatpush2.bf16.msra.mxu0 %v5735_v16  ;;  %1650 = vmatpush2.bf16.msra.mxu1 %v5736_v37 }
 0x2b3   :  { %1610 = vmatprep.subr.bf16.mxu0 %v5737_v32  ;;  %1651 = vmatprep.subr.bf16.mxu1 %v5738_v21 }
 0x2b6   :  { %1611 = vmatpush2.bf16.msra.mxu0 %v4069_v14  ;;  %1652 = vmatpush2.bf16.msra.mxu1 %v4071_v1 }
 0x2b7   :  { %1612 = vmatprep.subr.bf16.mxu0 %v4075_v42  ;;  %1653 = vmatprep.subr.bf16.mxu1 %v5739_v33 }
 0x2ba   :  { %1613 = vmatpush2.bf16.msra.mxu0 %v5740_v52  ;;  %1654 = vmatpush2.bf16.msra.mxu1 %v4083_v55 }
 0x2bb   :  { %1614 = vmatprep.subr.bf16.mxu0 %v4087_v53  ;;  %1655 = vmatprep.subr.bf16.mxu1 %v4089_v22 }
 0x2be   :  { %1615 = vmatpush2.bf16.msra.mxu0 %v4093_v20  ;;  %1656 = vmatpush2.bf16.msra.mxu1 %v4095_v8 }
 0x2bf   :  { %1616 = vmatprep.subr.bf16.mxu0 %v4099_v24  ;;  %1657 = vmatprep.subr.bf16.mxu1 %v4101_v28 }
 0x2c2   :  { %1617 = vmatpush2.bf16.msra.mxu0 %v4105_v60  ;;  %1658 = vmatpush2.bf16.msra.mxu1 %v4107_v39 }
 0x2c3   :  { %1726 = vmatprep.subr.bf16.mxu0 %v3683_v34  ;;  %1767 = vmatprep.subr.bf16.mxu1 %v3690_v44 }
 0x2c5   :  { %1619 = vmatmul.mubr.bf16.vlgmr.msra.gmra.mxu0 %v4263_v46  ;;  %1660 = vmatmul.mubr.bf16.vlgmr.msra.gmra.mxu1 %v4263_v46  ;;  %v5741_v46 = vld [vmem:[#allocation39_spill] sm:$0xff] }
 0x2c6   :  { %1727 = vmatpush1.bf16.msra.mxu0 %v3685_v41  ;;  %1768 = vmatpush1.bf16.msra.mxu1 %v3696_v48 }
 0x2c7   :  { %1728 = vmatprep.subr.bf16.mxu0 %v3688_v43  ;;  %1769 = vmatprep.subr.bf16.mxu1 %v3700_v49 }
 0x2ca   :  { %1729 = vmatpush1.bf16.msra.mxu0 %v3693_v47  ;;  %1770 = vmatpush1.bf16.msra.mxu1 %v3704_v50 }
 0x2cb   :  { %1730 = vmatprep.subr.bf16.mxu0 %v3709_v54  ;;  %1771 = vmatprep.subr.bf16.mxu1 %v3711_v56 }
 0x2ce   :  { %1731 = vmatpush1.bf16.msra.mxu0 %v3713_v57  ;;  %1772 = vmatpush1.bf16.msra.mxu1 %v3715_v58 }
 0x2cf   :  { %1732 = vmatprep.subr.bf16.mxu0 %v3721_v62  ;;  %1773 = vmatprep.subr.bf16.mxu1 %v3723_v0 }
 0x2d2   :  { %1733 = vmatpush1.bf16.msra.mxu0 %v3725_v2  ;;  %1774 = vmatpush1.bf16.msra.mxu1 %v3727_v3  ;;  %v5784_v2 = vld [vmem:[#allocation146_spill] sm:$0xff] }
 0x2d3   :  { %1734 = vmatprep.subr.bf16.mxu0 %v3733_v7  ;;  %1775 = vmatprep.subr.bf16.mxu1 %v3735_v9  ;;  %v5742_v7 = vld [vmem:[#allocation40_spill] sm:$0xff]  ;;  %v5743_v9 = vld [vmem:[#allocation41_spill] sm:$0xff] }
 0x2d6   :  { %1735 = vmatpush1.bf16.msra.mxu0 %v3737_v10  ;;  %1776 = vmatpush1.bf16.msra.mxu1 %v3739_v11  ;;  %v5744_v10 = vld [vmem:[#allocation42_spill] sm:$0xff]  ;;  %v5745_v11 = vld [vmem:[#allocation43_spill] sm:$0xff] }
 0x2d7   :  { %1736 = vmatprep.subr.bf16.mxu0 %v3745_v15  ;;  %1777 = vmatprep.subr.bf16.mxu1 %v3747_v17  ;;  %v5746_v15 = vld [vmem:[#allocation44_spill] sm:$0xff]  ;;  %v5747_v17 = vld [vmem:[#allocation45_spill] sm:$0xff] }
 0x2da   :  { %1737 = vmatpush1.bf16.msra.mxu0 %v3749_v18  ;;  %1778 = vmatpush1.bf16.msra.mxu1 %v3751_v19  ;;  %v5748_v18 = vld [vmem:[#allocation46_spill] sm:$0xff]  ;;  %v5749_v19 = vld [vmem:[#allocation47_spill] sm:$0xff] }
 0x2db   :  { %1738 = vmatprep.subr.bf16.mxu0 %v3757_v23  ;;  %1779 = vmatprep.subr.bf16.mxu1 %v3759_v25  ;;  %v5750_v23 = vld [vmem:[#allocation48_spill] sm:$0xff]  ;;  %v5751_v25 = vld [vmem:[#allocation49_spill] sm:$0xff] }
 0x2de   :  { %1739 = vmatpush1.bf16.msra.mxu0 %v5741_v46  ;;  %1780 = vmatpush1.bf16.msra.mxu1 %v5742_v7  ;;  %v5752_v46 = vld [vmem:[#allocation50_spill] sm:$0xff]  ;;  %v5753_v7 = vld [vmem:[#allocation51_spill] sm:$0xff] }
 0x2df   :  { %1740 = vmatprep.subr.bf16.mxu0 %v5743_v9  ;;  %1781 = vmatprep.subr.bf16.mxu1 %v5744_v10  ;;  %v5754_v9 = vld [vmem:[#allocation52_spill] sm:$0xff]  ;;  %v5755_v10 = vld [vmem:[#allocation53_spill] sm:$0xff] }
 0x2e2   :  { %1741 = vmatpush1.bf16.msra.mxu0 %v5745_v11  ;;  %1782 = vmatpush1.bf16.msra.mxu1 %v5746_v15  ;;  %v5756_v11 = vld [vmem:[#allocation54_spill] sm:$0xff]  ;;  %v5757_v15 = vld [vmem:[#allocation55_spill] sm:$0xff] }
 0x2e3   :  { %1742 = vmatprep.subr.bf16.mxu0 %v5747_v17  ;;  %1783 = vmatprep.subr.bf16.mxu1 %v5748_v18  ;;  %v5758_v17 = vld [vmem:[#allocation56_spill] sm:$0xff]  ;;  %v5759_v18 = vld [vmem:[#allocation57_spill] sm:$0xff] }
 0x2e6   :  { %1743 = vmatpush2.bf16.msra.mxu0 %v5749_v19  ;;  %1784 = vmatpush2.bf16.msra.mxu1 %v5750_v23  ;;  %v5760_v19 = vld [vmem:[#allocation58_spill] sm:$0xff]  ;;  %v5761_v23 = vld [vmem:[#allocation59_spill] sm:$0xff] }
 0x2e7   :  { %1744 = vmatprep.subr.bf16.mxu0 %v5751_v25  ;;  %1785 = vmatprep.subr.bf16.mxu1 %v5752_v46  ;;  %v5762_v25 = vld [vmem:[#allocation60_spill] sm:$0xff]  ;;  %v5763_v46 = vld [vmem:[#allocation61_spill] sm:$0xff] }
 0x2ea   :  { %1745 = vmatpush2.bf16.msra.mxu0 %v5753_v7  ;;  %1786 = vmatpush2.bf16.msra.mxu1 %v5754_v9  ;;  %v5764_v7 = vld [vmem:[#allocation62_spill] sm:$0xff]  ;;  %v5765_v9 = vld [vmem:[#allocation63_spill] sm:$0xff] }
 0x2eb   :  { %1746 = vmatprep.subr.bf16.mxu0 %v5755_v10  ;;  %1787 = vmatprep.subr.bf16.mxu1 %v5756_v11  ;;  %v5766_v10 = vld [vmem:[#allocation64_spill] sm:$0xff]  ;;  %v5767_v11 = vld [vmem:[#allocation65_spill] sm:$0xff] }
 0x2ee   :  { %1747 = vmatpush2.bf16.msra.mxu0 %v5757_v15  ;;  %1788 = vmatpush2.bf16.msra.mxu1 %v5758_v17  ;;  %v5768_v15 = vld [vmem:[#allocation66_spill] sm:$0xff]  ;;  %v5769_v17 = vld [vmem:[#allocation67_spill] sm:$0xff] }
 0x2ef   :  { %1748 = vmatprep.subr.bf16.mxu0 %v5759_v18  ;;  %1789 = vmatprep.subr.bf16.mxu1 %v5760_v19  ;;  %v5770_v18 = vld [vmem:[#allocation68_spill] sm:$0xff]  ;;  %v5771_v19 = vld [vmem:[#allocation69_spill] sm:$0xff] }
 0x2f2   :  { %1749 = vmatpush2.bf16.msra.mxu0 %v5761_v23  ;;  %1790 = vmatpush2.bf16.msra.mxu1 %v5762_v25  ;;  %v5772_v23 = vld [vmem:[#allocation70_spill] sm:$0xff]  ;;  %v5773_v25 = vld [vmem:[#allocation71_spill] sm:$0xff] }
 0x2f3   :  { %1750 = vmatprep.subr.bf16.mxu0 %v5763_v46  ;;  %1791 = vmatprep.subr.bf16.mxu1 %v5764_v7  ;;  %v5774_v46 = vld [vmem:[#allocation72_spill] sm:$0xff]  ;;  %v5775_v7 = vld [vmem:[#allocation73_spill] sm:$0xff] }
 0x2f6   :  { %1751 = vmatpush2.bf16.msra.mxu0 %v5765_v9  ;;  %1792 = vmatpush2.bf16.msra.mxu1 %v5766_v10  ;;  %v5776_v9 = vld [vmem:[#allocation74_spill] sm:$0xff]  ;;  %v5777_v10 = vld [vmem:[#allocation75_spill] sm:$0xff] }
 0x2f7   :  { %1752 = vmatprep.subr.bf16.mxu0 %v5767_v11  ;;  %1793 = vmatprep.subr.bf16.mxu1 %v5768_v15  ;;  %v5778_v11 = vld [vmem:[#allocation76_spill] sm:$0xff]  ;;  %v5779_v15 = vld [vmem:[#allocation77_spill] sm:$0xff] }
 0x2fa   :  { %1753 = vmatpush2.bf16.msra.mxu0 %v5769_v17  ;;  %1794 = vmatpush2.bf16.msra.mxu1 %v5770_v18  ;;  %v5780_v17 = vld [vmem:[#allocation78_spill] sm:$0xff]  ;;  %v5781_v18 = vld [vmem:[#allocation81_spill] sm:$0xff] }
 0x2fb   :  { %1754 = vmatprep.subr.bf16.mxu0 %v5771_v19  ;;  %1795 = vmatprep.subr.bf16.mxu1 %v5772_v23  ;;  %v5782_v19 = vld [vmem:[#allocation147_spill] sm:$0xff] }
 0x2fc   :  { %v362_v3 = vadd.f32 %v5782_v19, %v5781_v18  ;;  %v5783_v23 = vld [vmem:[#allocation83_spill] sm:$0xff] }
 0x2fe   :  { %1755 = vmatpush2.bf16.msra.mxu0 %v5773_v25  ;;  %1796 = vmatpush2.bf16.msra.mxu1 %v5774_v46  ;;  %v435_v25 = vadd.f32 %v5784_v2, %v5783_v23 }
 0x2ff   :  { %1756 = vmatprep.subr.bf16.mxu0 %v5775_v7  ;;  %1797 = vmatprep.subr.bf16.mxu1 %v5776_v9  ;;  %v5785_v7 = vld [vmem:[#allocation149_spill] sm:$0xff]  ;;  %v5786_v9 = vld [vmem:[#allocation148_spill] sm:$0xff] }
 0x300   :  { %v364_v62 = vadd.f32 %v5785_v7, %v5680_v45 }
 0x302   :  { %1757 = vmatpush2.bf16.msra.mxu0 %v5777_v10  ;;  %1798 = vmatpush2.bf16.msra.mxu1 %v5778_v11  ;;  %v437_v10 = vadd.f32 %v5786_v9, %v5681_v6 }
 0x303   :  { %1808 = vmatprep.subr.bf16.mxu0 %v5779_v15  ;;  %1849 = vmatprep.subr.bf16.mxu1 %v5780_v17 }
 0x345   :  { %v1538_v0 = vpop.f32.mrf.mxu0  ;;  %v1579_v46 = vpop.f32.mrf.mxu1 }
 0x346   :  { %v1696_v58 = vadd.f32 %v1538_v0, %v362_v3  ;;  %v1698_v11 = vadd.f32 %v1579_v46, %v435_v25 }
 0x347   :  { %v1540_v57 = vpop.f32.mrf.mxu0  ;;  %v1581_v15 = vpop.f32.mrf.mxu1 }
 0x348   :  { %v3168_v56 = vmul.f32 -1.442695, %v1696_v58  ;;  %v1697_v17 = vadd.f32 %v1540_v57, %v364_v62  ;;  %v1699_v54 = vadd.f32 %v1581_v15, %v437_v10 }
 0x349   :  { %v1542_v50 = vpop.f32.mrf.mxu0  ;;  %v1583_v19 = vpop.f32.mrf.mxu1 }
 0x34a   :  { %3319 = vpow2.f32 %v3168_v56  ;;  %v3169_v18 = vmul.f32 -1.442695, %v1697_v17 }
 0x34b   :  { %v1543_v2 = vpop.f32.mrf.mxu0  ;;  %v1584_v23 = vpop.f32.mrf.mxu1 }
 0x34c   :  { %3321 = vpow2.f32 %v3169_v18  ;;  %v3170_v2 = vmul.f32 -1.442695, %v1698_v11 }
 0x34d   :  { %3323 = vtanh.f32 %v1699_v54 }
 0x357   :  { %v3320_v47 = vpop.eup %3319 }
 0x358   :  { %v1709_v49 = vadd.f32 1.0, %v3320_v47 }
 0x359   :  { %v3322_v7 = vpop.eup %3321 }
 0x35a   :  { %3325 = vrcp.f32 %v1709_v49  ;;  %v1710_v9 = vadd.f32 1.0, %v3322_v7  ;;  %v3324_v0 = vpop.eup %3323 }
 0x35c   :  { %3327 = vrcp.f32 %v1710_v9 }
 0x367   :  { %v3326_v3 = vpop.eup %3325 }
 0x368   :  { %v1720_v25 = vmul.f32 %v3326_v3, %v3324_v0 }
 0x369   :  { %v3328_v58 = vpop.eup %3327 }
 0x36a   :  { %v1719_v57 = vmul.f32 %v3328_v58, %v4234_v63 }
 0x36c   :  { %v4406_v50 = vadd.f32 %v1720_v25, %v1719_v57 }
 0x385   :  { %v1620_v56 = vpop.f32.mrf.mxu0  ;;  %v1661_v62 = vpop.f32.mrf.mxu1 }
 0x386   :  { %v1668_v10 = vadd.f32 %v1620_v56, %v4241_v51  ;;  %v1670_v63 = vadd.f32 %v1661_v62, %v4251_v59 }
 0x387   :  { %v1622_v15 = vpop.f32.mrf.mxu0  ;;  %v1663_v17 = vpop.f32.mrf.mxu1 }
 0x388   :  { %v3165_v47 = vmul.f32 -1.442695, %v1668_v10  ;;  %v1669_v54 = vadd.f32 %v1622_v15, %v4245_v26  ;;  %v3167_v7 = vmul.f32 -1.442695, %v1670_v63  ;;  %v1671_v0 = vadd.f32 %v1663_v17, %v4256_v27 }
 0x389   :  { %v1624_v49 = vpop.f32.mrf.mxu0  ;;  %v1665_v18 = vpop.f32.mrf.mxu1 }
 0x38a   :  { %3329 = vpow2.f32 %v3165_v47  ;;  %v3166_v23 = vmul.f32 -1.442695, %v1669_v54 }
 0x38b   :  { %v1625_v46 = vpop.f32.mrf.mxu0  ;;  %v1666_v19 = vpop.f32.mrf.mxu1 }
 0x38c   :  { %3331 = vpow2.f32 %v3166_v23 }
 0x38d   :  { %3333 = vpow2.f32 %v3170_v2 }
 0x38e   :  { %3335 = vpow2.f32 %v3167_v7 }
 0x397   :  { %v3330_v9 = vpop.eup %3329 }
 0x398   :  { %v1681_v3 = vadd.f32 1.0, %v3330_v9 }
 0x399   :  { %v3332_v25 = vpop.eup %3331 }
 0x39a   :  { %3337 = vrcp.f32 %v1681_v3  ;;  %v1682_v58 = vadd.f32 1.0, %v3332_v25  ;;  %v3334_v57 = vpop.eup %3333  ;;  %v5789_v3 = vld [vmem:[#allocation92_spill] sm:$0xff]  ;;  %v5790_v25 = vld [vmem:[#allocation93_spill] sm:$0xff] }
 0x39b   :  { %3339 = vtanh.f32 %v1671_v0  ;;  %v3336_v56 = vpop.eup %3335  ;;  %v1711_v47 = vadd.f32 1.0, %v3334_v57  ;;  %v5788_v0 = vld [vmem:[#allocation91_spill] sm:$0xff] }
 0x39c   :  { %3341 = vrcp.f32 %v1682_v58  ;;  %v1683_v62 = vadd.f32 1.0, %v3336_v56  ;;  %v5791_v58 = vld [vmem:[#allocation94_spill] sm:$0xff]  ;;  %v5792_v57 = vld [vmem:[#allocation95_spill] sm:$0xff]  ;;  %v5793_v56 = vld [vmem:[#allocation96_spill] sm:$0xff] }
 0x39d   :  { %3343 = vtanh.f32 %v4406_v50 }
 0x39e   :  { %3345 = vrcp.f32 %v1711_v47  ;;  %v5796_v47 = vld [vmem:[#allocation99_spill] sm:$0xff] }
 0x39f   :  { %3347 = vrcp.f32 %v1683_v62  ;;  %v5798_v62 = vld [vmem:[#allocation101_spill] sm:$0xff] }
 0x3a7   :  { %v3338_v10 = vpop.eup %3337 }
 0x3a8   :  { %v3340_v15 = vpop.eup %3339 }
 0x3a9   :  { %v3342_v54 = vpop.eup %3341  ;;  %v1692_v49 = vmul.f32 %v3340_v15, %v3338_v10  ;;  %v5794_v10 = vld [vmem:[#allocation97_spill] sm:$0xff]  ;;  %v5795_v15 = vld [vmem:[#allocation98_spill] sm:$0xff] }
 0x3aa   :  { %v1691_v11 = vmul.f32 %v3342_v54, %v4260_v12  ;;  %v3344_v18 = vpop.eup %3343  ;;  %v5787_v12 = vld [vmem:[#allocation90_spill] sm:$0xff]  ;;  %v5797_v54 = vld [vmem:[#allocation100_spill] sm:$0xff] }
 0x3ab   :  { %v3346_v23 = vpop.eup %3345 }
 0x3ac   :  { %v4414_v17 = vadd.f32 %v1692_v49, %v1691_v11  ;;  %v3348_v46 = vpop.eup %3347  ;;  %v1723_v63 = vmul.f32 %v3346_v23, %v3344_v18  ;;  %v5799_v11 = vld [vmem:[#allocation102_spill] sm:$0xff]  ;;  %v5800_v49 = vld [vmem:[#allocation103_spill] sm:$0xff]  ;;  %v5801_v18 = vld [vmem:[#allocation104_spill] sm:$0xff] }
 0x3ad   :  { %v5802_v23 = vld [vmem:[#allocation105_spill] sm:$0xff] }
 0x3ae   :  { %3349 = vtanh.f32 %v4414_v17  ;;  %v4417_v9 = vpack.c.bf16 %v1723_v63, %v1723_v63  ;;  %v5805_v63 = vld [vmem:[#allocation108_spill] sm:$0xff] }
 0x3bb   :  { %v3350_v19 = vpop.eup %3349 }
 0x3bc   :  { %v1695_v2 = vmul.f32 %v3350_v19, %v3348_v46  ;;  %v5803_v46 = vld [vmem:[#allocation106_spill] sm:$0xff]  ;;  %v5804_v19 = vld [vmem:[#allocation107_spill] sm:$0xff] }
 0x3be   :  { %v1725_v7 = vpack.c.bf16 %v1695_v2, %v1695_v2  ;;  %v5806_v2 = vld [vmem:[#allocation109_spill] sm:$0xff] }
 0x3c0   :  { %1758 = vmatprep.mubr.bf16.mxu0 %v1725_v7  ;;  %1799 = vmatprep.mubr.bf16.mxu1 %v1725_v7 }
 0x3c1   :  { %1759 = vmatmul.mubr.bf16.vlgmr.msra.gmra.mxu0 %v4417_v9  ;;  %1800 = vmatmul.mubr.bf16.vlgmr.msra.gmra.mxu1 %v4417_v9 }
 0x3c2   :  { %1809 = vmatpush1.bf16.msra.mxu0 %v3889_v38  ;;  %1850 = vmatpush1.bf16.msra.mxu1 %v5692_v13 }
 0x3c3   :  { %1840 = vmatprep.mubr.bf16.mxu0 %v1725_v7  ;;  %1881 = vmatprep.mubr.bf16.mxu1 %v1725_v7  ;;  %v5807_v7 = vld [vmem:[#allocation110_spill] sm:$0xff] }
 0x3c4   :  { %1810 = vmatprep.subr.bf16.mxu0 %v5693_v40  ;;  %1851 = vmatprep.subr.bf16.mxu1 %v5694_v29 }
 0x3c6   :  { %1811 = vmatpush1.bf16.msra.mxu0 %v5695_v36  ;;  %1852 = vmatpush1.bf16.msra.mxu1 %v5696_v4 }
 0x3c7   :  { %1812 = vmatprep.subr.bf16.mxu0 %v5787_v12  ;;  %1853 = vmatprep.subr.bf16.mxu1 %v5788_v0 }
 0x3ca   :  { %1813 = vmatpush1.bf16.msra.mxu0 %v5789_v3  ;;  %1854 = vmatpush1.bf16.msra.mxu1 %v5790_v25 }
 0x3cb   :  { %1814 = vmatprep.subr.bf16.mxu0 %v5791_v58  ;;  %1855 = vmatprep.subr.bf16.mxu1 %v5792_v57 }
 0x3ce   :  { %1815 = vmatpush1.bf16.msra.mxu0 %v5793_v56  ;;  %1856 = vmatpush1.bf16.msra.mxu1 %v5794_v10 }
 0x3cf   :  { %1816 = vmatprep.subr.bf16.mxu0 %v5795_v15  ;;  %1857 = vmatprep.subr.bf16.mxu1 %v5796_v47 }
 0x3d2   :  { %1817 = vmatpush1.bf16.msra.mxu0 %v5797_v54  ;;  %1858 = vmatpush1.bf16.msra.mxu1 %v5798_v62  ;;  %v5808_v54 = vld [vmem:[#allocation111_spill] sm:$0xff]  ;;  %v5809_v62 = vld [vmem:[#allocation112_spill] sm:$0xff] }
 0x3d3   :  { %1818 = vmatprep.subr.bf16.mxu0 %v5799_v11  ;;  %1859 = vmatprep.subr.bf16.mxu1 %v5800_v49  ;;  %v5810_v11 = vld [vmem:[#allocation113_spill] sm:$0xff]  ;;  %v5811_v49 = vld [vmem:[#allocation114_spill] sm:$0xff] }
 0x3d6   :  { %1819 = vmatpush1.bf16.msra.mxu0 %v5801_v18  ;;  %1860 = vmatpush1.bf16.msra.mxu1 %v5802_v23  ;;  %v5812_v18 = vld [vmem:[#allocation115_spill] sm:$0xff]  ;;  %v5813_v23 = vld [vmem:[#allocation116_spill] sm:$0xff] }
 0x3d7   :  { %1820 = vmatprep.subr.bf16.mxu0 %v5803_v46  ;;  %1861 = vmatprep.subr.bf16.mxu1 %v5804_v19  ;;  %v5814_v46 = vld [vmem:[#allocation117_spill] sm:$0xff]  ;;  %v5815_v19 = vld [vmem:[#allocation118_spill] sm:$0xff] }
 0x3da   :  { %1821 = vmatpush1.bf16.msra.mxu0 %v5805_v63  ;;  %1862 = vmatpush1.bf16.msra.mxu1 %v5806_v2  ;;  %v5816_v63 = vld [vmem:[#allocation119_spill] sm:$0xff]  ;;  %v5817_v2 = vld [vmem:[#allocation120_spill] sm:$0xff] }
 0x3db   :  { %1822 = vmatprep.subr.bf16.mxu0 %v5807_v7  ;;  %1863 = vmatprep.subr.bf16.mxu1 %v5808_v54 }
 0x3de   :  { %1823 = vmatpush1.bf16.msra.mxu0 %v5809_v62  ;;  %1864 = vmatpush1.bf16.msra.mxu1 %v5810_v11  ;;  %v5818_v11 = vld [vmem:[#allocation124_spill] sm:$0xff] }
 0x3df   :  { %1824 = vmatprep.subr.bf16.mxu0 %v5811_v49  ;;  %1865 = vmatprep.subr.bf16.mxu1 %v5812_v18  ;;  %v5819_v49 = vld [vmem:[#allocation125_spill] sm:$0xff] }
 0x3e2   :  { %1825 = vmatpush2.bf16.msra.mxu0 %v5813_v23  ;;  %1866 = vmatpush2.bf16.msra.mxu1 %v5814_v46 }
 0x3e3   :  { %1826 = vmatprep.subr.bf16.mxu0 %v5815_v19  ;;  %1867 = vmatprep.subr.bf16.mxu1 %v5816_v63 }
 0x3e6   :  { %1827 = vmatpush2.bf16.msra.mxu0 %v5817_v2  ;;  %1868 = vmatpush2.bf16.msra.mxu1 %v5728_v30 }
 0x3e7   :  { %1828 = vmatprep.subr.bf16.mxu0 %v5729_v61  ;;  %1869 = vmatprep.subr.bf16.mxu1 %v5730_v31 }
 0x3ea   :  { %1829 = vmatpush2.bf16.msra.mxu0 %v5818_v11  ;;  %1870 = vmatpush2.bf16.msra.mxu1 %v5819_v49 }
 0x3eb   :  { %1830 = vmatprep.subr.bf16.mxu0 %v5733_v35  ;;  %1871 = vmatprep.subr.bf16.mxu1 %v5734_v5 }
 0x3ee   :  { %1831 = vmatpush2.bf16.msra.mxu0 %v5735_v16  ;;  %1872 = vmatpush2.bf16.msra.mxu1 %v5736_v37 }
 0x3ef   :  { %1832 = vmatprep.subr.bf16.mxu0 %v5737_v32  ;;  %1873 = vmatprep.subr.bf16.mxu1 %v5738_v21 }
 0x3f2   :  { %1833 = vmatpush2.bf16.msra.mxu0 %v4069_v14  ;;  %1874 = vmatpush2.bf16.msra.mxu1 %v4071_v1 }
 0x3f3   :  { %1834 = vmatprep.subr.bf16.mxu0 %v4075_v42  ;;  %1875 = vmatprep.subr.bf16.mxu1 %v5739_v33 }
 0x3f6   :  { %1835 = vmatpush2.bf16.msra.mxu0 %v5740_v52  ;;  %1876 = vmatpush2.bf16.msra.mxu1 %v4083_v55 }
 0x3f7   :  { %1836 = vmatprep.subr.bf16.mxu0 %v4087_v53  ;;  %1877 = vmatprep.subr.bf16.mxu1 %v4089_v22  ;;  %v5884_v22 = vld [vmem:[#allocation150_spill] sm:$0xff] }
 0x3fa   :  { %1837 = vmatpush2.bf16.msra.mxu0 %v4093_v20  ;;  %1878 = vmatpush2.bf16.msra.mxu1 %v4095_v8  ;;  %v5826_v8 = vld [vmem:[#allocation24_spill] sm:$0xff] }
 0x3fb   :  { %1838 = vmatprep.subr.bf16.mxu0 %v4099_v24  ;;  %1879 = vmatprep.subr.bf16.mxu1 %v4101_v28  ;;  %v5820_v24 = vld [vmem:[#allocation19_spill] sm:$0xff]  ;;  %v5821_v28 = vld [vmem:[#allocation17_spill] sm:$0xff] }
 0x3fe   :  { %1839 = vmatpush2.bf16.msra.mxu0 %v4105_v60  ;;  %1880 = vmatpush2.bf16.msra.mxu1 %v4107_v39  ;;  %v5822_v60 = vld [vmem:[#allocation20_spill] sm:$0xff]  ;;  %v5823_v39 = vld [vmem:[#allocation21_spill] sm:$0xff] }
 0x3ff   :  { %1948 = vmatprep.subr.bf16.mxu0 %v3683_v34  ;;  %1989 = vmatprep.subr.bf16.mxu1 %v3690_v44  ;;  %v5824_v34 = vld [vmem:[#allocation22_spill] sm:$0xff]  ;;  %v5825_v44 = vld [vmem:[#allocation23_spill] sm:$0xff] }
 0x401   :  { %1841 = vmatmul.mubr.bf16.vlgmr.msra.gmra.mxu0 %v4417_v9  ;;  %1882 = vmatmul.mubr.bf16.vlgmr.msra.gmra.mxu1 %v4417_v9  ;;  %v5827_v9 = vld [vmem:[#allocation25_spill] sm:$0xff] }
 0x402   :  { %1949 = vmatpush1.bf16.msra.mxu0 %v3685_v41  ;;  %1990 = vmatpush1.bf16.msra.mxu1 %v3696_v48  ;;  %v5828_v41 = vld [vmem:[#allocation26_spill] sm:$0xff]  ;;  %v5829_v48 = vld [vmem:[#allocation27_spill] sm:$0xff] }
 0x403   :  { %1950 = vmatprep.subr.bf16.mxu0 %v3688_v43  ;;  %1991 = vmatprep.subr.bf16.mxu1 %v5820_v24  ;;  %v5830_v43 = vld [vmem:[#allocation28_spill] sm:$0xff]  ;;  %v5831_v24 = vld [vmem:[#allocation29_spill] sm:$0xff] }
 0x406   :  { %1951 = vmatpush1.bf16.msra.mxu0 %v5821_v28  ;;  %1992 = vmatpush1.bf16.msra.mxu1 %v5822_v60  ;;  %v5832_v28 = vld [vmem:[#allocation30_spill] sm:$0xff]  ;;  %v5833_v60 = vld [vmem:[#allocation31_spill] sm:$0xff] }
 0x407   :  { %1952 = vmatprep.subr.bf16.mxu0 %v5823_v39  ;;  %1993 = vmatprep.subr.bf16.mxu1 %v5824_v34  ;;  %v5834_v39 = vld [vmem:[#allocation32_spill] sm:$0xff]  ;;  %v5835_v34 = vld [vmem:[#allocation33_spill] sm:$0xff] }
 0x40a   :  { %1953 = vmatpush1.bf16.msra.mxu0 %v5825_v44  ;;  %1994 = vmatpush1.bf16.msra.mxu1 %v5826_v8  ;;  %v5836_v44 = vld [vmem:[#allocation34_spill] sm:$0xff]  ;;  %v5837_v8 = vld [vmem:[#allocation35_spill] sm:$0xff] }
 0x40b   :  { %1954 = vmatprep.subr.bf16.mxu0 %v5827_v9  ;;  %1995 = vmatprep.subr.bf16.mxu1 %v5828_v41  ;;  %v5838_v9 = vld [vmem:[#allocation36_spill] sm:$0xff]  ;;  %v5839_v41 = vld [vmem:[#allocation37_spill] sm:$0xff] }
 0x40e   :  { %1955 = vmatpush1.bf16.msra.mxu0 %v5829_v48  ;;  %1996 = vmatpush1.bf16.msra.mxu1 %v5830_v43  ;;  %v5840_v48 = vld [vmem:[#allocation38_spill] sm:$0xff]  ;;  %v5841_v43 = vld [vmem:[#allocation39_spill] sm:$0xff] }
 0x40f   :  { %1956 = vmatprep.subr.bf16.mxu0 %v5831_v24  ;;  %1997 = vmatprep.subr.bf16.mxu1 %v5832_v28  ;;  %v5842_v24 = vld [vmem:[#allocation40_spill] sm:$0xff]  ;;  %v5843_v28 = vld [vmem:[#allocation41_spill] sm:$0xff] }
 0x412   :  { %1957 = vmatpush1.bf16.msra.mxu0 %v5833_v60  ;;  %1998 = vmatpush1.bf16.msra.mxu1 %v5834_v39  ;;  %v5844_v60 = vld [vmem:[#allocation42_spill] sm:$0xff]  ;;  %v5845_v39 = vld [vmem:[#allocation43_spill] sm:$0xff] }
 0x413   :  { %1958 = vmatprep.subr.bf16.mxu0 %v5835_v34  ;;  %1999 = vmatprep.subr.bf16.mxu1 %v5836_v44  ;;  %v5846_v34 = vld [vmem:[#allocation44_spill] sm:$0xff]  ;;  %v5847_v44 = vld [vmem:[#allocation45_spill] sm:$0xff] }
 0x416   :  { %1959 = vmatpush1.bf16.msra.mxu0 %v5837_v8  ;;  %2000 = vmatpush1.bf16.msra.mxu1 %v5838_v9  ;;  %v5848_v8 = vld [vmem:[#allocation46_spill] sm:$0xff]  ;;  %v5849_v9 = vld [vmem:[#allocation47_spill] sm:$0xff] }
 0x417   :  { %1960 = vmatprep.subr.bf16.mxu0 %v5839_v41  ;;  %2001 = vmatprep.subr.bf16.mxu1 %v5840_v48  ;;  %v5850_v41 = vld [vmem:[#allocation48_spill] sm:$0xff]  ;;  %v5851_v48 = vld [vmem:[#allocation49_spill] sm:$0xff] }
 0x41a   :  { %1961 = vmatpush1.bf16.msra.mxu0 %v5841_v43  ;;  %2002 = vmatpush1.bf16.msra.mxu1 %v5842_v24  ;;  %v5852_v43 = vld [vmem:[#allocation50_spill] sm:$0xff]  ;;  %v5853_v24 = vld [vmem:[#allocation51_spill] sm:$0xff] }
 0x41b   :  { %1962 = vmatprep.subr.bf16.mxu0 %v5843_v28  ;;  %2003 = vmatprep.subr.bf16.mxu1 %v5844_v60  ;;  %v5854_v28 = vld [vmem:[#allocation52_spill] sm:$0xff]  ;;  %v5855_v60 = vld [vmem:[#allocation53_spill] sm:$0xff] }
 0x41e   :  { %1963 = vmatpush1.bf16.msra.mxu0 %v5845_v39  ;;  %2004 = vmatpush1.bf16.msra.mxu1 %v5846_v34  ;;  %v5856_v39 = vld [vmem:[#allocation54_spill] sm:$0xff]  ;;  %v5857_v34 = vld [vmem:[#allocation55_spill] sm:$0xff] }
 0x41f   :  { %1964 = vmatprep.subr.bf16.mxu0 %v5847_v44  ;;  %2005 = vmatprep.subr.bf16.mxu1 %v5848_v8  ;;  %v5858_v44 = vld [vmem:[#allocation56_spill] sm:$0xff]  ;;  %v5859_v8 = vld [vmem:[#allocation57_spill] sm:$0xff] }
 0x422   :  { %1965 = vmatpush2.bf16.msra.mxu0 %v5849_v9  ;;  %2006 = vmatpush2.bf16.msra.mxu1 %v5850_v41  ;;  %v5860_v9 = vld [vmem:[#allocation58_spill] sm:$0xff]  ;;  %v5861_v41 = vld [vmem:[#allocation59_spill] sm:$0xff] }
 0x423   :  { %1966 = vmatprep.subr.bf16.mxu0 %v5851_v48  ;;  %2007 = vmatprep.subr.bf16.mxu1 %v5852_v43  ;;  %v5862_v48 = vld [vmem:[#allocation60_spill] sm:$0xff]  ;;  %v5863_v43 = vld [vmem:[#allocation61_spill] sm:$0xff] }
 0x426   :  { %1967 = vmatpush2.bf16.msra.mxu0 %v5853_v24  ;;  %2008 = vmatpush2.bf16.msra.mxu1 %v5854_v28  ;;  %v5864_v24 = vld [vmem:[#allocation62_spill] sm:$0xff]  ;;  %v5865_v28 = vld [vmem:[#allocation63_spill] sm:$0xff] }
 0x427   :  { %1968 = vmatprep.subr.bf16.mxu0 %v5855_v60  ;;  %2009 = vmatprep.subr.bf16.mxu1 %v5856_v39  ;;  %v5866_v60 = vld [vmem:[#allocation64_spill] sm:$0xff]  ;;  %v5867_v39 = vld [vmem:[#allocation65_spill] sm:$0xff] }
 0x42a   :  { %1969 = vmatpush2.bf16.msra.mxu0 %v5857_v34  ;;  %2010 = vmatpush2.bf16.msra.mxu1 %v5858_v44  ;;  %v5868_v34 = vld [vmem:[#allocation66_spill] sm:$0xff]  ;;  %v5869_v44 = vld [vmem:[#allocation67_spill] sm:$0xff] }
 0x42b   :  { %1970 = vmatprep.subr.bf16.mxu0 %v5859_v8  ;;  %2011 = vmatprep.subr.bf16.mxu1 %v5860_v9  ;;  %v5870_v8 = vld [vmem:[#allocation68_spill] sm:$0xff]  ;;  %v5871_v9 = vld [vmem:[#allocation69_spill] sm:$0xff] }
 0x42e   :  { %1971 = vmatpush2.bf16.msra.mxu0 %v5861_v41  ;;  %2012 = vmatpush2.bf16.msra.mxu1 %v5862_v48  ;;  %v5872_v41 = vld [vmem:[#allocation70_spill] sm:$0xff]  ;;  %v5873_v48 = vld [vmem:[#allocation71_spill] sm:$0xff] }
 0x42f   :  { %1972 = vmatprep.subr.bf16.mxu0 %v5863_v43  ;;  %2013 = vmatprep.subr.bf16.mxu1 %v5864_v24  ;;  %v5874_v43 = vld [vmem:[#allocation72_spill] sm:$0xff]  ;;  %v5875_v24 = vld [vmem:[#allocation73_spill] sm:$0xff] }
 0x432   :  { %1973 = vmatpush2.bf16.msra.mxu0 %v5865_v28  ;;  %2014 = vmatpush2.bf16.msra.mxu1 %v5866_v60  ;;  %v5876_v28 = vld [vmem:[#allocation74_spill] sm:$0xff]  ;;  %v5877_v60 = vld [vmem:[#allocation75_spill] sm:$0xff] }
 0x433   :  { %1974 = vmatprep.subr.bf16.mxu0 %v5867_v39  ;;  %2015 = vmatprep.subr.bf16.mxu1 %v5868_v34  ;;  %v5878_v39 = vld [vmem:[#allocation76_spill] sm:$0xff]  ;;  %v5879_v34 = vld [vmem:[#allocation77_spill] sm:$0xff] }
 0x436   :  { %1975 = vmatpush2.bf16.msra.mxu0 %v5869_v44  ;;  %2016 = vmatpush2.bf16.msra.mxu1 %v5870_v8  ;;  %v5880_v44 = vld [vmem:[#allocation78_spill] sm:$0xff]  ;;  %v5881_v8 = vld [vmem:[#allocation81_spill] sm:$0xff] }
 0x437   :  { %1976 = vmatprep.subr.bf16.mxu0 %v5871_v9  ;;  %2017 = vmatprep.subr.bf16.mxu1 %v5872_v41  ;;  %v5882_v9 = vld [vmem:[#allocation151_spill] sm:$0xff] }
 0x438   :  { %v366_v20 = vadd.f32 %v5882_v9, %v5881_v8  ;;  %v5883_v41 = vld [vmem:[#allocation83_spill] sm:$0xff] }
 0x43a   :  { %1977 = vmatpush2.bf16.msra.mxu0 %v5873_v48  ;;  %2018 = vmatpush2.bf16.msra.mxu1 %v5874_v43  ;;  %v439_v48 = vadd.f32 %v5884_v22, %v5883_v41 }
 0x43b   :  { %1978 = vmatprep.subr.bf16.mxu0 %v5875_v24  ;;  %2019 = vmatprep.subr.bf16.mxu1 %v5876_v28  ;;  %v5885_v24 = vld [vmem:[#allocation153_spill] sm:$0xff]  ;;  %v5886_v28 = vld [vmem:[#allocation152_spill] sm:$0xff] }
 0x43c   :  { %v368_v55 = vadd.f32 %v5885_v24, %v5680_v45 }
 0x43e   :  { %1979 = vmatpush2.bf16.msra.mxu0 %v5877_v60  ;;  %2020 = vmatpush2.bf16.msra.mxu1 %v5878_v39  ;;  %v441_v60 = vadd.f32 %v5886_v28, %v5681_v6 }
 0x43f   :  { %2030 = vmatprep.subr.bf16.mxu0 %v5879_v34  ;;  %2071 = vmatprep.subr.bf16.mxu1 %v5880_v44 }
 0x481   :  { %v1760_v53 = vpop.f32.mrf.mxu0  ;;  %v1801_v43 = vpop.f32.mrf.mxu1 }
 0x482   :  { %v1918_v52 = vadd.f32 %v1760_v53, %v366_v20  ;;  %v1920_v39 = vadd.f32 %v1801_v43, %v439_v48 }
 0x483   :  { %v1762_v33 = vpop.f32.mrf.mxu0  ;;  %v1803_v34 = vpop.f32.mrf.mxu1 }
 0x484   :  { %v3174_v42 = vmul.f32 -1.442695, %v1918_v52  ;;  %v1919_v44 = vadd.f32 %v1762_v33, %v368_v55  ;;  %v1921_v1 = vadd.f32 %v1803_v34, %v441_v60 }
 0x485   :  { %v1764_v14 = vpop.f32.mrf.mxu0  ;;  %v1805_v9 = vpop.f32.mrf.mxu1 }
 0x486   :  { %3351 = vpow2.f32 %v3174_v42  ;;  %v3175_v8 = vmul.f32 -1.442695, %v1919_v44 }
 0x487   :  { %v1765_v22 = vpop.f32.mrf.mxu0  ;;  %v1806_v41 = vpop.f32.mrf.mxu1 }
 0x488   :  { %3353 = vpow2.f32 %v3175_v8  ;;  %v3176_v22 = vmul.f32 -1.442695, %v1920_v39 }
 0x489   :  { %3355 = vtanh.f32 %v1921_v1 }
 0x493   :  { %v3352_v21 = vpop.eup %3351 }
 0x494   :  { %v1931_v32 = vadd.f32 1.0, %v3352_v21 }
 0x495   :  { %v3354_v24 = vpop.eup %3353 }
 0x496   :  { %3357 = vrcp.f32 %v1931_v32  ;;  %v1932_v28 = vadd.f32 1.0, %v3354_v24  ;;  %v3356_v43 = vpop.eup %3355 }
 0x498   :  { %3359 = vrcp.f32 %v1932_v28 }
 0x4a3   :  { %v3358_v48 = vpop.eup %3357 }
 0x4a4   :  { %v1942_v53 = vmul.f32 %v3358_v48, %v3356_v43 }
 0x4a5   :  { %v3360_v20 = vpop.eup %3359 }
 0x4a6   :  { %v1941_v34 = vmul.f32 %v3360_v20, %v4406_v50 }
 0x4a8   :  { %v4560_v14 = vadd.f32 %v1942_v53, %v1941_v34 }
 0x4c1   :  { %v1842_v42 = vpop.f32.mrf.mxu0  ;;  %v1883_v44 = vpop.f32.mrf.mxu1 }
 0x4c2   :  { %v1890_v41 = vadd.f32 %v1842_v42, %v4241_v51  ;;  %v1892_v50 = vadd.f32 %v1883_v44, %v4251_v59 }
 0x4c3   :  { %v1844_v60 = vpop.f32.mrf.mxu0  ;;  %v1885_v55 = vpop.f32.mrf.mxu1 }
 0x4c4   :  { %v3171_v8 = vmul.f32 -1.442695, %v1890_v41  ;;  %v1891_v1 = vadd.f32 %v1844_v60, %v4245_v26  ;;  %v3173_v24 = vmul.f32 -1.442695, %v1892_v50  ;;  %v1893_v43 = vadd.f32 %v1885_v55, %v4256_v27 }
 0x4c5   :  { %v1846_v33 = vpop.f32.mrf.mxu0  ;;  %v1887_v52 = vpop.f32.mrf.mxu1 }
 0x4c6   :  { %3361 = vpow2.f32 %v3171_v8  ;;  %v3172_v32 = vmul.f32 -1.442695, %v1891_v1 }
 0x4c7   :  { %v1847_v21 = vpop.f32.mrf.mxu0  ;;  %v1888_v9 = vpop.f32.mrf.mxu1 }
 0x4c8   :  { %3363 = vpow2.f32 %v3172_v32 }
 0x4c9   :  { %3365 = vpow2.f32 %v3176_v22 }
 0x4ca   :  { %3367 = vpow2.f32 %v3173_v24 }
 0x4d3   :  { %v3362_v28 = vpop.eup %3361 }
 0x4d4   :  { %v1903_v48 = vadd.f32 1.0, %v3362_v28 }
 0x4d5   :  { %v3364_v53 = vpop.eup %3363 }
 0x4d6   :  { %3369 = vrcp.f32 %v1903_v48  ;;  %v1904_v20 = vadd.f32 1.0, %v3364_v53  ;;  %v3366_v34 = vpop.eup %3365  ;;  %v5889_v48 = vld [vmem:[#allocation102_spill] sm:$0xff]  ;;  %v5890_v53 = vld [vmem:[#allocation103_spill] sm:$0xff] }
 0x4d7   :  { %3371 = vtanh.f32 %v1893_v43  ;;  %v3368_v42 = vpop.eup %3367  ;;  %v1933_v8 = vadd.f32 1.0, %v3366_v34  ;;  %v5888_v43 = vld [vmem:[#allocation101_spill] sm:$0xff] }
 0x4d8   :  { %3373 = vrcp.f32 %v1904_v20  ;;  %v1905_v44 = vadd.f32 1.0, %v3368_v42  ;;  %v5891_v20 = vld [vmem:[#allocation104_spill] sm:$0xff]  ;;  %v5892_v34 = vld [vmem:[#allocation105_spill] sm:$0xff]  ;;  %v5893_v42 = vld [vmem:[#allocation106_spill] sm:$0xff] }
 0x4d9   :  { %3375 = vtanh.f32 %v4560_v14 }
 0x4da   :  { %3377 = vrcp.f32 %v1933_v8  ;;  %v5896_v8 = vld [vmem:[#allocation109_spill] sm:$0xff] }
 0x4db   :  { %3379 = vrcp.f32 %v1905_v44  ;;  %v5898_v44 = vld [vmem:[#allocation114_spill] sm:$0xff] }
 0x4e3   :  { %v3370_v41 = vpop.eup %3369 }
 0x4e4   :  { %v3372_v60 = vpop.eup %3371 }
 0x4e5   :  { %v3374_v1 = vpop.eup %3373  ;;  %v1914_v33 = vmul.f32 %v3372_v60, %v3370_v41  ;;  %v5894_v41 = vld [vmem:[#allocation107_spill] sm:$0xff]  ;;  %v5895_v60 = vld [vmem:[#allocation108_spill] sm:$0xff] }
 0x4e6   :  { %v1913_v39 = vmul.f32 %v3374_v1, %v4414_v17  ;;  %v3376_v52 = vpop.eup %3375  ;;  %v5887_v17 = vld [vmem:[#allocation100_spill] sm:$0xff]  ;;  %v5897_v1 = vld [vmem:[#allocation113_spill] sm:$0xff] }
 0x4e7   :  { %v3378_v32 = vpop.eup %3377 }
 0x4e8   :  { %v4568_v55 = vadd.f32 %v1914_v33, %v1913_v39  ;;  %v3380_v21 = vpop.eup %3379  ;;  %v1945_v50 = vmul.f32 %v3378_v32, %v3376_v52  ;;  %v5899_v39 = vld [vmem:[#allocation130_spill] sm:$0xff]  ;;  %v5900_v33 = vld [vmem:[#allocation131_spill] sm:$0xff]  ;;  %v5901_v52 = vld [vmem:[#allocation132_spill] sm:$0xff] }
 0x4e9   :  { %v5902_v32 = vld [vmem:[#allocation133_spill] sm:$0xff] }
 0x4ea   :  { %3381 = vtanh.f32 %v4568_v55  ;;  %v4571_v28 = vpack.c.bf16 %v1945_v50, %v1945_v50  ;;  %v5905_v50 = vld [vmem:[#allocation136_spill] sm:$0xff] }
 0x4f7   :  { %v3382_v9 = vpop.eup %3381 }
 0x4f8   :  { %v1917_v22 = vmul.f32 %v3382_v9, %v3380_v21  ;;  %v5903_v21 = vld [vmem:[#allocation134_spill] sm:$0xff]  ;;  %v5904_v9 = vld [vmem:[#allocation135_spill] sm:$0xff] }
 0x4fa   :  { %v1947_v24 = vpack.c.bf16 %v1917_v22, %v1917_v22  ;;  %v5906_v22 = vld [vmem:[#allocation137_spill] sm:$0xff] }
 0x4fc   :  { %1980 = vmatprep.mubr.bf16.mxu0 %v1947_v24  ;;  %2021 = vmatprep.mubr.bf16.mxu1 %v1947_v24 }
 0x4fd   :  { %1981 = vmatmul.mubr.bf16.vlgmr.msra.gmra.mxu0 %v4571_v28  ;;  %2022 = vmatmul.mubr.bf16.vlgmr.msra.gmra.mxu1 %v4571_v28 }
 0x4fe   :  { %2031 = vmatpush1.bf16.msra.mxu0 %v3889_v38  ;;  %2072 = vmatpush1.bf16.msra.mxu1 %v5692_v13 }
 0x4ff   :  { %2062 = vmatprep.mubr.bf16.mxu0 %v1947_v24  ;;  %2103 = vmatprep.mubr.bf16.mxu1 %v1947_v24  ;;  %v5907_v24 = vld [vmem:[#allocation138_spill] sm:$0xff] }
 0x500   :  { %2032 = vmatprep.subr.bf16.mxu0 %v5693_v40  ;;  %2073 = vmatprep.subr.bf16.mxu1 %v5694_v29 }
 0x502   :  { %2033 = vmatpush1.bf16.msra.mxu0 %v5695_v36  ;;  %2074 = vmatpush1.bf16.msra.mxu1 %v5696_v4 }
 0x503   :  { %2034 = vmatprep.subr.bf16.mxu0 %v5787_v12  ;;  %2075 = vmatprep.subr.bf16.mxu1 %v5788_v0 }
 0x506   :  { %2035 = vmatpush1.bf16.msra.mxu0 %v5789_v3  ;;  %2076 = vmatpush1.bf16.msra.mxu1 %v5790_v25 }
 0x507   :  { %2036 = vmatprep.subr.bf16.mxu0 %v5791_v58  ;;  %2077 = vmatprep.subr.bf16.mxu1 %v5792_v57 }
 0x50a   :  { %2037 = vmatpush1.bf16.msra.mxu0 %v5793_v56  ;;  %2078 = vmatpush1.bf16.msra.mxu1 %v5794_v10 }
 0x50b   :  { %2038 = vmatprep.subr.bf16.mxu0 %v5795_v15  ;;  %2079 = vmatprep.subr.bf16.mxu1 %v5796_v47 }
 0x50e   :  { %2039 = vmatpush1.bf16.msra.mxu0 %v5887_v17  ;;  %2080 = vmatpush1.bf16.msra.mxu1 %v5888_v43 }
 0x50f   :  { %2040 = vmatprep.subr.bf16.mxu0 %v5889_v48  ;;  %2081 = vmatprep.subr.bf16.mxu1 %v5890_v53 }
 0x512   :  { %2041 = vmatpush1.bf16.msra.mxu0 %v5891_v20  ;;  %2082 = vmatpush1.bf16.msra.mxu1 %v5892_v34 }
 0x513   :  { %2042 = vmatprep.subr.bf16.mxu0 %v5893_v42  ;;  %2083 = vmatprep.subr.bf16.mxu1 %v5894_v41 }
 0x516   :  { %2043 = vmatpush1.bf16.msra.mxu0 %v5895_v60  ;;  %2084 = vmatpush1.bf16.msra.mxu1 %v5896_v8 }
 0x517   :  { %2044 = vmatprep.subr.bf16.mxu0 %v5807_v7  ;;  %2085 = vmatprep.subr.bf16.mxu1 %v5808_v54 }
 0x51a   :  { %2045 = vmatpush1.bf16.msra.mxu0 %v5809_v62  ;;  %2086 = vmatpush1.bf16.msra.mxu1 %v5897_v1 }
 0x51b   :  { %2046 = vmatprep.subr.bf16.mxu0 %v5898_v44  ;;  %2087 = vmatprep.subr.bf16.mxu1 %v5812_v18 }
 0x51e   :  { %2047 = vmatpush2.bf16.msra.mxu0 %v5813_v23  ;;  %2088 = vmatpush2.bf16.msra.mxu1 %v5814_v46 }
 0x51f   :  { %2048 = vmatprep.subr.bf16.mxu0 %v5815_v19  ;;  %2089 = vmatprep.subr.bf16.mxu1 %v5816_v63 }
 0x522   :  { %2049 = vmatpush2.bf16.msra.mxu0 %v5817_v2  ;;  %2090 = vmatpush2.bf16.msra.mxu1 %v5728_v30 }
 0x523   :  { %2050 = vmatprep.subr.bf16.mxu0 %v5729_v61  ;;  %2091 = vmatprep.subr.bf16.mxu1 %v5730_v31 }
 0x526   :  { %2051 = vmatpush2.bf16.msra.mxu0 %v5818_v11  ;;  %2092 = vmatpush2.bf16.msra.mxu1 %v5819_v49 }
 0x527   :  { %2052 = vmatprep.subr.bf16.mxu0 %v5733_v35  ;;  %2093 = vmatprep.subr.bf16.mxu1 %v5734_v5  ;;  %v5984_v5 = vld [vmem:[#allocation154_spill] sm:$0xff] }
 0x52a   :  { %2053 = vmatpush2.bf16.msra.mxu0 %v5735_v16  ;;  %2094 = vmatpush2.bf16.msra.mxu1 %v5736_v37  ;;  %v5908_v16 = vld [vmem:[#allocation139_spill] sm:$0xff]  ;;  %v5909_v37 = vld [vmem:[#allocation140_spill] sm:$0xff] }
 0x52b   :  { %2054 = vmatprep.subr.bf16.mxu0 %v5899_v39  ;;  %2095 = vmatprep.subr.bf16.mxu1 %v5900_v33  ;;  %v5910_v39 = vld [vmem:[#allocation141_spill] sm:$0xff]  ;;  %v5911_v33 = vld [vmem:[#allocation142_spill] sm:$0xff] }
 0x52e   :  { %2055 = vmatpush2.bf16.msra.mxu0 %v5901_v52  ;;  %2096 = vmatpush2.bf16.msra.mxu1 %v5902_v32  ;;  %v5912_v52 = vld [vmem:[#allocation143_spill] sm:$0xff]  ;;  %v5913_v32 = vld [vmem:[#allocation144_spill] sm:$0xff] }
 0x52f   :  { %2056 = vmatprep.subr.bf16.mxu0 %v5903_v21  ;;  %2097 = vmatprep.subr.bf16.mxu1 %v5904_v9  ;;  %v5914_v21 = vld [vmem:[#allocation145_spill] sm:$0xff] }
 0x530   :  { %v5915_v9 = vld [vmem:[#allocation13_spill] sm:$0xff] }
 0x532   :  { %2057 = vmatpush2.bf16.msra.mxu0 %v5905_v50  ;;  %2098 = vmatpush2.bf16.msra.mxu1 %v5906_v22  ;;  %v5916_v50 = vld [vmem:[#allocation16_spill] sm:$0xff] }
 0x533   :  { %2058 = vmatprep.subr.bf16.mxu0 %v5907_v24  ;;  %2099 = vmatprep.subr.bf16.mxu1 %v5908_v16  ;;  %v5917_v16 = vld [vmem:[#allocation14_spill] sm:$0xff]  ;;  %v5926_v24 = vld [vmem:[#allocation24_spill] sm:$0xff] }
 0x536   :  { %2059 = vmatpush2.bf16.msra.mxu0 %v5909_v37  ;;  %2100 = vmatpush2.bf16.msra.mxu1 %v5910_v39  ;;  %v5918_v37 = vld [vmem:[#allocation18_spill] sm:$0xff]  ;;  %v5919_v39 = vld [vmem:[#allocation15_spill] sm:$0xff] }
 0x537   :  { %2060 = vmatprep.subr.bf16.mxu0 %v5911_v33  ;;  %2101 = vmatprep.subr.bf16.mxu1 %v5912_v52  ;;  %v5920_v33 = vld [vmem:[#allocation19_spill] sm:$0xff]  ;;  %v5921_v52 = vld [vmem:[#allocation17_spill] sm:$0xff] }
 0x53a   :  { %2061 = vmatpush2.bf16.msra.mxu0 %v5913_v32  ;;  %2102 = vmatpush2.bf16.msra.mxu1 %v5914_v21  ;;  %v5922_v32 = vld [vmem:[#allocation20_spill] sm:$0xff]  ;;  %v5923_v21 = vld [vmem:[#allocation21_spill] sm:$0xff] }
 0x53b   :  { %2170 = vmatprep.subr.bf16.mxu0 %v5915_v9  ;;  %2211 = vmatprep.subr.bf16.mxu1 %v5916_v50  ;;  %v5924_v9 = vld [vmem:[#allocation22_spill] sm:$0xff]  ;;  %v5925_v50 = vld [vmem:[#allocation23_spill] sm:$0xff] }
 0x53d   :  { %2063 = vmatmul.mubr.bf16.vlgmr.msra.gmra.mxu0 %v4571_v28  ;;  %2104 = vmatmul.mubr.bf16.vlgmr.msra.gmra.mxu1 %v4571_v28  ;;  %v5927_v28 = vld [vmem:[#allocation25_spill] sm:$0xff] }
 0x53e   :  { %2171 = vmatpush1.bf16.msra.mxu0 %v5917_v16  ;;  %2212 = vmatpush1.bf16.msra.mxu1 %v5918_v37  ;;  %v5928_v16 = vld [vmem:[#allocation26_spill] sm:$0xff]  ;;  %v5929_v37 = vld [vmem:[#allocation27_spill] sm:$0xff] }
 0x53f   :  { %2172 = vmatprep.subr.bf16.mxu0 %v5919_v39  ;;  %2213 = vmatprep.subr.bf16.mxu1 %v5920_v33  ;;  %v5930_v39 = vld [vmem:[#allocation28_spill] sm:$0xff]  ;;  %v5931_v33 = vld [vmem:[#allocation29_spill] sm:$0xff] }
 0x542   :  { %2173 = vmatpush1.bf16.msra.mxu0 %v5921_v52  ;;  %2214 = vmatpush1.bf16.msra.mxu1 %v5922_v32  ;;  %v5932_v52 = vld [vmem:[#allocation30_spill] sm:$0xff]  ;;  %v5933_v32 = vld [vmem:[#allocation31_spill] sm:$0xff] }
 0x543   :  { %2174 = vmatprep.subr.bf16.mxu0 %v5923_v21  ;;  %2215 = vmatprep.subr.bf16.mxu1 %v5924_v9  ;;  %v5934_v21 = vld [vmem:[#allocation32_spill] sm:$0xff]  ;;  %v5935_v9 = vld [vmem:[#allocation33_spill] sm:$0xff] }
 0x546   :  { %2175 = vmatpush1.bf16.msra.mxu0 %v5925_v50  ;;  %2216 = vmatpush1.bf16.msra.mxu1 %v5926_v24  ;;  %v5936_v50 = vld [vmem:[#allocation34_spill] sm:$0xff]  ;;  %v5937_v24 = vld [vmem:[#allocation35_spill] sm:$0xff] }
 0x547   :  { %2176 = vmatprep.subr.bf16.mxu0 %v5927_v28  ;;  %2217 = vmatprep.subr.bf16.mxu1 %v5928_v16  ;;  %v5938_v28 = vld [vmem:[#allocation36_spill] sm:$0xff]  ;;  %v5939_v16 = vld [vmem:[#allocation37_spill] sm:$0xff] }
 0x54a   :  { %2177 = vmatpush1.bf16.msra.mxu0 %v5929_v37  ;;  %2218 = vmatpush1.bf16.msra.mxu1 %v5930_v39  ;;  %v5940_v37 = vld [vmem:[#allocation38_spill] sm:$0xff]  ;;  %v5941_v39 = vld [vmem:[#allocation39_spill] sm:$0xff] }
 0x54b   :  { %2178 = vmatprep.subr.bf16.mxu0 %v5931_v33  ;;  %2219 = vmatprep.subr.bf16.mxu1 %v5932_v52  ;;  %v5942_v33 = vld [vmem:[#allocation40_spill] sm:$0xff]  ;;  %v5943_v52 = vld [vmem:[#allocation41_spill] sm:$0xff] }
 0x54e   :  { %2179 = vmatpush1.bf16.msra.mxu0 %v5933_v32  ;;  %2220 = vmatpush1.bf16.msra.mxu1 %v5934_v21  ;;  %v5944_v32 = vld [vmem:[#allocation42_spill] sm:$0xff]  ;;  %v5945_v21 = vld [vmem:[#allocation43_spill] sm:$0xff] }
 0x54f   :  { %2180 = vmatprep.subr.bf16.mxu0 %v5935_v9  ;;  %2221 = vmatprep.subr.bf16.mxu1 %v5936_v50  ;;  %v5946_v9 = vld [vmem:[#allocation44_spill] sm:$0xff]  ;;  %v5947_v50 = vld [vmem:[#allocation45_spill] sm:$0xff] }
 0x552   :  { %2181 = vmatpush1.bf16.msra.mxu0 %v5937_v24  ;;  %2222 = vmatpush1.bf16.msra.mxu1 %v5938_v28  ;;  %v5948_v24 = vld [vmem:[#allocation46_spill] sm:$0xff]  ;;  %v5949_v28 = vld [vmem:[#allocation47_spill] sm:$0xff] }
 0x553   :  { %2182 = vmatprep.subr.bf16.mxu0 %v5939_v16  ;;  %2223 = vmatprep.subr.bf16.mxu1 %v5940_v37  ;;  %v5950_v16 = vld [vmem:[#allocation48_spill] sm:$0xff]  ;;  %v5951_v37 = vld [vmem:[#allocation49_spill] sm:$0xff] }
 0x556   :  { %2183 = vmatpush1.bf16.msra.mxu0 %v5941_v39  ;;  %2224 = vmatpush1.bf16.msra.mxu1 %v5942_v33  ;;  %v5952_v39 = vld [vmem:[#allocation50_spill] sm:$0xff]  ;;  %v5953_v33 = vld [vmem:[#allocation51_spill] sm:$0xff] }
 0x557   :  { %2184 = vmatprep.subr.bf16.mxu0 %v5943_v52  ;;  %2225 = vmatprep.subr.bf16.mxu1 %v5944_v32  ;;  %v5954_v52 = vld [vmem:[#allocation52_spill] sm:$0xff]  ;;  %v5955_v32 = vld [vmem:[#allocation53_spill] sm:$0xff] }
 0x55a   :  { %2185 = vmatpush1.bf16.msra.mxu0 %v5945_v21  ;;  %2226 = vmatpush1.bf16.msra.mxu1 %v5946_v9  ;;  %v5956_v21 = vld [vmem:[#allocation54_spill] sm:$0xff]  ;;  %v5957_v9 = vld [vmem:[#allocation55_spill] sm:$0xff] }
 0x55b   :  { %2186 = vmatprep.subr.bf16.mxu0 %v5947_v50  ;;  %2227 = vmatprep.subr.bf16.mxu1 %v5948_v24  ;;  %v5958_v50 = vld [vmem:[#allocation56_spill] sm:$0xff]  ;;  %v5959_v24 = vld [vmem:[#allocation57_spill] sm:$0xff] }
 0x55e   :  { %2187 = vmatpush2.bf16.msra.mxu0 %v5949_v28  ;;  %2228 = vmatpush2.bf16.msra.mxu1 %v5950_v16  ;;  %v5960_v28 = vld [vmem:[#allocation58_spill] sm:$0xff]  ;;  %v5961_v16 = vld [vmem:[#allocation59_spill] sm:$0xff] }
 0x55f   :  { %2188 = vmatprep.subr.bf16.mxu0 %v5951_v37  ;;  %2229 = vmatprep.subr.bf16.mxu1 %v5952_v39  ;;  %v5962_v37 = vld [vmem:[#allocation60_spill] sm:$0xff]  ;;  %v5963_v39 = vld [vmem:[#allocation61_spill] sm:$0xff] }
 0x562   :  { %2189 = vmatpush2.bf16.msra.mxu0 %v5953_v33  ;;  %2230 = vmatpush2.bf16.msra.mxu1 %v5954_v52  ;;  %v5964_v33 = vld [vmem:[#allocation62_spill] sm:$0xff]  ;;  %v5965_v52 = vld [vmem:[#allocation63_spill] sm:$0xff] }
 0x563   :  { %2190 = vmatprep.subr.bf16.mxu0 %v5955_v32  ;;  %2231 = vmatprep.subr.bf16.mxu1 %v5956_v21  ;;  %v5966_v32 = vld [vmem:[#allocation64_spill] sm:$0xff]  ;;  %v5967_v21 = vld [vmem:[#allocation65_spill] sm:$0xff] }
 0x566   :  { %2191 = vmatpush2.bf16.msra.mxu0 %v5957_v9  ;;  %2232 = vmatpush2.bf16.msra.mxu1 %v5958_v50  ;;  %v5968_v9 = vld [vmem:[#allocation66_spill] sm:$0xff]  ;;  %v5969_v50 = vld [vmem:[#allocation67_spill] sm:$0xff] }
 0x567   :  { %2192 = vmatprep.subr.bf16.mxu0 %v5959_v24  ;;  %2233 = vmatprep.subr.bf16.mxu1 %v5960_v28  ;;  %v5970_v24 = vld [vmem:[#allocation68_spill] sm:$0xff]  ;;  %v5971_v28 = vld [vmem:[#allocation69_spill] sm:$0xff] }
 0x56a   :  { %2193 = vmatpush2.bf16.msra.mxu0 %v5961_v16  ;;  %2234 = vmatpush2.bf16.msra.mxu1 %v5962_v37  ;;  %v5972_v16 = vld [vmem:[#allocation70_spill] sm:$0xff]  ;;  %v5973_v37 = vld [vmem:[#allocation71_spill] sm:$0xff] }
 0x56b   :  { %2194 = vmatprep.subr.bf16.mxu0 %v5963_v39  ;;  %2235 = vmatprep.subr.bf16.mxu1 %v5964_v33  ;;  %v5974_v39 = vld [vmem:[#allocation72_spill] sm:$0xff]  ;;  %v5975_v33 = vld [vmem:[#allocation73_spill] sm:$0xff] }
 0x56e   :  { %2195 = vmatpush2.bf16.msra.mxu0 %v5965_v52  ;;  %2236 = vmatpush2.bf16.msra.mxu1 %v5966_v32  ;;  %v5976_v52 = vld [vmem:[#allocation74_spill] sm:$0xff]  ;;  %v5977_v32 = vld [vmem:[#allocation75_spill] sm:$0xff] }
 0x56f   :  { %2196 = vmatprep.subr.bf16.mxu0 %v5967_v21  ;;  %2237 = vmatprep.subr.bf16.mxu1 %v5968_v9  ;;  %v5978_v21 = vld [vmem:[#allocation76_spill] sm:$0xff]  ;;  %v5979_v9 = vld [vmem:[#allocation77_spill] sm:$0xff] }
 0x572   :  { %2197 = vmatpush2.bf16.msra.mxu0 %v5969_v50  ;;  %2238 = vmatpush2.bf16.msra.mxu1 %v5970_v24  ;;  %v5980_v50 = vld [vmem:[#allocation78_spill] sm:$0xff]  ;;  %v5981_v24 = vld [vmem:[#allocation81_spill] sm:$0xff] }
 0x573   :  { %2198 = vmatprep.subr.bf16.mxu0 %v5971_v28  ;;  %2239 = vmatprep.subr.bf16.mxu1 %v5972_v16  ;;  %v5982_v28 = vld [vmem:[#allocation155_spill] sm:$0xff] }
 0x574   :  { %v372_v22 = vadd.f32 %v5982_v28, %v5981_v24  ;;  %v5983_v16 = vld [vmem:[#allocation83_spill] sm:$0xff] }
 0x576   :  { %2199 = vmatpush2.bf16.msra.mxu0 %v5973_v37  ;;  %2240 = vmatpush2.bf16.msra.mxu1 %v5974_v39  ;;  %v445_v37 = vadd.f32 %v5984_v5, %v5983_v16 }
 0x577   :  { %2200 = vmatprep.subr.bf16.mxu0 %v5975_v33  ;;  %2241 = vmatprep.subr.bf16.mxu1 %v5976_v52  ;;  %v5985_v33 = vld [vmem:[#allocation157_spill] sm:$0xff]  ;;  %v5986_v52 = vld [vmem:[#allocation156_spill] sm:$0xff] }
 0x578   :  { %v374_v49 = vadd.f32 %v5985_v33, %v5680_v45 }
 0x57a   :  { %2201 = vmatpush2.bf16.msra.mxu0 %v5977_v32  ;;  %2242 = vmatpush2.bf16.msra.mxu1 %v5978_v21  ;;  %v447_v32 = vadd.f32 %v5986_v52, %v5681_v6 }
 0x57b   :  { %2252 = vmatprep.subr.bf16.mxu0 %v5979_v9  ;;  %2293 = vmatprep.subr.bf16.mxu1 %v5980_v50 }
 0x5bd   :  { %v1982_v35 = vpop.f32.mrf.mxu0  ;;  %v2023_v39 = vpop.f32.mrf.mxu1 }
 0x5be   :  { %v2140_v11 = vadd.f32 %v1982_v35, %v372_v22  ;;  %v2142_v21 = vadd.f32 %v2023_v39, %v445_v37 }
 0x5bf   :  { %v1984_v31 = vpop.f32.mrf.mxu0  ;;  %v2025_v9 = vpop.f32.mrf.mxu1 }
 0x5c0   :  { %v3180_v61 = vmul.f32 -1.442695, %v2140_v11  ;;  %v2141_v50 = vadd.f32 %v1984_v31, %v374_v49  ;;  %v2143_v30 = vadd.f32 %v2025_v9, %v447_v32 }
 0x5c1   :  { %v1986_v2 = vpop.f32.mrf.mxu0  ;;  %v2027_v28 = vpop.f32.mrf.mxu1 }
 0x5c2   :  { %3383 = vpow2.f32 %v3180_v61  ;;  %v3181_v24 = vmul.f32 -1.442695, %v2141_v50 }
 0x5c3   :  { %v1987_v5 = vpop.f32.mrf.mxu0  ;;  %v2028_v16 = vpop.f32.mrf.mxu1 }
 0x5c4   :  { %3385 = vpow2.f32 %v3181_v24  ;;  %v3182_v5 = vmul.f32 -1.442695, %v2142_v21 }
 0x5c5   :  { %3387 = vtanh.f32 %v2143_v30 }
 0x5cf   :  { %v3384_v63 = vpop.eup %3383 }
 0x5d0   :  { %v2153_v19 = vadd.f32 1.0, %v3384_v63 }
 0x5d1   :  { %v3386_v33 = vpop.eup %3385 }
 0x5d2   :  { %3389 = vrcp.f32 %v2153_v19  ;;  %v2154_v52 = vadd.f32 1.0, %v3386_v33  ;;  %v3388_v35 = vpop.eup %3387 }
 0x5d4   :  { %3391 = vrcp.f32 %v2154_v52 }
 0x5df   :  { %v3390_v37 = vpop.eup %3389 }
 0x5e0   :  { %v2164_v39 = vmul.f32 %v3390_v37, %v3388_v35 }
 0x5e1   :  { %v3392_v11 = vpop.eup %3391 }
 0x5e2   :  { %v2163_v31 = vmul.f32 %v3392_v11, %v4560_v14 }
 0x5e4   :  { %v4714_v49 = vadd.f32 %v2164_v39, %v2163_v31 }
 0x5fd   :  { %v2064_v61 = vpop.f32.mrf.mxu0  ;;  %v2105_v2 = vpop.f32.mrf.mxu1 }
 0x5fe   :  { %v2112_v16 = vadd.f32 %v2064_v61, %v4241_v51  ;;  %v2114_v14 = vadd.f32 %v2105_v2, %v4251_v59 }
 0x5ff   :  { %v2066_v32 = vpop.f32.mrf.mxu0  ;;  %v2107_v9 = vpop.f32.mrf.mxu1 }
 0x600   :  { %v3177_v63 = vmul.f32 -1.442695, %v2112_v16  ;;  %v2113_v30 = vadd.f32 %v2066_v32, %v4245_v26  ;;  %v3179_v33 = vmul.f32 -1.442695, %v2114_v14  ;;  %v2115_v35 = vadd.f32 %v2107_v9, %v4256_v27 }
 0x601   :  { %v2068_v19 = vpop.f32.mrf.mxu0  ;;  %v2109_v50 = vpop.f32.mrf.mxu1 }
 0x602   :  { %3393 = vpow2.f32 %v3177_v63  ;;  %v3178_v22 = vmul.f32 -1.442695, %v2113_v30 }
 0x603   :  { %v2069_v24 = vpop.f32.mrf.mxu0  ;;  %v2110_v28 = vpop.f32.mrf.mxu1 }
 0x604   :  { %3395 = vpow2.f32 %v3178_v22 }
 0x605   :  { %3397 = vpow2.f32 %v3182_v5 }
 0x606   :  { %3399 = vpow2.f32 %v3179_v33 }
 0x60f   :  { %v3394_v52 = vpop.eup %3393 }
 0x610   :  { %v2125_v37 = vadd.f32 1.0, %v3394_v52 }
 0x611   :  { %v3396_v39 = vpop.eup %3395 }
 0x612   :  { %3401 = vrcp.f32 %v2125_v37  ;;  %v2126_v11 = vadd.f32 1.0, %v3396_v39  ;;  %v3398_v31 = vpop.eup %3397  ;;  %v5989_v37 = vld [vmem:[#allocation120_spill] sm:$0xff]  ;;  %v5990_v39 = vld [vmem:[#allocation121_spill] sm:$0xff] }
 0x613   :  { %3403 = vtanh.f32 %v2115_v35  ;;  %v3400_v61 = vpop.eup %3399  ;;  %v2155_v63 = vadd.f32 1.0, %v3398_v31  ;;  %v5988_v35 = vld [vmem:[#allocation119_spill] sm:$0xff] }
 0x614   :  { %3405 = vrcp.f32 %v2126_v11  ;;  %v2127_v2 = vadd.f32 1.0, %v3400_v61  ;;  %v5991_v11 = vld [vmem:[#allocation122_spill] sm:$0xff]  ;;  %v5992_v31 = vld [vmem:[#allocation123_spill] sm:$0xff]  ;;  %v5993_v61 = vld [vmem:[#allocation124_spill] sm:$0xff] }
 0x615   :  { %3407 = vtanh.f32 %v4714_v49 }
 0x616   :  { %3409 = vrcp.f32 %v2155_v63  ;;  %v5996_v63 = vld [vmem:[#allocation127_spill] sm:$0xff] }
 0x617   :  { %3411 = vrcp.f32 %v2127_v2  ;;  %v5998_v2 = vld [vmem:[#allocation129_spill] sm:$0xff] }
 0x61f   :  { %v3402_v16 = vpop.eup %3401 }
 0x620   :  { %v3404_v32 = vpop.eup %3403 }
 0x621   :  { %v3406_v30 = vpop.eup %3405  ;;  %v2136_v19 = vmul.f32 %v3404_v32, %v3402_v16  ;;  %v5994_v16 = vld [vmem:[#allocation125_spill] sm:$0xff]  ;;  %v5995_v32 = vld [vmem:[#allocation126_spill] sm:$0xff] }
 0x622   :  { %v2135_v21 = vmul.f32 %v3406_v30, %v4568_v55  ;;  %v3408_v50 = vpop.eup %3407  ;;  %v5987_v55 = vld [vmem:[#allocation118_spill] sm:$0xff]  ;;  %v5997_v30 = vld [vmem:[#allocation128_spill] sm:$0xff] }
 0x623   :  { %v3410_v22 = vpop.eup %3409 }
 0x624   :  { %v4722_v9 = vadd.f32 %v2136_v19, %v2135_v21  ;;  %v3412_v24 = vpop.eup %3411  ;;  %v2167_v14 = vmul.f32 %v3410_v22, %v3408_v50  ;;  %v5999_v21 = vld [vmem:[#allocation130_spill] sm:$0xff]  ;;  %v6000_v19 = vld [vmem:[#allocation131_spill] sm:$0xff]  ;;  %v6001_v50 = vld [vmem:[#allocation132_spill] sm:$0xff] }
 0x625   :  { %v6002_v22 = vld [vmem:[#allocation133_spill] sm:$0xff] }
 0x626   :  { %3413 = vtanh.f32 %v4722_v9  ;;  %v4725_v52 = vpack.c.bf16 %v2167_v14, %v2167_v14  ;;  %v6005_v14 = vld [vmem:[#allocation136_spill] sm:$0xff] }
 0x633   :  { %v3414_v28 = vpop.eup %3413 }
 0x634   :  { %v2139_v5 = vmul.f32 %v3414_v28, %v3412_v24  ;;  %v6003_v24 = vld [vmem:[#allocation134_spill] sm:$0xff]  ;;  %v6004_v28 = vld [vmem:[#allocation135_spill] sm:$0xff] }
 0x636   :  { %v2169_v33 = vpack.c.bf16 %v2139_v5, %v2139_v5  ;;  %v6006_v5 = vld [vmem:[#allocation137_spill] sm:$0xff] }
 0x638   :  { %2202 = vmatprep.mubr.bf16.mxu0 %v2169_v33  ;;  %2243 = vmatprep.mubr.bf16.mxu1 %v2169_v33 }
 0x639   :  { %2203 = vmatmul.mubr.bf16.vlgmr.msra.gmra.mxu0 %v4725_v52  ;;  %2244 = vmatmul.mubr.bf16.vlgmr.msra.gmra.mxu1 %v4725_v52 }
 0x63a   :  { %2253 = vmatpush1.bf16.msra.mxu0 %v3889_v38  ;;  %2294 = vmatpush1.bf16.msra.mxu1 %v5692_v13 }
 0x63b   :  { %2284 = vmatprep.mubr.bf16.mxu0 %v2169_v33  ;;  %2325 = vmatprep.mubr.bf16.mxu1 %v2169_v33  ;;  %v6007_v33 = vld [vmem:[#allocation138_spill] sm:$0xff] }
 0x63c   :  { %2254 = vmatprep.subr.bf16.mxu0 %v5693_v40  ;;  %2295 = vmatprep.subr.bf16.mxu1 %v5694_v29 }
 0x63e   :  { %2255 = vmatpush1.bf16.msra.mxu0 %v5695_v36  ;;  %2296 = vmatpush1.bf16.msra.mxu1 %v5696_v4 }
 0x63f   :  { %2256 = vmatprep.subr.bf16.mxu0 %v5787_v12  ;;  %2297 = vmatprep.subr.bf16.mxu1 %v5788_v0 }
 0x642   :  { %2257 = vmatpush1.bf16.msra.mxu0 %v5789_v3  ;;  %2298 = vmatpush1.bf16.msra.mxu1 %v5790_v25 }
 0x643   :  { %2258 = vmatprep.subr.bf16.mxu0 %v5791_v58  ;;  %2299 = vmatprep.subr.bf16.mxu1 %v5792_v57 }
 0x646   :  { %2259 = vmatpush1.bf16.msra.mxu0 %v5793_v56  ;;  %2300 = vmatpush1.bf16.msra.mxu1 %v5794_v10 }
 0x647   :  { %2260 = vmatprep.subr.bf16.mxu0 %v5795_v15  ;;  %2301 = vmatprep.subr.bf16.mxu1 %v5796_v47 }
 0x64a   :  { %2261 = vmatpush1.bf16.msra.mxu0 %v5887_v17  ;;  %2302 = vmatpush1.bf16.msra.mxu1 %v5888_v43 }
 0x64b   :  { %2262 = vmatprep.subr.bf16.mxu0 %v5889_v48  ;;  %2303 = vmatprep.subr.bf16.mxu1 %v5890_v53 }
 0x64e   :  { %2263 = vmatpush1.bf16.msra.mxu0 %v5891_v20  ;;  %2304 = vmatpush1.bf16.msra.mxu1 %v5892_v34 }
 0x64f   :  { %2264 = vmatprep.subr.bf16.mxu0 %v5893_v42  ;;  %2305 = vmatprep.subr.bf16.mxu1 %v5894_v41 }
 0x652   :  { %2265 = vmatpush1.bf16.msra.mxu0 %v5895_v60  ;;  %2306 = vmatpush1.bf16.msra.mxu1 %v5896_v8 }
 0x653   :  { %2266 = vmatprep.subr.bf16.mxu0 %v5807_v7  ;;  %2307 = vmatprep.subr.bf16.mxu1 %v5808_v54 }
 0x656   :  { %2267 = vmatpush1.bf16.msra.mxu0 %v5809_v62  ;;  %2308 = vmatpush1.bf16.msra.mxu1 %v5897_v1 }
 0x657   :  { %2268 = vmatprep.subr.bf16.mxu0 %v5898_v44  ;;  %2309 = vmatprep.subr.bf16.mxu1 %v5812_v18 }
 0x65a   :  { %2269 = vmatpush2.bf16.msra.mxu0 %v5813_v23  ;;  %2310 = vmatpush2.bf16.msra.mxu1 %v5814_v46 }
 0x65b   :  { %2270 = vmatprep.subr.bf16.mxu0 %v5987_v55  ;;  %2311 = vmatprep.subr.bf16.mxu1 %v5988_v35 }
 0x65e   :  { %2271 = vmatpush2.bf16.msra.mxu0 %v5989_v37  ;;  %2312 = vmatpush2.bf16.msra.mxu1 %v5990_v39 }
 0x65f   :  { %2272 = vmatprep.subr.bf16.mxu0 %v5991_v11  ;;  %2313 = vmatprep.subr.bf16.mxu1 %v5992_v31 }
 0x662   :  { %2273 = vmatpush2.bf16.msra.mxu0 %v5993_v61  ;;  %2314 = vmatpush2.bf16.msra.mxu1 %v5994_v16 }
 0x663   :  { %2274 = vmatprep.subr.bf16.mxu0 %v5995_v32  ;;  %2315 = vmatprep.subr.bf16.mxu1 %v5996_v63  ;;  %v6084_v63 = vld [vmem:[#allocation158_spill] sm:$0xff] }
 0x666   :  { %2275 = vmatpush2.bf16.msra.mxu0 %v5997_v30  ;;  %2316 = vmatpush2.bf16.msra.mxu1 %v5998_v2  ;;  %v6008_v30 = vld [vmem:[#allocation139_spill] sm:$0xff]  ;;  %v6009_v2 = vld [vmem:[#allocation140_spill] sm:$0xff] }
 0x667   :  { %2276 = vmatprep.subr.bf16.mxu0 %v5999_v21  ;;  %2317 = vmatprep.subr.bf16.mxu1 %v6000_v19  ;;  %v6010_v21 = vld [vmem:[#allocation141_spill] sm:$0xff]  ;;  %v6011_v19 = vld [vmem:[#allocation142_spill] sm:$0xff] }
 0x66a   :  { %2277 = vmatpush2.bf16.msra.mxu0 %v6001_v50  ;;  %2318 = vmatpush2.bf16.msra.mxu1 %v6002_v22  ;;  %v6012_v50 = vld [vmem:[#allocation143_spill] sm:$0xff]  ;;  %v6013_v22 = vld [vmem:[#allocation144_spill] sm:$0xff] }
 0x66b   :  { %2278 = vmatprep.subr.bf16.mxu0 %v6003_v24  ;;  %2319 = vmatprep.subr.bf16.mxu1 %v6004_v28  ;;  %v6014_v24 = vld [vmem:[#allocation145_spill] sm:$0xff] }
 0x66c   :  { %v6015_v28 = vld [vmem:[#allocation13_spill] sm:$0xff] }
 0x66e   :  { %2279 = vmatpush2.bf16.msra.mxu0 %v6005_v14  ;;  %2320 = vmatpush2.bf16.msra.mxu1 %v6006_v5  ;;  %v6016_v14 = vld [vmem:[#allocation16_spill] sm:$0xff] }
 0x66f   :  { %2280 = vmatprep.subr.bf16.mxu0 %v6007_v33  ;;  %2321 = vmatprep.subr.bf16.mxu1 %v6008_v30  ;;  %v6017_v30 = vld [vmem:[#allocation14_spill] sm:$0xff]  ;;  %v6026_v33 = vld [vmem:[#allocation24_spill] sm:$0xff] }
 0x672   :  { %2281 = vmatpush2.bf16.msra.mxu0 %v6009_v2  ;;  %2322 = vmatpush2.bf16.msra.mxu1 %v6010_v21  ;;  %v6018_v2 = vld [vmem:[#allocation18_spill] sm:$0xff]  ;;  %v6019_v21 = vld [vmem:[#allocation15_spill] sm:$0xff] }
 0x673   :  { %2282 = vmatprep.subr.bf16.mxu0 %v6011_v19  ;;  %2323 = vmatprep.subr.bf16.mxu1 %v6012_v50  ;;  %v6020_v19 = vld [vmem:[#allocation19_spill] sm:$0xff]  ;;  %v6021_v50 = vld [vmem:[#allocation17_spill] sm:$0xff] }
 0x676   :  { %2283 = vmatpush2.bf16.msra.mxu0 %v6013_v22  ;;  %2324 = vmatpush2.bf16.msra.mxu1 %v6014_v24  ;;  %v6022_v22 = vld [vmem:[#allocation20_spill] sm:$0xff]  ;;  %v6023_v24 = vld [vmem:[#allocation21_spill] sm:$0xff] }
 0x677   :  { %2392 = vmatprep.subr.bf16.mxu0 %v6015_v28  ;;  %2433 = vmatprep.subr.bf16.mxu1 %v6016_v14  ;;  %v6024_v28 = vld [vmem:[#allocation22_spill] sm:$0xff]  ;;  %v6025_v14 = vld [vmem:[#allocation23_spill] sm:$0xff] }
 0x679   :  { %2285 = vmatmul.mubr.bf16.vlgmr.msra.gmra.mxu0 %v4725_v52  ;;  %2326 = vmatmul.mubr.bf16.vlgmr.msra.gmra.mxu1 %v4725_v52  ;;  %v6027_v52 = vld [vmem:[#allocation25_spill] sm:$0xff] }
 0x67a   :  { %2393 = vmatpush1.bf16.msra.mxu0 %v6017_v30  ;;  %2434 = vmatpush1.bf16.msra.mxu1 %v6018_v2  ;;  %v6028_v30 = vld [vmem:[#allocation26_spill] sm:$0xff]  ;;  %v6029_v2 = vld [vmem:[#allocation27_spill] sm:$0xff] }
 0x67b   :  { %2394 = vmatprep.subr.bf16.mxu0 %v6019_v21  ;;  %2435 = vmatprep.subr.bf16.mxu1 %v6020_v19  ;;  %v6030_v21 = vld [vmem:[#allocation28_spill] sm:$0xff]  ;;  %v6031_v19 = vld [vmem:[#allocation29_spill] sm:$0xff] }
 0x67e   :  { %2395 = vmatpush1.bf16.msra.mxu0 %v6021_v50  ;;  %2436 = vmatpush1.bf16.msra.mxu1 %v6022_v22  ;;  %v6032_v50 = vld [vmem:[#allocation30_spill] sm:$0xff]  ;;  %v6033_v22 = vld [vmem:[#allocation31_spill] sm:$0xff] }
 0x67f   :  { %2396 = vmatprep.subr.bf16.mxu0 %v6023_v24  ;;  %2437 = vmatprep.subr.bf16.mxu1 %v6024_v28  ;;  %v6034_v24 = vld [vmem:[#allocation32_spill] sm:$0xff]  ;;  %v6035_v28 = vld [vmem:[#allocation33_spill] sm:$0xff] }
 0x682   :  { %2397 = vmatpush1.bf16.msra.mxu0 %v6025_v14  ;;  %2438 = vmatpush1.bf16.msra.mxu1 %v6026_v33  ;;  %v6036_v14 = vld [vmem:[#allocation34_spill] sm:$0xff]  ;;  %v6037_v33 = vld [vmem:[#allocation35_spill] sm:$0xff] }
 0x683   :  { %2398 = vmatprep.subr.bf16.mxu0 %v6027_v52  ;;  %2439 = vmatprep.subr.bf16.mxu1 %v6028_v30  ;;  %v6038_v52 = vld [vmem:[#allocation36_spill] sm:$0xff]  ;;  %v6039_v30 = vld [vmem:[#allocation37_spill] sm:$0xff] }
 0x686   :  { %2399 = vmatpush1.bf16.msra.mxu0 %v6029_v2  ;;  %2440 = vmatpush1.bf16.msra.mxu1 %v6030_v21  ;;  %v6040_v2 = vld [vmem:[#allocation38_spill] sm:$0xff]  ;;  %v6041_v21 = vld [vmem:[#allocation39_spill] sm:$0xff] }
 0x687   :  { %2400 = vmatprep.subr.bf16.mxu0 %v6031_v19  ;;  %2441 = vmatprep.subr.bf16.mxu1 %v6032_v50  ;;  %v6042_v19 = vld [vmem:[#allocation40_spill] sm:$0xff]  ;;  %v6043_v50 = vld [vmem:[#allocation41_spill] sm:$0xff] }
 0x68a   :  { %2401 = vmatpush1.bf16.msra.mxu0 %v6033_v22  ;;  %2442 = vmatpush1.bf16.msra.mxu1 %v6034_v24  ;;  %v6044_v22 = vld [vmem:[#allocation42_spill] sm:$0xff]  ;;  %v6045_v24 = vld [vmem:[#allocation43_spill] sm:$0xff] }
 0x68b   :  { %2402 = vmatprep.subr.bf16.mxu0 %v6035_v28  ;;  %2443 = vmatprep.subr.bf16.mxu1 %v6036_v14  ;;  %v6046_v28 = vld [vmem:[#allocation44_spill] sm:$0xff]  ;;  %v6047_v14 = vld [vmem:[#allocation45_spill] sm:$0xff] }
 0x68e   :  { %2403 = vmatpush1.bf16.msra.mxu0 %v6037_v33  ;;  %2444 = vmatpush1.bf16.msra.mxu1 %v6038_v52  ;;  %v6048_v33 = vld [vmem:[#allocation46_spill] sm:$0xff]  ;;  %v6049_v52 = vld [vmem:[#allocation47_spill] sm:$0xff] }
 0x68f   :  { %2404 = vmatprep.subr.bf16.mxu0 %v6039_v30  ;;  %2445 = vmatprep.subr.bf16.mxu1 %v6040_v2  ;;  %v6050_v30 = vld [vmem:[#allocation48_spill] sm:$0xff]  ;;  %v6051_v2 = vld [vmem:[#allocation49_spill] sm:$0xff] }
 0x692   :  { %2405 = vmatpush1.bf16.msra.mxu0 %v6041_v21  ;;  %2446 = vmatpush1.bf16.msra.mxu1 %v6042_v19  ;;  %v6052_v21 = vld [vmem:[#allocation50_spill] sm:$0xff]  ;;  %v6053_v19 = vld [vmem:[#allocation51_spill] sm:$0xff] }
 0x693   :  { %2406 = vmatprep.subr.bf16.mxu0 %v6043_v50  ;;  %2447 = vmatprep.subr.bf16.mxu1 %v6044_v22  ;;  %v6054_v50 = vld [vmem:[#allocation52_spill] sm:$0xff]  ;;  %v6055_v22 = vld [vmem:[#allocation53_spill] sm:$0xff] }
 0x696   :  { %2407 = vmatpush1.bf16.msra.mxu0 %v6045_v24  ;;  %2448 = vmatpush1.bf16.msra.mxu1 %v6046_v28  ;;  %v6056_v24 = vld [vmem:[#allocation54_spill] sm:$0xff]  ;;  %v6057_v28 = vld [vmem:[#allocation55_spill] sm:$0xff] }
 0x697   :  { %2408 = vmatprep.subr.bf16.mxu0 %v6047_v14  ;;  %2449 = vmatprep.subr.bf16.mxu1 %v6048_v33  ;;  %v6058_v14 = vld [vmem:[#allocation56_spill] sm:$0xff]  ;;  %v6059_v33 = vld [vmem:[#allocation57_spill] sm:$0xff] }
 0x69a   :  { %2409 = vmatpush2.bf16.msra.mxu0 %v6049_v52  ;;  %2450 = vmatpush2.bf16.msra.mxu1 %v6050_v30  ;;  %v6060_v52 = vld [vmem:[#allocation58_spill] sm:$0xff]  ;;  %v6061_v30 = vld [vmem:[#allocation59_spill] sm:$0xff] }
 0x69b   :  { %2410 = vmatprep.subr.bf16.mxu0 %v6051_v2  ;;  %2451 = vmatprep.subr.bf16.mxu1 %v6052_v21  ;;  %v6062_v2 = vld [vmem:[#allocation60_spill] sm:$0xff]  ;;  %v6063_v21 = vld [vmem:[#allocation61_spill] sm:$0xff] }
 0x69e   :  { %2411 = vmatpush2.bf16.msra.mxu0 %v6053_v19  ;;  %2452 = vmatpush2.bf16.msra.mxu1 %v6054_v50  ;;  %v6064_v19 = vld [vmem:[#allocation62_spill] sm:$0xff]  ;;  %v6065_v50 = vld [vmem:[#allocation63_spill] sm:$0xff] }
 0x69f   :  { %2412 = vmatprep.subr.bf16.mxu0 %v6055_v22  ;;  %2453 = vmatprep.subr.bf16.mxu1 %v6056_v24  ;;  %v6066_v22 = vld [vmem:[#allocation64_spill] sm:$0xff]  ;;  %v6067_v24 = vld [vmem:[#allocation65_spill] sm:$0xff] }
 0x6a2   :  { %2413 = vmatpush2.bf16.msra.mxu0 %v6057_v28  ;;  %2454 = vmatpush2.bf16.msra.mxu1 %v6058_v14  ;;  %v6068_v28 = vld [vmem:[#allocation66_spill] sm:$0xff]  ;;  %v6069_v14 = vld [vmem:[#allocation67_spill] sm:$0xff] }
 0x6a3   :  { %2414 = vmatprep.subr.bf16.mxu0 %v6059_v33  ;;  %2455 = vmatprep.subr.bf16.mxu1 %v6060_v52  ;;  %v6070_v33 = vld [vmem:[#allocation68_spill] sm:$0xff]  ;;  %v6071_v52 = vld [vmem:[#allocation69_spill] sm:$0xff] }
 0x6a6   :  { %2415 = vmatpush2.bf16.msra.mxu0 %v6061_v30  ;;  %2456 = vmatpush2.bf16.msra.mxu1 %v6062_v2  ;;  %v6072_v30 = vld [vmem:[#allocation70_spill] sm:$0xff]  ;;  %v6073_v2 = vld [vmem:[#allocation71_spill] sm:$0xff] }
 0x6a7   :  { %2416 = vmatprep.subr.bf16.mxu0 %v6063_v21  ;;  %2457 = vmatprep.subr.bf16.mxu1 %v6064_v19  ;;  %v6074_v21 = vld [vmem:[#allocation72_spill] sm:$0xff]  ;;  %v6075_v19 = vld [vmem:[#allocation73_spill] sm:$0xff] }
 0x6aa   :  { %2417 = vmatpush2.bf16.msra.mxu0 %v6065_v50  ;;  %2458 = vmatpush2.bf16.msra.mxu1 %v6066_v22  ;;  %v6076_v50 = vld [vmem:[#allocation74_spill] sm:$0xff]  ;;  %v6077_v22 = vld [vmem:[#allocation75_spill] sm:$0xff] }
 0x6ab   :  { %2418 = vmatprep.subr.bf16.mxu0 %v6067_v24  ;;  %2459 = vmatprep.subr.bf16.mxu1 %v6068_v28  ;;  %v6078_v24 = vld [vmem:[#allocation76_spill] sm:$0xff]  ;;  %v6079_v28 = vld [vmem:[#allocation77_spill] sm:$0xff] }
 0x6ae   :  { %2419 = vmatpush2.bf16.msra.mxu0 %v6069_v14  ;;  %2460 = vmatpush2.bf16.msra.mxu1 %v6070_v33  ;;  %v6080_v14 = vld [vmem:[#allocation78_spill] sm:$0xff]  ;;  %v6081_v33 = vld [vmem:[#allocation81_spill] sm:$0xff] }
 0x6af   :  { %2420 = vmatprep.subr.bf16.mxu0 %v6071_v52  ;;  %2461 = vmatprep.subr.bf16.mxu1 %v6072_v30  ;;  %v6082_v52 = vld [vmem:[#allocation159_spill] sm:$0xff] }
 0x6b0   :  { %v376_v5 = vadd.f32 %v6082_v52, %v6081_v33  ;;  %v6083_v30 = vld [vmem:[#allocation83_spill] sm:$0xff] }
 0x6b2   :  { %2421 = vmatpush2.bf16.msra.mxu0 %v6073_v2  ;;  %2462 = vmatpush2.bf16.msra.mxu1 %v6074_v21  ;;  %v449_v2 = vadd.f32 %v6084_v63, %v6083_v30 }
 0x6b3   :  { %2422 = vmatprep.subr.bf16.mxu0 %v6075_v19  ;;  %2463 = vmatprep.subr.bf16.mxu1 %v6076_v50  ;;  %v6085_v19 = vld [vmem:[#allocation161_spill] sm:$0xff]  ;;  %v6086_v50 = vld [vmem:[#allocation160_spill] sm:$0xff] }
 0x6b4   :  { %v378_v16 = vadd.f32 %v6085_v19, %v5680_v45 }
 0x6b6   :  { %2423 = vmatpush2.bf16.msra.mxu0 %v6077_v22  ;;  %2464 = vmatpush2.bf16.msra.mxu1 %v6078_v24  ;;  %v451_v22 = vadd.f32 %v6086_v50, %v5681_v6 }
 0x6b7   :  { %2474 = vmatprep.subr.bf16.mxu0 %v6079_v28  ;;  %2515 = vmatprep.subr.bf16.mxu1 %v6080_v14 }
 0x6f9   :  { %v2204_v32 = vpop.f32.mrf.mxu0  ;;  %v2245_v21 = vpop.f32.mrf.mxu1 }
 0x6fa   :  { %v2362_v61 = vadd.f32 %v2204_v32, %v376_v5  ;;  %v2364_v24 = vadd.f32 %v2245_v21, %v449_v2 }
 0x6fb   :  { %v2206_v31 = vpop.f32.mrf.mxu0  ;;  %v2247_v28 = vpop.f32.mrf.mxu1 }
 0x6fc   :  { %v3186_v11 = vmul.f32 -1.442695, %v2362_v61  ;;  %v2363_v14 = vadd.f32 %v2206_v31, %v378_v16  ;;  %v2365_v39 = vadd.f32 %v2247_v28, %v451_v22 }
 0x6fd   :  { %v2208_v37 = vpop.f32.mrf.mxu0  ;;  %v2249_v52 = vpop.f32.mrf.mxu1 }
 0x6fe   :  { %3415 = vpow2.f32 %v3186_v11  ;;  %v3187_v33 = vmul.f32 -1.442695, %v2363_v14 }
 0x6ff   :  { %v2209_v63 = vpop.f32.mrf.mxu0  ;;  %v2250_v30 = vpop.f32.mrf.mxu1 }
 0x700   :  { %3417 = vpow2.f32 %v3187_v33  ;;  %v3188_v63 = vmul.f32 -1.442695, %v2364_v24 }
 0x701   :  { %3419 = vtanh.f32 %v2365_v39 }
 0x70b   :  { %v3416_v35 = vpop.eup %3415 }
 0x70c   :  { %v2375_v55 = vadd.f32 1.0, %v3416_v35 }
 0x70d   :  { %v3418_v19 = vpop.eup %3417 }
 0x70e   :  { %3421 = vrcp.f32 %v2375_v55  ;;  %v2376_v50 = vadd.f32 1.0, %v3418_v19  ;;  %v3420_v32 = vpop.eup %3419 }
 0x710   :  { %3423 = vrcp.f32 %v2376_v50 }
 0x71b   :  { %v3422_v2 = vpop.eup %3421 }
 0x71c   :  { %v2386_v21 = vmul.f32 %v3422_v2, %v3420_v32 }
 0x71d   :  { %v3424_v61 = vpop.eup %3423 }
 0x71e   :  { %v2385_v31 = vmul.f32 %v3424_v61, %v4714_v49 }
 0x720   :  { %v4868_v37 = vadd.f32 %v2386_v21, %v2385_v31 }
 0x739   :  { %v2286_v11 = vpop.f32.mrf.mxu0  ;;  %v2327_v16 = vpop.f32.mrf.mxu1 }
 0x73a   :  { %v2334_v30 = vadd.f32 %v2286_v11, %v4241_v51  ;;  %v2336_v49 = vadd.f32 %v2327_v16, %v4251_v59 }
 0x73b   :  { %v2288_v22 = vpop.f32.mrf.mxu0  ;;  %v2329_v28 = vpop.f32.mrf.mxu1 }
 0x73c   :  { %v3183_v35 = vmul.f32 -1.442695, %v2334_v30  ;;  %v2335_v39 = vadd.f32 %v2288_v22, %v4245_v26  ;;  %v3185_v19 = vmul.f32 -1.442695, %v2336_v49  ;;  %v2337_v32 = vadd.f32 %v2329_v28, %v4256_v27 }
 0x73d   :  { %v2290_v55 = vpop.f32.mrf.mxu0  ;;  %v2331_v14 = vpop.f32.mrf.mxu1 }
 0x73e   :  { %3425 = vpow2.f32 %v3183_v35  ;;  %v3184_v5 = vmul.f32 -1.442695, %v2335_v39 }
 0x73f   :  { %v2291_v33 = vpop.f32.mrf.mxu0  ;;  %v2332_v52 = vpop.f32.mrf.mxu1 }
 0x740   :  { %3427 = vpow2.f32 %v3184_v5 }
 0x741   :  { %3429 = vpow2.f32 %v3188_v63 }
 0x742   :  { %3431 = vpow2.f32 %v3185_v19 }
 0x74b   :  { %v3426_v50 = vpop.eup %3425 }
 0x74c   :  { %v2347_v2 = vadd.f32 1.0, %v3426_v50 }
 0x74d   :  { %v3428_v21 = vpop.eup %3427 }
 0x74e   :  { %3433 = vrcp.f32 %v2347_v2  ;;  %v2348_v61 = vadd.f32 1.0, %v3428_v21  ;;  %v3430_v31 = vpop.eup %3429  ;;  %v6089_v2 = vld [vmem:[#allocation120_spill] sm:$0xff]  ;;  %v6090_v21 = vld [vmem:[#allocation121_spill] sm:$0xff] }
 0x74f   :  { %3435 = vtanh.f32 %v2337_v32  ;;  %v3432_v11 = vpop.eup %3431  ;;  %v2377_v35 = vadd.f32 1.0, %v3430_v31  ;;  %v6088_v32 = vld [vmem:[#allocation119_spill] sm:$0xff] }
 0x750   :  { %3437 = vrcp.f32 %v2348_v61  ;;  %v2349_v16 = vadd.f32 1.0, %v3432_v11  ;;  %v6091_v61 = vld [vmem:[#allocation122_spill] sm:$0xff]  ;;  %v6092_v31 = vld [vmem:[#allocation123_spill] sm:$0xff]  ;;  %v6093_v11 = vld [vmem:[#allocation124_spill] sm:$0xff] }
 0x751   :  { %3439 = vtanh.f32 %v4868_v37 }
 0x752   :  { %3441 = vrcp.f32 %v2377_v35  ;;  %v6096_v35 = vld [vmem:[#allocation127_spill] sm:$0xff] }
 0x753   :  { %3443 = vrcp.f32 %v2349_v16  ;;  %v6098_v16 = vld [vmem:[#allocation129_spill] sm:$0xff] }
 0x75b   :  { %v3434_v30 = vpop.eup %3433 }
 0x75c   :  { %v3436_v22 = vpop.eup %3435 }
 0x75d   :  { %v3438_v39 = vpop.eup %3437  ;;  %v2358_v55 = vmul.f32 %v3436_v22, %v3434_v30  ;;  %v6094_v30 = vld [vmem:[#allocation125_spill] sm:$0xff]  ;;  %v6095_v22 = vld [vmem:[#allocation126_spill] sm:$0xff] }
 0x75e   :  { %v2357_v24 = vmul.f32 %v3438_v39, %v4722_v9  ;;  %v3440_v14 = vpop.eup %3439  ;;  %v6087_v9 = vld [vmem:[#allocation118_spill] sm:$0xff]  ;;  %v6097_v39 = vld [vmem:[#allocation128_spill] sm:$0xff] }
 0x75f   :  { %v3442_v5 = vpop.eup %3441 }
 0x760   :  { %v4876_v28 = vadd.f32 %v2358_v55, %v2357_v24  ;;  %v3444_v33 = vpop.eup %3443  ;;  %v2389_v49 = vmul.f32 %v3442_v5, %v3440_v14  ;;  %v6099_v24 = vld [vmem:[#allocation130_spill] sm:$0xff]  ;;  %v6100_v55 = vld [vmem:[#allocation131_spill] sm:$0xff]  ;;  %v6101_v14 = vld [vmem:[#allocation132_spill] sm:$0xff] }
 0x761   :  { %v6102_v5 = vld [vmem:[#allocation133_spill] sm:$0xff] }
 0x762   :  { %3445 = vtanh.f32 %v4876_v28  ;;  %v4879_v50 = vpack.c.bf16 %v2389_v49, %v2389_v49  ;;  %v6105_v49 = vld [vmem:[#allocation136_spill] sm:$0xff] }
 0x76f   :  { %v3446_v52 = vpop.eup %3445 }
 0x770   :  { %v2361_v63 = vmul.f32 %v3446_v52, %v3444_v33  ;;  %v6103_v33 = vld [vmem:[#allocation134_spill] sm:$0xff]  ;;  %v6104_v52 = vld [vmem:[#allocation135_spill] sm:$0xff] }
 0x772   :  { %v2391_v19 = vpack.c.bf16 %v2361_v63, %v2361_v63  ;;  %v6106_v63 = vld [vmem:[#allocation137_spill] sm:$0xff] }
 0x774   :  { %2424 = vmatprep.mubr.bf16.mxu0 %v2391_v19  ;;  %2465 = vmatprep.mubr.bf16.mxu1 %v2391_v19 }
 0x775   :  { %2425 = vmatmul.mubr.bf16.vlgmr.msra.gmra.mxu0 %v4879_v50  ;;  %2466 = vmatmul.mubr.bf16.vlgmr.msra.gmra.mxu1 %v4879_v50 }
 0x776   :  { %2475 = vmatpush1.bf16.msra.mxu0 %v3889_v38  ;;  %2516 = vmatpush1.bf16.msra.mxu1 %v5692_v13 }
 0x777   :  { %2506 = vmatprep.mubr.bf16.mxu0 %v2391_v19  ;;  %2547 = vmatprep.mubr.bf16.mxu1 %v2391_v19  ;;  %v6107_v19 = vld [vmem:[#allocation138_spill] sm:$0xff] }
 0x778   :  { %2476 = vmatprep.subr.bf16.mxu0 %v5693_v40  ;;  %2517 = vmatprep.subr.bf16.mxu1 %v5694_v29 }
 0x77a   :  { %2477 = vmatpush1.bf16.msra.mxu0 %v5695_v36  ;;  %2518 = vmatpush1.bf16.msra.mxu1 %v5696_v4 }
 0x77b   :  { %2478 = vmatprep.subr.bf16.mxu0 %v5787_v12  ;;  %2519 = vmatprep.subr.bf16.mxu1 %v5788_v0 }
 0x77e   :  { %2479 = vmatpush1.bf16.msra.mxu0 %v5789_v3  ;;  %2520 = vmatpush1.bf16.msra.mxu1 %v5790_v25 }
 0x77f   :  { %2480 = vmatprep.subr.bf16.mxu0 %v5791_v58  ;;  %2521 = vmatprep.subr.bf16.mxu1 %v5792_v57 }
 0x782   :  { %2481 = vmatpush1.bf16.msra.mxu0 %v5793_v56  ;;  %2522 = vmatpush1.bf16.msra.mxu1 %v5794_v10 }
 0x783   :  { %2482 = vmatprep.subr.bf16.mxu0 %v5795_v15  ;;  %2523 = vmatprep.subr.bf16.mxu1 %v5796_v47 }
 0x786   :  { %2483 = vmatpush1.bf16.msra.mxu0 %v5887_v17  ;;  %2524 = vmatpush1.bf16.msra.mxu1 %v5888_v43 }
 0x787   :  { %2484 = vmatprep.subr.bf16.mxu0 %v5889_v48  ;;  %2525 = vmatprep.subr.bf16.mxu1 %v5890_v53 }
 0x78a   :  { %2485 = vmatpush1.bf16.msra.mxu0 %v5891_v20  ;;  %2526 = vmatpush1.bf16.msra.mxu1 %v5892_v34 }
 0x78b   :  { %2486 = vmatprep.subr.bf16.mxu0 %v5893_v42  ;;  %2527 = vmatprep.subr.bf16.mxu1 %v5894_v41 }
 0x78e   :  { %2487 = vmatpush1.bf16.msra.mxu0 %v5895_v60  ;;  %2528 = vmatpush1.bf16.msra.mxu1 %v5896_v8 }
 0x78f   :  { %2488 = vmatprep.subr.bf16.mxu0 %v5807_v7  ;;  %2529 = vmatprep.subr.bf16.mxu1 %v5808_v54 }
 0x792   :  { %2489 = vmatpush1.bf16.msra.mxu0 %v5809_v62  ;;  %2530 = vmatpush1.bf16.msra.mxu1 %v5897_v1 }
 0x793   :  { %2490 = vmatprep.subr.bf16.mxu0 %v5898_v44  ;;  %2531 = vmatprep.subr.bf16.mxu1 %v5812_v18 }
 0x796   :  { %2491 = vmatpush2.bf16.msra.mxu0 %v5813_v23  ;;  %2532 = vmatpush2.bf16.msra.mxu1 %v5814_v46 }
 0x797   :  { %2492 = vmatprep.subr.bf16.mxu0 %v6087_v9  ;;  %2533 = vmatprep.subr.bf16.mxu1 %v6088_v32 }
 0x79a   :  { %2493 = vmatpush2.bf16.msra.mxu0 %v6089_v2  ;;  %2534 = vmatpush2.bf16.msra.mxu1 %v6090_v21 }
 0x79b   :  { %2494 = vmatprep.subr.bf16.mxu0 %v6091_v61  ;;  %2535 = vmatprep.subr.bf16.mxu1 %v6092_v31 }
 0x79e   :  { %2495 = vmatpush2.bf16.msra.mxu0 %v6093_v11  ;;  %2536 = vmatpush2.bf16.msra.mxu1 %v6094_v30 }
 0x79f   :  { %2496 = vmatprep.subr.bf16.mxu0 %v6095_v22  ;;  %2537 = vmatprep.subr.bf16.mxu1 %v6096_v35  ;;  %v6184_v35 = vld [vmem:[#allocation162_spill] sm:$0xff] }
 0x7a2   :  { %2497 = vmatpush2.bf16.msra.mxu0 %v6097_v39  ;;  %2538 = vmatpush2.bf16.msra.mxu1 %v6098_v16  ;;  %v6108_v39 = vld [vmem:[#allocation139_spill] sm:$0xff]  ;;  %v6109_v16 = vld [vmem:[#allocation140_spill] sm:$0xff] }
 0x7a3   :  { %2498 = vmatprep.subr.bf16.mxu0 %v6099_v24  ;;  %2539 = vmatprep.subr.bf16.mxu1 %v6100_v55  ;;  %v6110_v24 = vld [vmem:[#allocation141_spill] sm:$0xff]  ;;  %v6111_v55 = vld [vmem:[#allocation142_spill] sm:$0xff] }
 0x7a6   :  { %2499 = vmatpush2.bf16.msra.mxu0 %v6101_v14  ;;  %2540 = vmatpush2.bf16.msra.mxu1 %v6102_v5  ;;  %v6112_v14 = vld [vmem:[#allocation143_spill] sm:$0xff]  ;;  %v6113_v5 = vld [vmem:[#allocation144_spill] sm:$0xff] }
 0x7a7   :  { %2500 = vmatprep.subr.bf16.mxu0 %v6103_v33  ;;  %2541 = vmatprep.subr.bf16.mxu1 %v6104_v52  ;;  %v6114_v33 = vld [vmem:[#allocation145_spill] sm:$0xff] }
 0x7a8   :  { %v6115_v52 = vld [vmem:[#allocation13_spill] sm:$0xff] }
 0x7aa   :  { %2501 = vmatpush2.bf16.msra.mxu0 %v6105_v49  ;;  %2542 = vmatpush2.bf16.msra.mxu1 %v6106_v63  ;;  %v6116_v49 = vld [vmem:[#allocation16_spill] sm:$0xff] }
 0x7ab   :  { %2502 = vmatprep.subr.bf16.mxu0 %v6107_v19  ;;  %2543 = vmatprep.subr.bf16.mxu1 %v6108_v39  ;;  %v6117_v39 = vld [vmem:[#allocation14_spill] sm:$0xff]  ;;  %v6126_v19 = vld [vmem:[#allocation24_spill] sm:$0xff] }
 0x7ae   :  { %2503 = vmatpush2.bf16.msra.mxu0 %v6109_v16  ;;  %2544 = vmatpush2.bf16.msra.mxu1 %v6110_v24  ;;  %v6118_v16 = vld [vmem:[#allocation18_spill] sm:$0xff]  ;;  %v6119_v24 = vld [vmem:[#allocation15_spill] sm:$0xff] }
 0x7af   :  { %2504 = vmatprep.subr.bf16.mxu0 %v6111_v55  ;;  %2545 = vmatprep.subr.bf16.mxu1 %v6112_v14  ;;  %v6120_v55 = vld [vmem:[#allocation19_spill] sm:$0xff]  ;;  %v6121_v14 = vld [vmem:[#allocation17_spill] sm:$0xff] }
 0x7b2   :  { %2505 = vmatpush2.bf16.msra.mxu0 %v6113_v5  ;;  %2546 = vmatpush2.bf16.msra.mxu1 %v6114_v33  ;;  %v6122_v5 = vld [vmem:[#allocation20_spill] sm:$0xff]  ;;  %v6123_v33 = vld [vmem:[#allocation21_spill] sm:$0xff] }
 0x7b3   :  { %2614 = vmatprep.subr.bf16.mxu0 %v6115_v52  ;;  %2655 = vmatprep.subr.bf16.mxu1 %v6116_v49  ;;  %v6124_v52 = vld [vmem:[#allocation22_spill] sm:$0xff]  ;;  %v6125_v49 = vld [vmem:[#allocation23_spill] sm:$0xff] }
 0x7b5   :  { %2507 = vmatmul.mubr.bf16.vlgmr.msra.gmra.mxu0 %v4879_v50  ;;  %2548 = vmatmul.mubr.bf16.vlgmr.msra.gmra.mxu1 %v4879_v50  ;;  %v6127_v50 = vld [vmem:[#allocation25_spill] sm:$0xff] }
 0x7b6   :  { %2615 = vmatpush1.bf16.msra.mxu0 %v6117_v39  ;;  %2656 = vmatpush1.bf16.msra.mxu1 %v6118_v16  ;;  %v6128_v39 = vld [vmem:[#allocation26_spill] sm:$0xff]  ;;  %v6129_v16 = vld [vmem:[#allocation27_spill] sm:$0xff] }
 0x7b7   :  { %2616 = vmatprep.subr.bf16.mxu0 %v6119_v24  ;;  %2657 = vmatprep.subr.bf16.mxu1 %v6120_v55  ;;  %v6130_v24 = vld [vmem:[#allocation28_spill] sm:$0xff]  ;;  %v6131_v55 = vld [vmem:[#allocation29_spill] sm:$0xff] }
 0x7ba   :  { %2617 = vmatpush1.bf16.msra.mxu0 %v6121_v14  ;;  %2658 = vmatpush1.bf16.msra.mxu1 %v6122_v5  ;;  %v6132_v14 = vld [vmem:[#allocation30_spill] sm:$0xff]  ;;  %v6133_v5 = vld [vmem:[#allocation31_spill] sm:$0xff] }
 0x7bb   :  { %2618 = vmatprep.subr.bf16.mxu0 %v6123_v33  ;;  %2659 = vmatprep.subr.bf16.mxu1 %v6124_v52  ;;  %v6134_v33 = vld [vmem:[#allocation32_spill] sm:$0xff]  ;;  %v6135_v52 = vld [vmem:[#allocation33_spill] sm:$0xff] }
 0x7be   :  { %2619 = vmatpush1.bf16.msra.mxu0 %v6125_v49  ;;  %2660 = vmatpush1.bf16.msra.mxu1 %v6126_v19  ;;  %v6136_v49 = vld [vmem:[#allocation34_spill] sm:$0xff]  ;;  %v6137_v19 = vld [vmem:[#allocation35_spill] sm:$0xff] }
 0x7bf   :  { %2620 = vmatprep.subr.bf16.mxu0 %v6127_v50  ;;  %2661 = vmatprep.subr.bf16.mxu1 %v6128_v39  ;;  %v6138_v50 = vld [vmem:[#allocation36_spill] sm:$0xff]  ;;  %v6139_v39 = vld [vmem:[#allocation37_spill] sm:$0xff] }
 0x7c2   :  { %2621 = vmatpush1.bf16.msra.mxu0 %v6129_v16  ;;  %2662 = vmatpush1.bf16.msra.mxu1 %v6130_v24  ;;  %v6140_v16 = vld [vmem:[#allocation38_spill] sm:$0xff]  ;;  %v6141_v24 = vld [vmem:[#allocation39_spill] sm:$0xff] }
 0x7c3   :  { %2622 = vmatprep.subr.bf16.mxu0 %v6131_v55  ;;  %2663 = vmatprep.subr.bf16.mxu1 %v6132_v14  ;;  %v6142_v55 = vld [vmem:[#allocation40_spill] sm:$0xff]  ;;  %v6143_v14 = vld [vmem:[#allocation41_spill] sm:$0xff] }
 0x7c6   :  { %2623 = vmatpush1.bf16.msra.mxu0 %v6133_v5  ;;  %2664 = vmatpush1.bf16.msra.mxu1 %v6134_v33  ;;  %v6144_v5 = vld [vmem:[#allocation42_spill] sm:$0xff]  ;;  %v6145_v33 = vld [vmem:[#allocation43_spill] sm:$0xff] }
 0x7c7   :  { %2624 = vmatprep.subr.bf16.mxu0 %v6135_v52  ;;  %2665 = vmatprep.subr.bf16.mxu1 %v6136_v49  ;;  %v6146_v52 = vld [vmem:[#allocation44_spill] sm:$0xff]  ;;  %v6147_v49 = vld [vmem:[#allocation45_spill] sm:$0xff] }
 0x7ca   :  { %2625 = vmatpush1.bf16.msra.mxu0 %v6137_v19  ;;  %2666 = vmatpush1.bf16.msra.mxu1 %v6138_v50  ;;  %v6148_v19 = vld [vmem:[#allocation46_spill] sm:$0xff]  ;;  %v6149_v50 = vld [vmem:[#allocation47_spill] sm:$0xff] }
 0x7cb   :  { %2626 = vmatprep.subr.bf16.mxu0 %v6139_v39  ;;  %2667 = vmatprep.subr.bf16.mxu1 %v6140_v16  ;;  %v6150_v39 = vld [vmem:[#allocation48_spill] sm:$0xff]  ;;  %v6151_v16 = vld [vmem:[#allocation49_spill] sm:$0xff] }
 0x7ce   :  { %2627 = vmatpush1.bf16.msra.mxu0 %v6141_v24  ;;  %2668 = vmatpush1.bf16.msra.mxu1 %v6142_v55  ;;  %v6152_v24 = vld [vmem:[#allocation50_spill] sm:$0xff]  ;;  %v6153_v55 = vld [vmem:[#allocation51_spill] sm:$0xff] }
 0x7cf   :  { %2628 = vmatprep.subr.bf16.mxu0 %v6143_v14  ;;  %2669 = vmatprep.subr.bf16.mxu1 %v6144_v5  ;;  %v6154_v14 = vld [vmem:[#allocation52_spill] sm:$0xff]  ;;  %v6155_v5 = vld [vmem:[#allocation53_spill] sm:$0xff] }
 0x7d2   :  { %2629 = vmatpush1.bf16.msra.mxu0 %v6145_v33  ;;  %2670 = vmatpush1.bf16.msra.mxu1 %v6146_v52  ;;  %v6156_v33 = vld [vmem:[#allocation54_spill] sm:$0xff]  ;;  %v6157_v52 = vld [vmem:[#allocation55_spill] sm:$0xff] }
 0x7d3   :  { %2630 = vmatprep.subr.bf16.mxu0 %v6147_v49  ;;  %2671 = vmatprep.subr.bf16.mxu1 %v6148_v19  ;;  %v6158_v49 = vld [vmem:[#allocation56_spill] sm:$0xff]  ;;  %v6159_v19 = vld [vmem:[#allocation57_spill] sm:$0xff] }
 0x7d6   :  { %2631 = vmatpush2.bf16.msra.mxu0 %v6149_v50  ;;  %2672 = vmatpush2.bf16.msra.mxu1 %v6150_v39  ;;  %v6160_v50 = vld [vmem:[#allocation58_spill] sm:$0xff]  ;;  %v6161_v39 = vld [vmem:[#allocation59_spill] sm:$0xff] }
 0x7d7   :  { %2632 = vmatprep.subr.bf16.mxu0 %v6151_v16  ;;  %2673 = vmatprep.subr.bf16.mxu1 %v6152_v24  ;;  %v6162_v16 = vld [vmem:[#allocation60_spill] sm:$0xff]  ;;  %v6163_v24 = vld [vmem:[#allocation61_spill] sm:$0xff] }
 0x7da   :  { %2633 = vmatpush2.bf16.msra.mxu0 %v6153_v55  ;;  %2674 = vmatpush2.bf16.msra.mxu1 %v6154_v14  ;;  %v6164_v55 = vld [vmem:[#allocation62_spill] sm:$0xff]  ;;  %v6165_v14 = vld [vmem:[#allocation63_spill] sm:$0xff] }
 0x7db   :  { %2634 = vmatprep.subr.bf16.mxu0 %v6155_v5  ;;  %2675 = vmatprep.subr.bf16.mxu1 %v6156_v33  ;;  %v6166_v5 = vld [vmem:[#allocation64_spill] sm:$0xff]  ;;  %v6167_v33 = vld [vmem:[#allocation65_spill] sm:$0xff] }
 0x7de   :  { %2635 = vmatpush2.bf16.msra.mxu0 %v6157_v52  ;;  %2676 = vmatpush2.bf16.msra.mxu1 %v6158_v49  ;;  %v6168_v52 = vld [vmem:[#allocation66_spill] sm:$0xff]  ;;  %v6169_v49 = vld [vmem:[#allocation67_spill] sm:$0xff] }
 0x7df   :  { %2636 = vmatprep.subr.bf16.mxu0 %v6159_v19  ;;  %2677 = vmatprep.subr.bf16.mxu1 %v6160_v50  ;;  %v6170_v19 = vld [vmem:[#allocation68_spill] sm:$0xff]  ;;  %v6171_v50 = vld [vmem:[#allocation69_spill] sm:$0xff] }
 0x7e2   :  { %2637 = vmatpush2.bf16.msra.mxu0 %v6161_v39  ;;  %2678 = vmatpush2.bf16.msra.mxu1 %v6162_v16  ;;  %v6172_v39 = vld [vmem:[#allocation70_spill] sm:$0xff]  ;;  %v6173_v16 = vld [vmem:[#allocation71_spill] sm:$0xff] }
 0x7e3   :  { %2638 = vmatprep.subr.bf16.mxu0 %v6163_v24  ;;  %2679 = vmatprep.subr.bf16.mxu1 %v6164_v55  ;;  %v6174_v24 = vld [vmem:[#allocation72_spill] sm:$0xff]  ;;  %v6175_v55 = vld [vmem:[#allocation73_spill] sm:$0xff] }
 0x7e6   :  { %2639 = vmatpush2.bf16.msra.mxu0 %v6165_v14  ;;  %2680 = vmatpush2.bf16.msra.mxu1 %v6166_v5  ;;  %v6176_v14 = vld [vmem:[#allocation74_spill] sm:$0xff]  ;;  %v6177_v5 = vld [vmem:[#allocation75_spill] sm:$0xff] }
 0x7e7   :  { %2640 = vmatprep.subr.bf16.mxu0 %v6167_v33  ;;  %2681 = vmatprep.subr.bf16.mxu1 %v6168_v52  ;;  %v6178_v33 = vld [vmem:[#allocation76_spill] sm:$0xff]  ;;  %v6179_v52 = vld [vmem:[#allocation77_spill] sm:$0xff] }
 0x7ea   :  { %2641 = vmatpush2.bf16.msra.mxu0 %v6169_v49  ;;  %2682 = vmatpush2.bf16.msra.mxu1 %v6170_v19  ;;  %v6180_v49 = vld [vmem:[#allocation78_spill] sm:$0xff]  ;;  %v6181_v19 = vld [vmem:[#allocation81_spill] sm:$0xff] }
 0x7eb   :  { %2642 = vmatprep.subr.bf16.mxu0 %v6171_v50  ;;  %2683 = vmatprep.subr.bf16.mxu1 %v6172_v39  ;;  %v6182_v50 = vld [vmem:[#allocation163_spill] sm:$0xff] }
 0x7ec   :  { %v382_v63 = vadd.f32 %v6182_v50, %v6181_v19  ;;  %v6183_v39 = vld [vmem:[#allocation83_spill] sm:$0xff] }
 0x7ee   :  { %2643 = vmatpush2.bf16.msra.mxu0 %v6173_v16  ;;  %2684 = vmatpush2.bf16.msra.mxu1 %v6174_v24  ;;  %v455_v16 = vadd.f32 %v6184_v35, %v6183_v39 }
 0x7ef   :  { %2644 = vmatprep.subr.bf16.mxu0 %v6175_v55  ;;  %2685 = vmatprep.subr.bf16.mxu1 %v6176_v14  ;;  %v6185_v55 = vld [vmem:[#allocation165_spill] sm:$0xff]  ;;  %v6186_v14 = vld [vmem:[#allocation164_spill] sm:$0xff] }
 0x7f0   :  { %v384_v30 = vadd.f32 %v6185_v55, %v5680_v45  ;;  %v6217_v45 = vld [vmem:[#allocation77_spill] sm:$0xff] }
 0x7f2   :  { %2645 = vmatpush2.bf16.msra.mxu0 %v6177_v5  ;;  %2686 = vmatpush2.bf16.msra.mxu1 %v6178_v33  ;;  %v457_v5 = vadd.f32 %v6186_v14, %v5681_v6  ;;  %v6216_v6 = vld [vmem:[#allocation145_spill] sm:$0xff] }
 0x7f3   :  { %2696 = vmatprep.subr.bf16.mxu0 %v6179_v52  ;;  %2737 = vmatprep.subr.bf16.mxu1 %v6180_v49 }
 0x835   :  { %v2426_v22 = vpop.f32.mrf.mxu0  ;;  %v2467_v24 = vpop.f32.mrf.mxu1 }
 0x836   :  { %v2584_v11 = vadd.f32 %v2426_v22, %v382_v63  ;;  %v2586_v33 = vadd.f32 %v2467_v24, %v455_v16 }
 0x837   :  { %v2428_v31 = vpop.f32.mrf.mxu0  ;;  %v2469_v52 = vpop.f32.mrf.mxu1 }
 0x838   :  { %v3192_v61 = vmul.f32 -1.442695, %v2584_v11  ;;  %v2585_v49 = vadd.f32 %v2428_v31, %v384_v30  ;;  %v2587_v21 = vadd.f32 %v2469_v52, %v457_v5 }
 0x839   :  { %v2430_v2 = vpop.f32.mrf.mxu0  ;;  %v2471_v50 = vpop.f32.mrf.mxu1 }
 0x83a   :  { %3447 = vpow2.f32 %v3192_v61  ;;  %v3193_v19 = vmul.f32 -1.442695, %v2585_v49 }
 0x83b   :  { %v2431_v35 = vpop.f32.mrf.mxu0  ;;  %v2472_v39 = vpop.f32.mrf.mxu1 }
 0x83c   :  { %3449 = vpow2.f32 %v3193_v19  ;;  %v3194_v35 = vmul.f32 -1.442695, %v2586_v33 }
 0x83d   :  { %3451 = vtanh.f32 %v2587_v21 }
 0x847   :  { %v3448_v32 = vpop.eup %3447 }
 0x848   :  { %v2597_v9 = vadd.f32 1.0, %v3448_v32 }
 0x849   :  { %v3450_v55 = vpop.eup %3449 }
 0x84a   :  { %3453 = vrcp.f32 %v2597_v9  ;;  %v2598_v14 = vadd.f32 1.0, %v3450_v55  ;;  %v3452_v22 = vpop.eup %3451 }
 0x84c   :  { %3455 = vrcp.f32 %v2598_v14 }
 0x857   :  { %v3454_v63 = vpop.eup %3453 }
 0x858   :  { %v2608_v16 = vmul.f32 %v3454_v63, %v3452_v22 }
 0x859   :  { %v3456_v11 = vpop.eup %3455 }
 0x85a   :  { %v2607_v31 = vmul.f32 %v3456_v11, %v4868_v37 }
 0x85c   :  { %v5022_v2 = vadd.f32 %v2608_v16, %v2607_v31 }
 0x85e   :  { %6187 = vst [vmem:[#allocation79_spill] sm:$0xff] %v5022_v2 }
 0x875   :  { %v2508_v61 = vpop.f32.mrf.mxu0  ;;  %v2549_v30 = vpop.f32.mrf.mxu1 }
 0x876   :  { %v2556_v52 = vadd.f32 %v2508_v61, %v4241_v51  ;;  %v2558_v37 = vadd.f32 %v2549_v30, %v4251_v59  ;;  %v6212_v59 = vld [vmem:[#allocation141_spill] sm:$0xff]  ;;  %v6214_v51 = vld [vmem:[#allocation143_spill] sm:$0xff] }
 0x877   :  { %v2510_v49 = vpop.f32.mrf.mxu0  ;;  %v2551_v19 = vpop.f32.mrf.mxu1 }
 0x878   :  { %v3189_v32 = vmul.f32 -1.442695, %v2556_v52  ;;  %v2557_v21 = vadd.f32 %v2510_v49, %v4245_v26  ;;  %v3191_v55 = vmul.f32 -1.442695, %v2558_v37  ;;  %v2559_v22 = vadd.f32 %v2551_v19, %v4256_v27  ;;  %v6211_v27 = vld [vmem:[#allocation140_spill] sm:$0xff]  ;;  %v6213_v26 = vld [vmem:[#allocation142_spill] sm:$0xff] }
 0x879   :  { %v2512_v9 = vpop.f32.mrf.mxu0  ;;  %v2553_v39 = vpop.f32.mrf.mxu1 }
 0x87a   :  { %3457 = vpow2.f32 %v3189_v32  ;;  %v3190_v24 = vmul.f32 -1.442695, %v2557_v21 }
 0x87b   :  { %v2513_v5 = vpop.f32.mrf.mxu0  ;;  %v2554_v50 = vpop.f32.mrf.mxu1 }
 0x87c   :  { %3459 = vpow2.f32 %v3190_v24 }
 0x87d   :  { %3461 = vpow2.f32 %v3194_v35 }
 0x87e   :  { %3463 = vpow2.f32 %v3191_v55 }
 0x887   :  { %v3458_v14 = vpop.eup %3457 }
 0x888   :  { %v2569_v63 = vadd.f32 1.0, %v3458_v14 }
 0x889   :  { %v3460_v16 = vpop.eup %3459 }
 0x88a   :  { %3465 = vrcp.f32 %v2569_v63  ;;  %v2570_v11 = vadd.f32 1.0, %v3460_v16  ;;  %v3462_v31 = vpop.eup %3461  ;;  %v6191_v63 = vld [vmem:[#allocation120_spill] sm:$0xff]  ;;  %v6192_v16 = vld [vmem:[#allocation121_spill] sm:$0xff] }
 0x88b   :  { %3467 = vtanh.f32 %v2559_v22  ;;  %v3464_v61 = vpop.eup %3463  ;;  %v2599_v32 = vadd.f32 1.0, %v3462_v31  ;;  %v6190_v22 = vld [vmem:[#allocation119_spill] sm:$0xff] }
 0x88c   :  { %3469 = vrcp.f32 %v2570_v11  ;;  %v2571_v30 = vadd.f32 1.0, %v3464_v61  ;;  %v6193_v11 = vld [vmem:[#allocation122_spill] sm:$0xff]  ;;  %v6194_v31 = vld [vmem:[#allocation123_spill] sm:$0xff]  ;;  %v6195_v61 = vld [vmem:[#allocation124_spill] sm:$0xff] }
 0x88d   :  { %3471 = vtanh.f32 %v5022_v2  ;;  %v6215_v2 = vld [vmem:[#allocation144_spill] sm:$0xff] }
 0x88e   :  { %3473 = vrcp.f32 %v2599_v32  ;;  %v6198_v32 = vld [vmem:[#allocation127_spill] sm:$0xff] }
 0x88f   :  { %3475 = vrcp.f32 %v2571_v30  ;;  %v6200_v30 = vld [vmem:[#allocation129_spill] sm:$0xff] }
 0x897   :  { %v3466_v52 = vpop.eup %3465 }
 0x898   :  { %v3468_v49 = vpop.eup %3467 }
 0x899   :  { %v3470_v21 = vpop.eup %3469  ;;  %v2580_v9 = vmul.f32 %v3468_v49, %v3466_v52  ;;  %v6196_v52 = vld [vmem:[#allocation125_spill] sm:$0xff]  ;;  %v6197_v49 = vld [vmem:[#allocation126_spill] sm:$0xff] }
 0x89a   :  { %v2579_v33 = vmul.f32 %v3470_v21, %v4876_v28  ;;  %v3472_v39 = vpop.eup %3471  ;;  %v6189_v28 = vld [vmem:[#allocation118_spill] sm:$0xff]  ;;  %v6199_v21 = vld [vmem:[#allocation128_spill] sm:$0xff] }
 0x89b   :  { %v3474_v24 = vpop.eup %3473 }
 0x89c   :  { %v5030_v19 = vadd.f32 %v2580_v9, %v2579_v33  ;;  %v3476_v5 = vpop.eup %3475  ;;  %v2611_v37 = vmul.f32 %v3474_v24, %v3472_v39  ;;  %v6201_v33 = vld [vmem:[#allocation130_spill] sm:$0xff]  ;;  %v6202_v9 = vld [vmem:[#allocation131_spill] sm:$0xff]  ;;  %v6203_v39 = vld [vmem:[#allocation132_spill] sm:$0xff] }
 0x89d   :  { %v6204_v24 = vld [vmem:[#allocation133_spill] sm:$0xff] }
 0x89e   :  { %6188 = vst [vmem:[#allocation86_spill] sm:$0xff] %v5030_v19  ;;  %3477 = vtanh.f32 %v5030_v19  ;;  %v5033_v14 = vpack.c.bf16 %v2611_v37, %v2611_v37  ;;  %v6207_v37 = vld [vmem:[#allocation136_spill] sm:$0xff]  ;;  %v6210_v19 = vld [vmem:[#allocation139_spill] sm:$0xff] }
 0x8ab   :  { %v3478_v50 = vpop.eup %3477 }
 0x8ac   :  { %v2583_v35 = vmul.f32 %v3478_v50, %v3476_v5  ;;  %v6205_v5 = vld [vmem:[#allocation134_spill] sm:$0xff]  ;;  %v6206_v50 = vld [vmem:[#allocation135_spill] sm:$0xff] }
 0x8ae   :  { %v2613_v55 = vpack.c.bf16 %v2583_v35, %v2583_v35  ;;  %v6208_v35 = vld [vmem:[#allocation137_spill] sm:$0xff] }
 0x8b0   :  { %2646 = vmatprep.mubr.bf16.mxu0 %v2613_v55  ;;  %2687 = vmatprep.mubr.bf16.mxu1 %v2613_v55 }
 0x8b1   :  { %2647 = vmatmul.mubr.bf16.vlgmr.msra.gmra.mxu0 %v5033_v14  ;;  %2688 = vmatmul.mubr.bf16.vlgmr.msra.gmra.mxu1 %v5033_v14 }
 0x8b2   :  { %2697 = vmatpush1.bf16.msra.mxu0 %v3889_v38  ;;  %2738 = vmatpush1.bf16.msra.mxu1 %v5692_v13 }
 0x8b3   :  { %2728 = vmatprep.mubr.bf16.mxu0 %v2613_v55  ;;  %2769 = vmatprep.mubr.bf16.mxu1 %v2613_v55  ;;  %v6209_v55 = vld [vmem:[#allocation138_spill] sm:$0xff] }
 0x8b4   :  { %2698 = vmatprep.subr.bf16.mxu0 %v5693_v40  ;;  %2739 = vmatprep.subr.bf16.mxu1 %v5694_v29 }
 0x8b6   :  { %2699 = vmatpush1.bf16.msra.mxu0 %v5695_v36  ;;  %2740 = vmatpush1.bf16.msra.mxu1 %v5696_v4 }
 0x8b7   :  { %2700 = vmatprep.subr.bf16.mxu0 %v5787_v12  ;;  %2741 = vmatprep.subr.bf16.mxu1 %v5788_v0 }
 0x8ba   :  { %2701 = vmatpush1.bf16.msra.mxu0 %v5789_v3  ;;  %2742 = vmatpush1.bf16.msra.mxu1 %v5790_v25 }
 0x8bb   :  { %2702 = vmatprep.subr.bf16.mxu0 %v5791_v58  ;;  %2743 = vmatprep.subr.bf16.mxu1 %v5792_v57 }
 0x8be   :  { %2703 = vmatpush1.bf16.msra.mxu0 %v5793_v56  ;;  %2744 = vmatpush1.bf16.msra.mxu1 %v5794_v10 }
 0x8bf   :  { %2704 = vmatprep.subr.bf16.mxu0 %v5795_v15  ;;  %2745 = vmatprep.subr.bf16.mxu1 %v5796_v47 }
 0x8c2   :  { %2705 = vmatpush1.bf16.msra.mxu0 %v5887_v17  ;;  %2746 = vmatpush1.bf16.msra.mxu1 %v5888_v43 }
 0x8c3   :  { %2706 = vmatprep.subr.bf16.mxu0 %v5889_v48  ;;  %2747 = vmatprep.subr.bf16.mxu1 %v5890_v53 }
 0x8c6   :  { %2707 = vmatpush1.bf16.msra.mxu0 %v5891_v20  ;;  %2748 = vmatpush1.bf16.msra.mxu1 %v5892_v34 }
 0x8c7   :  { %2708 = vmatprep.subr.bf16.mxu0 %v5893_v42  ;;  %2749 = vmatprep.subr.bf16.mxu1 %v5894_v41 }
 0x8ca   :  { %2709 = vmatpush1.bf16.msra.mxu0 %v5895_v60  ;;  %2750 = vmatpush1.bf16.msra.mxu1 %v5896_v8 }
 0x8cb   :  { %2710 = vmatprep.subr.bf16.mxu0 %v5807_v7  ;;  %2751 = vmatprep.subr.bf16.mxu1 %v5808_v54 }
 0x8ce   :  { %2711 = vmatpush1.bf16.msra.mxu0 %v5809_v62  ;;  %2752 = vmatpush1.bf16.msra.mxu1 %v5897_v1 }
 0x8cf   :  { %2712 = vmatprep.subr.bf16.mxu0 %v5898_v44  ;;  %2753 = vmatprep.subr.bf16.mxu1 %v5812_v18 }
 0x8d2   :  { %2713 = vmatpush2.bf16.msra.mxu0 %v5813_v23  ;;  %2754 = vmatpush2.bf16.msra.mxu1 %v5814_v46 }
 0x8d3   :  { %2714 = vmatprep.subr.bf16.mxu0 %v6189_v28  ;;  %2755 = vmatprep.subr.bf16.mxu1 %v6190_v22 }
 0x8d6   :  { %2715 = vmatpush2.bf16.msra.mxu0 %v6191_v63  ;;  %2756 = vmatpush2.bf16.msra.mxu1 %v6192_v16 }
 0x8d7   :  { %2716 = vmatprep.subr.bf16.mxu0 %v6193_v11  ;;  %2757 = vmatprep.subr.bf16.mxu1 %v6194_v31 }
 0x8da   :  { %2717 = vmatpush2.bf16.msra.mxu0 %v6195_v61  ;;  %2758 = vmatpush2.bf16.msra.mxu1 %v6196_v52 }
 0x8db   :  { %2718 = vmatprep.subr.bf16.mxu0 %v6197_v49  ;;  %2759 = vmatprep.subr.bf16.mxu1 %v6198_v32 }
 0x8de   :  { %2719 = vmatpush2.bf16.msra.mxu0 %v6199_v21  ;;  %2760 = vmatpush2.bf16.msra.mxu1 %v6200_v30 }
 0x8df   :  { %2720 = vmatprep.subr.bf16.mxu0 %v6201_v33  ;;  %2761 = vmatprep.subr.bf16.mxu1 %v6202_v9 }
 0x8e2   :  { %2721 = vmatpush2.bf16.msra.mxu0 %v6203_v39  ;;  %2762 = vmatpush2.bf16.msra.mxu1 %v6204_v24 }
 0x8e3   :  { %2722 = vmatprep.subr.bf16.mxu0 %v6205_v5  ;;  %2763 = vmatprep.subr.bf16.mxu1 %v6206_v50 }
 0x8e6   :  { %2723 = vmatpush2.bf16.msra.mxu0 %v6207_v37  ;;  %2764 = vmatpush2.bf16.msra.mxu1 %v6208_v35  ;;  %v6218_v37 = vld [vmem:[#allocation78_spill] sm:$0xff] }
 0x8e7   :  { %2724 = vmatprep.subr.bf16.mxu0 %v6209_v55  ;;  %2765 = vmatprep.subr.bf16.mxu1 %v6210_v19 }
 0x8ea   :  { %2725 = vmatpush2.bf16.msra.mxu0 %v6211_v27  ;;  %2766 = vmatpush2.bf16.msra.mxu1 %v6212_v59 }
 0x8eb   :  { %2726 = vmatprep.subr.bf16.mxu0 %v6213_v26  ;;  %2767 = vmatprep.subr.bf16.mxu1 %v6214_v51 }
 0x8ee   :  { %2727 = vmatpush2.bf16.msra.mxu0 %v6215_v2  ;;  %2768 = vmatpush2.bf16.msra.mxu1 %v6216_v6 }
 0x8ef   :  { %2836 = vmatprep.subr.bf16.mxu0 %v6217_v45  ;;  %2877 = vmatprep.subr.bf16.mxu1 %v6218_v37  ;;  %v6219_v45 = vld [vmem:[#allocation136_spill] sm:$0xff] }
 0x8f1   :  { %2729 = vmatmul.mubr.bf16.vlgmr.msra.gmra.mxu0 %v5033_v14  ;;  %2770 = vmatmul.mubr.bf16.vlgmr.msra.gmra.mxu1 %v5033_v14 }
 0x8f2   :  { %2837 = vmatpush1.bf16.msra.mxu0 %v3889_v38  ;;  %2878 = vmatpush1.bf16.msra.mxu1 %v5692_v13  ;;  %v6220_v38 = vld [vmem:[#allocation81_spill] sm:$0xff]  ;;  %v6221_v13 = vld [vmem:[#allocation167_spill] sm:$0xff] }
 0x8f3   :  { %2838 = vmatprep.subr.bf16.mxu0 %v5693_v40  ;;  %2879 = vmatprep.subr.bf16.mxu1 %v5694_v29  ;;  %v386_v40 = vadd.f32 %v6221_v13, %v6220_v38  ;;  %v6222_v29 = vld [vmem:[#allocation83_spill] sm:$0xff] }
 0x8f6   :  { %2839 = vmatpush1.bf16.msra.mxu0 %v5695_v36  ;;  %2880 = vmatpush1.bf16.msra.mxu1 %v5696_v4  ;;  %v6223_v36 = vld [vmem:[#allocation166_spill] sm:$0xff] }
 0x8f7   :  { %2840 = vmatprep.subr.bf16.mxu0 %v5787_v12  ;;  %2881 = vmatprep.subr.bf16.mxu1 %v5788_v0  ;;  %v459_v4 = vadd.f32 %v6223_v36, %v6222_v29 }
 0x8fa   :  { %2841 = vmatpush1.bf16.msra.mxu0 %v5789_v3  ;;  %2882 = vmatpush1.bf16.msra.mxu1 %v5790_v25  ;;  %v6224_v3 = vld [vmem:[#allocation82_spill] sm:$0xff] }
 0x8fb   :  { %2842 = vmatprep.subr.bf16.mxu0 %v5791_v58  ;;  %2883 = vmatprep.subr.bf16.mxu1 %v5792_v57 }
 0x8fe   :  { %2843 = vmatpush1.bf16.msra.mxu0 %v5793_v56  ;;  %2884 = vmatpush1.bf16.msra.mxu1 %v5794_v10 }
 0x8ff   :  { %2844 = vmatprep.subr.bf16.mxu0 %v5795_v15  ;;  %2885 = vmatprep.subr.bf16.mxu1 %v5796_v47 }
 0x902   :  { %2845 = vmatpush1.bf16.msra.mxu0 %v5887_v17  ;;  %2886 = vmatpush1.bf16.msra.mxu1 %v5888_v43 }
 0x903   :  { %2846 = vmatprep.subr.bf16.mxu0 %v5889_v48  ;;  %2887 = vmatprep.subr.bf16.mxu1 %v5890_v53 }
 0x906   :  { %2847 = vmatpush1.bf16.msra.mxu0 %v5891_v20  ;;  %2888 = vmatpush1.bf16.msra.mxu1 %v5892_v34 }
 0x907   :  { %2848 = vmatprep.subr.bf16.mxu0 %v5893_v42  ;;  %2889 = vmatprep.subr.bf16.mxu1 %v5894_v41 }
 0x90a   :  { %2849 = vmatpush1.bf16.msra.mxu0 %v5895_v60  ;;  %2890 = vmatpush1.bf16.msra.mxu1 %v5896_v8 }
 0x90b   :  { %2850 = vmatprep.subr.bf16.mxu0 %v5807_v7  ;;  %2891 = vmatprep.subr.bf16.mxu1 %v5808_v54 }
 0x90e   :  { %2851 = vmatpush1.bf16.msra.mxu0 %v5809_v62  ;;  %2892 = vmatpush1.bf16.msra.mxu1 %v5897_v1  ;;  %v6226_v62 = vld [vmem:[#allocation84_spill] sm:$0xff]  ;;  %v6228_v1 = vld [vmem:[#allocation79_spill] sm:$0xff] }
 0x90f   :  { %2852 = vmatprep.subr.bf16.mxu0 %v5898_v44  ;;  %2893 = vmatprep.subr.bf16.mxu1 %v5812_v18  ;;  %v6227_v18 = vld [vmem:[#allocation168_spill] sm:$0xff] }
 0x912   :  { %2853 = vmatpush2.bf16.msra.mxu0 %v5813_v23  ;;  %2894 = vmatpush2.bf16.msra.mxu1 %v5814_v46  ;;  %v461_v23 = vadd.f32 %v6227_v18, %v6226_v62 }
 0x913   :  { %2854 = vmatprep.subr.bf16.mxu0 %v6189_v28  ;;  %2895 = vmatprep.subr.bf16.mxu1 %v6190_v22 }
 0x916   :  { %2855 = vmatpush2.bf16.msra.mxu0 %v6191_v63  ;;  %2896 = vmatpush2.bf16.msra.mxu1 %v6192_v16  ;;  %v6229_v16 = vld [vmem:[#allocation85_spill] sm:$0xff] }
 0x917   :  { %2856 = vmatprep.subr.bf16.mxu0 %v6193_v11  ;;  %2897 = vmatprep.subr.bf16.mxu1 %v6194_v31 }
 0x91a   :  { %2857 = vmatpush2.bf16.msra.mxu0 %v6195_v61  ;;  %2898 = vmatpush2.bf16.msra.mxu1 %v6196_v52 }
 0x91b   :  { %2858 = vmatprep.subr.bf16.mxu0 %v6197_v49  ;;  %2899 = vmatprep.subr.bf16.mxu1 %v6198_v32  ;;  %v6230_v49 = vld [vmem:[#allocation80_spill] sm:$0xff] }
 0x91e   :  { %2859 = vmatpush2.bf16.msra.mxu0 %v6199_v21  ;;  %2900 = vmatpush2.bf16.msra.mxu1 %v6200_v30 }
 0x91f   :  { %2860 = vmatprep.subr.bf16.mxu0 %v6201_v33  ;;  %2901 = vmatprep.subr.bf16.mxu1 %v6202_v9 }
 0x922   :  { %2861 = vmatpush2.bf16.msra.mxu0 %v6203_v39  ;;  %2902 = vmatpush2.bf16.msra.mxu1 %v6204_v24  ;;  %v6231_v24 = vld [vmem:[#allocation170_spill] sm:$0xff] }
 0x923   :  { %2862 = vmatprep.subr.bf16.mxu0 %v6205_v5  ;;  %2903 = vmatprep.subr.bf16.mxu1 %v6206_v50 }
 0x926   :  { %2863 = vmatpush2.bf16.msra.mxu0 %v6219_v45  ;;  %2904 = vmatpush2.bf16.msra.mxu1 %v6208_v35  ;;  %v6232_v35 = vld [vmem:[#allocation171_spill] sm:$0xff] }
 0x927   :  { %2864 = vmatprep.subr.bf16.mxu0 %v6209_v55  ;;  %2905 = vmatprep.subr.bf16.mxu1 %v6210_v19 }
 0x92a   :  { %2865 = vmatpush2.bf16.msra.mxu0 %v6211_v27  ;;  %2906 = vmatpush2.bf16.msra.mxu1 %v6212_v59  ;;  %v6225_v27 = vld [vmem:[#allocation169_spill] sm:$0xff] }
 0x92b   :  { %2866 = vmatprep.subr.bf16.mxu0 %v6213_v26  ;;  %2907 = vmatprep.subr.bf16.mxu1 %v6214_v51  ;;  %v388_v25 = vadd.f32 %v6225_v27, %v6224_v3 }
 0x92e   :  { %2867 = vmatpush2.bf16.msra.mxu0 %v6215_v2  ;;  %2908 = vmatpush2.bf16.msra.mxu1 %v6216_v6 }
 0x971   :  { %v2648_v12 = vpop.f32.mrf.mxu0  ;;  %v2689_v0 = vpop.f32.mrf.mxu1 }
 0x972   :  { %v2806_v59 = vadd.f32 %v2648_v12, %v386_v40  ;;  %v2808_v58 = vadd.f32 %v2689_v0, %v459_v4  ;;  %v6233_v0 = vld [vmem:[#allocation86_spill] sm:$0xff] }
 0x973   :  { %v2650_v26 = vpop.f32.mrf.mxu0  ;;  %v2691_v57 = vpop.f32.mrf.mxu1 }
 0x974   :  { %v3198_v51 = vmul.f32 -1.442695, %v2806_v59  ;;  %v2807_v56 = vadd.f32 %v2650_v26, %v388_v25  ;;  %v3200_v46 = vmul.f32 -1.442695, %v2808_v58  ;;  %v2809_v7 = vadd.f32 %v2691_v57, %v461_v23 }
 0x975   :  { %v2652_v10 = vpop.f32.mrf.mxu0  ;;  %v2693_v15 = vpop.f32.mrf.mxu1 }
 0x976   :  { %3479 = vpow2.f32 %v3198_v51  ;;  %v3199_v6 = vmul.f32 -1.442695, %v2807_v56 }
 0x977   :  { %v2653_v47 = vpop.f32.mrf.mxu0  ;;  %v2694_v54 = vpop.f32.mrf.mxu1 }
 0x978   :  { %3481 = vpow2.f32 %v3199_v6 }
 0x979   :  { %3483 = vpow2.f32 %v3200_v46 }
 0x97a   :  { %3485 = vtanh.f32 %v2809_v7 }
 0x983   :  { %v3480_v17 = vpop.eup %3479 }
 0x984   :  { %v2819_v43 = vadd.f32 1.0, %v3480_v17 }
 0x985   :  { %v3482_v48 = vpop.eup %3481 }
 0x986   :  { %3487 = vrcp.f32 %v2819_v43  ;;  %v2820_v53 = vadd.f32 1.0, %v3482_v48  ;;  %v3484_v20 = vpop.eup %3483 }
 0x987   :  { %v3486_v34 = vpop.eup %3485  ;;  %v2821_v8 = vadd.f32 1.0, %v3484_v20 }
 0x988   :  { %3489 = vrcp.f32 %v2820_v53 }
 0x989   :  { %3491 = vrcp.f32 %v2821_v8 }
 0x993   :  { %v3488_v42 = vpop.eup %3487 }
 0x994   :  { %v2830_v41 = vmul.f32 %v3488_v42, %v3486_v34 }
 0x995   :  { %v3490_v60 = vpop.eup %3489 }
 0x996   :  { %v2829_v44 = vmul.f32 %v3490_v60, %v6228_v1  ;;  %v3492_v19 = vpop.eup %3491 }
 0x998   :  { %v2831_v2 = vadd.f32 %v2830_v41, %v2829_v44 }
 0x99a   :  { %3493 = vtanh.f32 %v2831_v2 }
 0x9a7   :  { %v3494_v14 = vpop.eup %3493 }
 0x9a8   :  { %v2833_v28 = vmul.f32 %v3494_v14, %v3492_v19 }
 0x9aa   :  { %v2834_v51 = vpack.c.bf16 %v2833_v28, %v2833_v28 }
 0x9b1   :  { %v2730_v22 = vpop.f32.mrf.mxu0  ;;  %v2771_v63 = vpop.f32.mrf.mxu1 }
 0x9b2   :  { %v2778_v11 = vadd.f32 %v2730_v22, %v6229_v16  ;;  %v2780_v5 = vadd.f32 %v2771_v63, %v6231_v24 }
 0x9b3   :  { %v2732_v31 = vpop.f32.mrf.mxu0  ;;  %v2773_v61 = vpop.f32.mrf.mxu1 }
 0x9b4   :  { %v3195_v52 = vmul.f32 -1.442695, %v2778_v11  ;;  %v2779_v32 = vadd.f32 %v2732_v31, %v6230_v49  ;;  %v3197_v50 = vmul.f32 -1.442695, %v2780_v5  ;;  %v2781_v55 = vadd.f32 %v2773_v61, %v6232_v35  ;;  %v3205_v61 = vld [vmem:[#allocation2] ss:$0 sm:$0xff] }
 0x9b5   :  { %v2734_v21 = vpop.f32.mrf.mxu0  ;;  %v2775_v30 = vpop.f32.mrf.mxu1 }
 0x9b6   :  { %3495 = vpow2.f32 %v3195_v52  ;;  %v3196_v33 = vmul.f32 -1.442695, %v2779_v32 }
 0x9b7   :  { %v2735_v9 = vpop.f32.mrf.mxu0  ;;  %v2776_v39 = vpop.f32.mrf.mxu1 }
 0x9b8   :  { %3497 = vpow2.f32 %v3196_v33 }
 0x9b9   :  { %3499 = vpow2.f32 %v3197_v50 }
 0x9c3   :  { %v3496_v37 = vpop.eup %3495 }
 0x9c4   :  { %v2791_v45 = vadd.f32 1.0, %v3496_v37 }
 0x9c5   :  { %v3498_v38 = vpop.eup %3497 }
 0x9c6   :  { %3501 = vrcp.f32 %v2791_v45  ;;  %v2792_v13 = vadd.f32 1.0, %v3498_v38  ;;  %v3500_v40 = vpop.eup %3499 }
 0x9c7   :  { %3503 = vtanh.f32 %v2781_v55  ;;  %v2793_v12 = vadd.f32 1.0, %v3500_v40 }
 0x9c8   :  { %3505 = vrcp.f32 %v2792_v13 }
 0x9c9   :  { %3507 = vrcp.f32 %v2793_v12 }
 0x9d3   :  { %v3502_v29 = vpop.eup %3501 }
 0x9d4   :  { %v3504_v36 = vpop.eup %3503 }
 0x9d5   :  { %v3506_v4 = vpop.eup %3505  ;;  %v2802_v27 = vmul.f32 %v3504_v36, %v3502_v29 }
 0x9d6   :  { %v2801_v3 = vmul.f32 %v3506_v4, %v6233_v0  ;;  %v3508_v59 = vpop.eup %3507 }
 0x9d8   :  { %v2803_v25 = vadd.f32 %v2802_v27, %v2801_v3 }
 0x9da   :  { %3509 = vtanh.f32 %v2803_v25 }
 0x9e7   :  { %v3510_v58 = vpop.eup %3509 }
 0x9e8   :  { %v2805_v26 = vmul.f32 %v3510_v58, %v3508_v59 }
 0x9ea   :  { %v2835_v57 = vpack.c.bf16 %v2805_v26, %v2805_v26 }
 0x9ec   :  { %2868 = vmatprep.mubr.bf16.mxu0 %v2835_v57  ;;  %2909 = vmatprep.mubr.bf16.mxu1 %v2835_v57 }
 0x9ed   :  { %2869 = vmatmul.mubr.bf16.vlgmr.msra.gmra.mxu0 %v2834_v51  ;;  %2910 = vmatmul.mubr.bf16.vlgmr.msra.gmra.mxu1 %v2834_v51 }
 0xaad   :  { %v2870_v56 = vpop.f32.mrf.mxu0  ;;  %v2911_v10 = vpop.f32.mrf.mxu1 }
 0xaae   :  { %v2918_v15 = vadd.f32 %v2870_v56, %v6229_v16  ;;  %v2920_v43 = vadd.f32 %v2911_v10, %v6231_v24  ;;  %v3204_v16 = vld [vmem:[%s5194_s5] ss:$0 sm:$0xff] }
 0xaaf   :  { %v2872_v6 = vpop.f32.mrf.mxu0  ;;  %v2913_v47 = vpop.f32.mrf.mxu1 }
 0xab0   :  { %v3201_v54 = vmul.f32 -1.442695, %v2918_v15  ;;  %v2919_v62 = vadd.f32 %v2872_v6, %v6230_v49  ;;  %v3203_v48 = vmul.f32 -1.442695, %v2920_v43  ;;  %v2921_v20 = vadd.f32 %v2913_v47, %v6232_v35 }
 0xab1   :  { %v2874_v18 = vpop.f32.mrf.mxu0  ;;  %v2915_v23 = vpop.f32.mrf.mxu1 }
 0xab2   :  { %3511 = vpow2.f32 %v3201_v54  ;;  %v3202_v46 = vmul.f32 -1.442695, %v2919_v62 }
 0xab3   :  { %v2875_v7 = vpop.f32.mrf.mxu0  ;;  %v2916_v17 = vpop.f32.mrf.mxu1 }
 0xab4   :  { %3513 = vpow2.f32 %v3202_v46 }
 0xab5   :  { %3515 = vpow2.f32 %v3203_v48 }
 0xabf   :  { %v3512_v53 = vpop.eup %3511 }
 0xac0   :  { %v2931_v34 = vadd.f32 1.0, %v3512_v53 }
 0xac1   :  { %v3514_v42 = vpop.eup %3513 }
 0xac2   :  { %3517 = vrcp.f32 %v2931_v34  ;;  %v2932_v41 = vadd.f32 1.0, %v3514_v42  ;;  %v3516_v60 = vpop.eup %3515 }
 0xac3   :  { %3519 = vtanh.f32 %v2921_v20  ;;  %v2933_v2 = vadd.f32 1.0, %v3516_v60 }
 0xac4   :  { %3521 = vrcp.f32 %v2932_v41 }
 0xac5   :  { %3523 = vrcp.f32 %v2933_v2 }
 0xacf   :  { %v3518_v8 = vpop.eup %3517 }
 0xad0   :  { %v3520_v1 = vpop.eup %3519 }
 0xad1   :  { %v3522_v44 = vpop.eup %3521  ;;  %v2942_v19 = vmul.f32 %v3520_v1, %v3518_v8 }
 0xad2   :  { %v2941_v14 = vmul.f32 %v3522_v44, %v2803_v25  ;;  %v3524_v22 = vpop.eup %3523 }
 0xad4   :  { %v2943_v28 = vadd.f32 %v2942_v19, %v2941_v14 }
 0xad6   :  { %3525 = vtanh.f32 %v2943_v28 }
 0xae3   :  { %v3526_v63 = vpop.eup %3525 }
 0xae4   :  { %v2945_v11 = vmul.f32 %v3526_v63, %v3524_v22 }
 0xae6   :  { %v2953_v31 = vmul.f32 %v3204_v16, %v2945_v11 }
 0xae8   :  { %2954 = vadd.xlane.f32.xlu0 %v2953_v31 }
 0xb71   :  { %v2955_v52 = vpop.xlane.xlu0 %2954 }
 0xb72   :  { %v2963_v49 = vadd.f32 %v3205_v61, %v2955_v52 }
 0xb74   :  { %v3206_v32 = vmul.f32 -1.442695, %v2963_v49 }
 0xb76   :  { %3527 = vpow2.f32 %v3206_v32 }
 0xb83   :  { %v3528_v21 = vpop.eup %3527 }
 0xb84   :  { %v2967_v30 = vadd.f32 1.0, %v3528_v21 }
 0xb86   :  { %3529 = vrcp.f32 %v2967_v30 }
 0xb93   :  { %v3530_v33 = vpop.eup %3529 }
 0xb94   :  { %2972 = vperm.xlu0 %3218, %v3530_v33  }
 0xc0f   :  { %v2973_v9 = vpop.permute.xlu0 %2972 }
 0xc10   :  { %2975 = vst [vmem:[#allocation9] sm:$0xff] %v2973_v9 }
 0xc11   :  { %3602 = shalt.err (!%p3599_p5)
}
 0xc12   :  { %2985 = dma.vmem_to_hbm [thread:$0]  %s2983_s25, 128, %s5196_s7, [#allocation5]  }
 0xc13   :  { %3615 = dma.done.wait [#allocation5], 128  }
 0xc14   :  { %3616 = vsyncadd [#allocation5], 4294967168 }
 0xc15   :  { %2989 = vsyncpa [#allocation4], 1 }
 0xc16   :  { %2990 = vsyncpa [#allocation7], 1 }
 0xc17   :  { %2991 = vsyncpa [#allocation5], 1 }

</bundles_post_ra>
